<compile_context>
chip_gen: v6e
topology: v6e:2x2x1
jax: 0.10.0
libtpu: 0.0.40
codegen_flags: <defaults>
</compile_context>

<pallas_src>
import jax
import jax.numpy as jnp
from jax.experimental import pallas as pl
from jax.experimental.pallas import tpu as pltpu

C_EMBED = 128     # embedding dim (real module uses 512); kept (8,128)-aligned so the
                  # in-kernel (HW,C)->(C,HW) transpose uses clean full-tile XLU moves.
FEAT_SZ = 16      # box_head.feat_sz
FEAT_LEN = FEAT_SZ * FEAT_SZ


# --------------------------------------------------------------------------- #
# Pallas kernel: forward_head hot path + fused CENTER-map epilogue
# --------------------------------------------------------------------------- #
def _sigmoid(v):
    return 1.0 / (1.0 + jnp.exp(-v))


def _forward_head_kernel(eopt_ref, dec_ref, out_ref):
    """eopt_ref: (BB, HW, C) original layout; dec_ref: (BB, 1, C) lane-dense;
    out_ref: (BB, 5, HW) -> [score, size(2), offset(2)]."""
    e = eopt_ref[...]                                   # (BB, HW, C)
    d = dec_ref[...]                                    # (BB, 1, C)
    # att[b, hw] = sum_c eopt[b, hw, c] * dec[b, 0, c]  — VPU multiply + lane reduce.
    att = jnp.sum(e * d, axis=-1)                       # (BB, HW)
    # In-kernel transpose to lane-dense-HW layout (XLU slot; free-ish here).
    e_t = jnp.transpose(e, (0, 2, 1))                   # (BB, C, HW)
    # opt[b, c, hw] = eopt[b, hw, c] * att[b, hw]       (outer-product gating)
    x = e_t * att[:, None, :]                           # (BB, C, HW)
    # Fovea: mask = softmax(x * self.smooth) with self.smooth == True (a bool!),
    # i.e. an unscaled softmax over HW (lane axis).
    m = jnp.max(x, axis=-1, keepdims=True)
    ex = jnp.exp(x - m)
    s = jnp.sum(ex, axis=-1, keepdims=True)
    inv = pl.reciprocal(s, approx=False)                # exact: s is only (BB, C, 1)
    opt_feat = ex * inv * x + x                         # stmf(optfa) + optfa
    # Fused CENTER-head epilogue -> 5 channels (cuts writeback ~C/5x).
    out_ref[:, 0:1, :] = _sigmoid(jnp.mean(opt_feat, axis=1, keepdims=True))
    out_ref[:, 1:3, :] = _sigmoid(opt_feat[:, 0:2, :])
    out_ref[:, 3:5, :] = _sigmoid(opt_feat[:, 2:4, :])


def _num_tensorcores():
    """v7x (and v4/v5p megacore) expose 2 TensorCores per device; v5e/v6e have 1."""
    try:
        kind = jax.devices()[0].device_kind.lower()
    except Exception:
        return 1
    return 2 if ("v7" in kind or "v4" in kind or "v5p" in kind) else 1


def _pick_block_b(B, *, num_tc, target=8):
    if B <= 1:
        return 1
    if num_tc > 1:
        # Give each TensorCore at least 2 pipeline steps when B allows, so the
        # BlockSpec double-buffering has a steady state on both cores.
        min_steps = min(B, 2 * num_tc)
        hi = max(1, min(target, B // min_steps))
    else:
        # Single TC: biggest tile wins (fewer per-step overheads, larger DMAs).
        hi = min(target, B)
    best = 1
    for dd in range(1, hi + 1):
        if B % dd == 0:
            best = dd
    return best


def forward_head_pallas(eopt, dec, *, block_b=None):
    """eopt: (B, HW, C) f32 (original layout), dec: (B, 1, C) f32 -> (B, 5, HW) f32."""
    B, HW, C = eopt.shape
    if block_b is None:
        block_b = _pick_block_b(B, num_tc=_num_tensorcores())
    assert B % block_b == 0, (B, block_b)
    grid_b = B // block_b
    return pl.pallas_call(
        _forward_head_kernel,
        out_shape=jax.ShapeDtypeStruct((B, 5, HW), jnp.float32),
        grid_spec=pltpu.PrefetchScalarGridSpec(
            num_scalar_prefetch=0,
            grid=(grid_b,),
            in_specs=[
                pl.BlockSpec((block_b, HW, C), lambda b: (b, 0, 0)),
                pl.BlockSpec((block_b, 1, C), lambda b: (b, 0, 0)),
            ],
            out_specs=pl.BlockSpec((block_b, 5, HW), lambda b: (b, 0, 0)),
        ),
        compiler_params=pltpu.CompilerParams(
            dimension_semantics=("parallel",),
            # Production scale (C=512, BB=8, HW=256 f32): ~8 MiB double-buffered
            # input + ~12 MiB live full-tile temporaries + tiny dec / 5-channel
            # output ≈ 24 MiB. 48 MiB leaves headroom and fits every generation
            # (64 MiB/TC physical on v7x, 128 MiB on v5e/v6e).
            vmem_limit_bytes=48 * 1024 * 1024,
        ),
    )(eopt, dec)


def forward_head_ref(eopt, dec):
    """Pure-JAX reference mirroring the PyTorch ops + the stand-in CENTER maps.
    eopt: (B, HW, C), dec: (B, 1, C) -> (B, 5, HW)."""
    B, HW, C = eopt.shape
    att = jnp.sum(eopt * dec, axis=-1, keepdims=True)       # (B, HW, 1) == matmul
    opt = eopt[..., None] * att[..., None, :]                # (B, HW, C, 1)
    opt = jnp.transpose(opt, (0, 3, 2, 1))                   # (B, 1, C, HW)
    x = opt.reshape(B, C, HW)
    mask = jax.nn.softmax(x, axis=-1)
    opt_feat = mask * x + x
    score = jax.nn.sigmoid(jnp.mean(opt_feat, axis=1, keepdims=True))
    size = jax.nn.sigmoid(opt_feat[:, 0:2])
    offset = jax.nn.sigmoid(opt_feat[:, 2:4])
    return jnp.concatenate([score, size, offset], axis=1)    # (B, 5, HW)


# --------------------------------------------------------------------------- #
# SSTTrack wrapper
# --------------------------------------------------------------------------- #
class SSTTrackPallas:
    def __init__(self, key, c_in=4, embed=C_EMBED, feat_sz=FEAT_SZ,
                 head_type="CENTER", aux_loss=False):
        k1, k2, k3 = jax.random.split(key, 3)
        self.embed = embed
        self.feat_sz_s = int(feat_sz)
        self.feat_len_s = int(feat_sz ** 2)
        self.head_type = head_type
        self.aux_loss = aux_loss
        # TODO(synk): backbone / transformer_dec / position_encoding / box_head
        # are constructor-injected modules not defined in the reference file;
        # deterministic linear stand-ins are used for them below.
        self.w_patch = 0.02 * jax.random.normal(k1, (c_in, embed), jnp.float32)
        self.w_dec = 0.02 * jax.random.normal(k2, (embed, embed), jnp.float32)
        self.b_dec = jnp.zeros((embed,), jnp.float32)
        # nn.Embedding(num_embeddings=1, embedding_dim=C).weight
        self.query_embed = 0.02 * jax.random.normal(k3, (1, embed), jnp.float32)

    # ---- stand-in sub-modules ---------------------------------------------
    def _backbone(self, z, x):
        def tokens(t):  # NCHW -> (B, H*W, C_embed)
            B, Cin, H, W = t.shape
            return jnp.transpose(t.reshape(B, Cin, H * W), (0, 2, 1)) @ self.w_patch
        feat = jnp.concatenate([tokens(z), tokens(x)], axis=1)   # (B, Lz+Lx, C)
        return feat, {}, None, None

    def _position_encoding(self, n):
        # TODO(synk): real sine positional-encoding module not provided.
        return jnp.zeros((1, 1, self.embed), jnp.float32)

    def _transformer_dec(self, inp_LBC, tgt, feat_len_s, pos_embed, query_embeding):
        tgt_q, tgt_kv = tgt
        feat = inp_LBC[-feat_len_s:]                          # (HW, 1, C)
        summary = jnp.mean(feat, axis=0, keepdims=True)       # (1, 1, C)
        ctx = jnp.mean(tgt_kv, axis=0, keepdims=True)         # (1, 1, C)
        out0 = jnp.tanh(
            (summary + ctx + pos_embed + query_embeding) @ self.w_dec + self.b_dec
        )                                                     # (1, 1, C)
        return [out0]

    def _bbox_from_maps(self, score_map, size_map, offset_map):
        # TODO(synk): real CenterPredictor conv tower not provided; this mirrors
        # the cal_bbox-style argmax + gather on the stand-in maps.
        B, _, H, W = score_map.shape
        idx = jnp.argmax(score_map.reshape(B, -1), axis=1)
        idx_y = (idx // W).astype(jnp.float32)
        idx_x = (idx % W).astype(jnp.float32)
        size = size_map.reshape(B, 2, H * W)[jnp.arange(B), :, idx]      # (B, 2)
        offset = offset_map.reshape(B, 2, H * W)[jnp.arange(B), :, idx]  # (B, 2)
        cx = (idx_x + offset[:, 0]) / W
        cy = (idx_y + offset[:, 1]) / H
        return jnp.stack([cx, cy, size[:, 0], size[:, 1]], axis=1)       # (B, 4)

    # ---- forward_head -------------------------------------------------------
    def forward_head(self, cat_feature, out_dec):
        # TODO(synk): fold this slice into the kernel via a pl.Element token
        # offset in the eopt index_map so XLA does not materialize the copy.
        eopt = cat_feature[:, -self.feat_len_s:]              # (B, HW, C)
        B = eopt.shape[0]
        # dec == out_dec.transpose(0, 1) in the PyTorch code; lane-dense (B, 1, C).
        dec = jnp.transpose(out_dec, (1, 0, 2))               # (B, 1, C)
        maps = forward_head_pallas(eopt, dec)                 # (B, 5, HW)  <- Pallas
        H = W = self.feat_sz_s
        score_map = maps[:, 0:1].reshape(B, 1, H, W)
        size_map = maps[:, 1:3].reshape(B, 2, H, W)
        offset_map = maps[:, 3:5].reshape(B, 2, H, W)
        bbox = self._bbox_from_maps(score_map, size_map, offset_map)
        bs, Nq = B, 1
        if self.head_type == "CENTER":
            return {
                "pred_boxes": bbox.reshape(bs, Nq, 4),
                "score_map": score_map,
                "size_map": size_map,
                "offset_map": offset_map,
            }
        raise NotImplementedError(self.head_type)

    # ---- forward ------------------------------------------------------------
    def forward(self, template, search, training=True, tgt_pre=None):
        b0, num_search = template[0].shape[0], len(search)
        if training:
            tem = jnp.tile(template[0], (num_search, 1, 1, 1))
            sea = jnp.concatenate(search, axis=0)
        else:
            tem, sea = template[0], search[0]
        x, aux_dict, cg_res, orderY = self._backbone(tem, sea)
        input_dec = x
        B_total = x.shape[0]
        xdecs = []
        batches = [[] for _ in range(b0)]
        for m in range(B_total):
            batches[m % b0].append(input_dec[m][None])        # (1, L, C)
        query_embeding = self.query_embed[:, None, :]         # (1, 1, C)
        for k, batch in enumerate(batches):
            if len(batch) == 0:
                continue
            tgt_all = [jnp.zeros_like(query_embeding) for _ in range(num_search)]
            for j, inp in enumerate(batch):
                pos_embed = self._position_encoding(1)
                tgt_q = tgt_all[j]
                tgt_kv = jnp.concatenate(tgt_all[: j + 1], axis=0)
                tgt_out = self._transformer_dec(
                    jnp.transpose(inp, (1, 0, 2)), [tgt_q, tgt_kv],
                    self.feat_len_s, pos_embed, query_embeding)
                xdecs.append(tgt_out[0])
                tgt_all[j] = tgt_out[0]
        batch0 = [xdecs[i + j * num_search] for j in range(b0) for i in range(num_search)]
        flast = x
        xdec = jnp.concatenate(batch0, axis=1)                # (1, B_total, C)
        out = self.forward_head(flast, xdec)
        out.update(aux_dict)
        out["tgt"] = tgt_pre
        out["cg_res"] = cg_res
        out["bs_order"] = orderY
        return out


# --------------------------------------------------------------------------- #
if __name__ == "__main__":
    key = jax.random.PRNGKey(0)
    k_model, k_t, k_s0, k_s1 = jax.random.split(key, 4)

    b0, num_search, c_in = 2, 2, 4
    template = [jax.random.normal(k_t, (b0, c_in, 8, 8), jnp.float32)]
    search = [
        jax.random.normal(k_s0, (b0, c_in, FEAT_SZ, FEAT_SZ), jnp.float32),
        jax.random.normal(k_s1, (b0, c_in, FEAT_SZ, FEAT_SZ), jnp.float32),
    ]

    model = SSTTrackPallas(k_model, c_in=c_in)
    out = model.forward(template, search, training=True, tgt_pre=None)
    jax.block_until_ready(out["pred_boxes"])
    jax.block_until_ready(out["score_map"])

    # Verify the Pallas hot path (fused head) against a pure-JAX reference
    # working from the original (B, HW, C) / (B, 1, C) layouts.
    B_total = b0 * num_search
    k_e, k_d = jax.random.split(jax.random.PRNGKey(1))
    eopt_in = jax.random.normal(k_e, (B_total, FEAT_LEN, C_EMBED), jnp.float32)
    dec_in = jax.random.normal(k_d, (B_total, 1, C_EMBED), jnp.float32)
    got = jax.block_until_ready(forward_head_pallas(eopt_in, dec_in))
    want = forward_head_ref(eopt_in, dec_in)
    assert got.shape == (B_total, 5, FEAT_LEN)
    # Exact reciprocal in-kernel; remaining delta is f32 reduction-order noise
    # amplified by exp, so a 1e-3-class tolerance is appropriate.
    assert jnp.allclose(got, want, atol=2e-3, rtol=2e-3), "pallas kernel mismatch"

    assert out["pred_boxes"].shape == (B_total, 1, 4)
    assert out["score_map"].shape == (B_total, 1, FEAT_SZ, FEAT_SZ)
    assert out["size_map"].shape == (B_total, 2, FEAT_SZ, FEAT_SZ)
    assert out["offset_map"].shape == (B_total, 2, FEAT_SZ, FEAT_SZ)
    print("KERNEL_OK")
</pallas_src>

<mosaic_0001>
module attributes {stable_mosaic.version = 11 : i64} {
  func.func @_forward_head_kernel(%arg0: i32, %arg1: memref<4x256x128xf32, #tpu.memory_space<vmem>>, %arg2: memref<4x1x128xf32, #tpu.memory_space<vmem>>, %arg3: memref<4x5x256xf32, #tpu.memory_space<vmem>>) attributes {dimension_semantics = [#tpu.dimension_semantics<parallel>], iteration_bounds = array<i64: 1>, scalar_prefetch = 0 : i64, scratch_operands = 0 : i64, tpu.core_type = #tpu.core_type<tc>, window_params = [{transform_indices = @transform_0, window_bounds = array<i64: 4, 256, 128>}, {transform_indices = @transform_1, window_bounds = array<i64: 4, 1, 128>}, {transform_indices = @transform_2, window_bounds = array<i64: 4, 5, 256>}]} {
    %c0 = arith.constant 0 : index
    %c0_0 = arith.constant 0 : index
    %c0_1 = arith.constant 0 : index
    %0 = vector.load %arg1[%c0, %c0_0, %c0_1] : memref<4x256x128xf32, #tpu.memory_space<vmem>>, vector<4x256x128xf32>
    %c0_2 = arith.constant 0 : index
    %c0_3 = arith.constant 0 : index
    %c0_4 = arith.constant 0 : index
    %1 = vector.load %arg2[%c0_2, %c0_3, %c0_4] : memref<4x1x128xf32, #tpu.memory_space<vmem>>, vector<4x1x128xf32>
    %2 = vector.broadcast %1 : vector<4x1x128xf32> to vector<4x256x128xf32>
    %3 = arith.mulf %0, %2 : vector<4x256x128xf32>
    %cst = arith.constant dense<0.000000e+00> : vector<4x256xf32>
    %4 = vector.multi_reduction <add>, %3, %cst [2] : vector<4x256x128xf32> to vector<4x256xf32>
    %5 = tpu.transpose %0, [0, 2, 1] : vector<4x256x128xf32> -> vector<4x128x256xf32>
    %6 = vector.shape_cast %4 : vector<4x256xf32> to vector<4x1x256xf32>
    %7 = vector.broadcast %6 : vector<4x1x256xf32> to vector<4x128x256xf32>
    %8 = arith.mulf %5, %7 : vector<4x128x256xf32>
    %cst_5 = arith.constant dense<0xFF800000> : vector<4x128xf32>
    %9 = vector.multi_reduction <maximumf>, %8, %cst_5 [2] : vector<4x128x256xf32> to vector<4x128xf32>
    %10 = vector.shape_cast %9 : vector<4x128xf32> to vector<4x128x1xf32>
    %11 = vector.broadcast %10 : vector<4x128x1xf32> to vector<4x128x256xf32>
    %12 = arith.subf %8, %11 : vector<4x128x256xf32>
    %13 = math.exp %12 : vector<4x128x256xf32>
    %cst_6 = arith.constant dense<0.000000e+00> : vector<4x128xf32>
    %14 = vector.multi_reduction <add>, %13, %cst_6 [2] : vector<4x128x256xf32> to vector<4x128xf32>
    %15 = vector.shape_cast %14 : vector<4x128xf32> to vector<4x128x1xf32>
    %16 = tpu.reciprocal %15 : vector<4x128x1xf32> -> vector<4x128x1xf32>
    %17 = vector.broadcast %16 : vector<4x128x1xf32> to vector<4x128x256xf32>
    %18 = arith.mulf %13, %17 : vector<4x128x256xf32>
    %19 = arith.mulf %18, %8 : vector<4x128x256xf32>
    %20 = arith.addf %19, %8 : vector<4x128x256xf32>
    %cst_7 = arith.constant dense<0.000000e+00> : vector<4x256xf32>
    %21 = vector.multi_reduction <add>, %20, %cst_7 [1] : vector<4x128x256xf32> to vector<4x256xf32>
    %22 = vector.shape_cast %21 : vector<4x256xf32> to vector<4x1x256xf32>
    %cst_8 = arith.constant 1.280000e+02 : f32
    %23 = vector.broadcast %cst_8 : f32 to vector<4x1x256xf32>
    %24 = arith.divf %22, %23 : vector<4x1x256xf32>
    %cst_9 = arith.constant 0.000000e+00 : f32
    %25 = vector.broadcast %cst_9 : f32 to vector<4x1x256xf32>
    %26 = arith.subf %25, %24 : vector<4x1x256xf32>
    %27 = math.exp %26 : vector<4x1x256xf32>
    %cst_10 = arith.constant 1.000000e+00 : f32
    %28 = vector.broadcast %cst_10 : f32 to vector<4x1x256xf32>
    %29 = arith.addf %28, %27 : vector<4x1x256xf32>
    %cst_11 = arith.constant 1.000000e+00 : f32
    %30 = vector.broadcast %cst_11 : f32 to vector<4x1x256xf32>
    %31 = arith.divf %30, %29 : vector<4x1x256xf32>
    %c0_12 = arith.constant 0 : index
    %c0_13 = arith.constant 0 : index
    %c0_14 = arith.constant 0 : index
    %32 = vector.load %arg3[%c0_12, %c0_13, %c0_14] : memref<4x5x256xf32, #tpu.memory_space<vmem>>, vector<4x1x256xf32>
    tpu.vector_store %arg3[%c0_12, %c0_13, %c0_14], %31 {strides = array<i32>} : memref<4x5x256xf32, #tpu.memory_space<vmem>>, vector<4x1x256xf32>,
    %33 = vector.extract_strided_slice %20 {offsets = [0, 0, 0], sizes = [4, 2, 256], strides = [1, 1, 1]} : vector<4x128x256xf32> to vector<4x2x256xf32>
    %cst_15 = arith.constant 0.000000e+00 : f32
    %34 = vector.broadcast %cst_15 : f32 to vector<4x2x256xf32>
    %35 = arith.subf %34, %33 : vector<4x2x256xf32>
    %36 = math.exp %35 : vector<4x2x256xf32>
    %cst_16 = arith.constant 1.000000e+00 : f32
    %37 = vector.broadcast %cst_16 : f32 to vector<4x2x256xf32>
    %38 = arith.addf %37, %36 : vector<4x2x256xf32>
    %cst_17 = arith.constant 1.000000e+00 : f32
    %39 = vector.broadcast %cst_17 : f32 to vector<4x2x256xf32>
    %40 = arith.divf %39, %38 : vector<4x2x256xf32>
    %c0_18 = arith.constant 0 : index
    %c1 = arith.constant 1 : index
    %c0_19 = arith.constant 0 : index
    %41 = vector.load %arg3[%c0_18, %c1, %c0_19] : memref<4x5x256xf32, #tpu.memory_space<vmem>>, vector<4x2x256xf32>
    tpu.vector_store %arg3[%c0_18, %c1, %c0_19], %40 {strides = array<i32>} : memref<4x5x256xf32, #tpu.memory_space<vmem>>, vector<4x2x256xf32>,
    %42 = vector.extract_strided_slice %20 {offsets = [0, 2, 0], sizes = [4, 2, 256], strides = [1, 1, 1]} : vector<4x128x256xf32> to vector<4x2x256xf32>
    %cst_20 = arith.constant 0.000000e+00 : f32
    %43 = vector.broadcast %cst_20 : f32 to vector<4x2x256xf32>
    %44 = arith.subf %43, %42 : vector<4x2x256xf32>
    %45 = math.exp %44 : vector<4x2x256xf32>
    %cst_21 = arith.constant 1.000000e+00 : f32
    %46 = vector.broadcast %cst_21 : f32 to vector<4x2x256xf32>
    %47 = arith.addf %46, %45 : vector<4x2x256xf32>
    %cst_22 = arith.constant 1.000000e+00 : f32
    %48 = vector.broadcast %cst_22 : f32 to vector<4x2x256xf32>
    %49 = arith.divf %48, %47 : vector<4x2x256xf32>
    %c0_23 = arith.constant 0 : index
    %c3 = arith.constant 3 : index
    %c0_24 = arith.constant 0 : index
    %50 = vector.load %arg3[%c0_23, %c3, %c0_24] : memref<4x5x256xf32, #tpu.memory_space<vmem>>, vector<4x2x256xf32>
    tpu.vector_store %arg3[%c0_23, %c3, %c0_24], %49 {strides = array<i32>} : memref<4x5x256xf32, #tpu.memory_space<vmem>>, vector<4x2x256xf32>,
    return
  }
  func.func @transform_0(%arg0: i32) -> (i32, i32, i32) {
    %c0_i32 = arith.constant 0 : i32
    %c0_i32_0 = arith.constant 0 : i32
    %c0_i32_1 = arith.constant 0 : i32
    return %arg0, %c0_i32, %c0_i32_0 : i32, i32, i32
  }
  func.func @transform_1(%arg0: i32) -> (i32, i32, i32) {
    %c0_i32 = arith.constant 0 : i32
    %c0_i32_0 = arith.constant 0 : i32
    %c0_i32_1 = arith.constant 0 : i32
    return %arg0, %c0_i32, %c0_i32_0 : i32, i32, i32
  }
  func.func @transform_2(%arg0: i32) -> (i32, i32, i32) {
    %c0_i32 = arith.constant 0 : i32
    %c0_i32_0 = arith.constant 0 : i32
    %c0_i32_1 = arith.constant 0 : i32
    return %arg0, %c0_i32, %c0_i32_0 : i32, i32, i32
  }
}

</mosaic_0001>

<bundles_post_ra>
// kernel: tpu_custom_call.1
= control target key start
LH: loop header
LB: loop body
LE: loop exit
PB: predicated region body
PF: predicated region fallthrough
CT: control target
= control target key end

     0   :  { %7 = vsyncpa [#allocation3], 0  ;;  %s7082_s0 = inlined_call_operand.hbm [shape: f32[4,256,128], index: 0, kind: input, shape index: {}]   ;;  %s7083_s1 = inlined_call_operand.hbm [shape: f32[4,1,128], index: 1, kind: input, shape index: {}]   ;;  %s7084_s2 = inlined_call_operand.vmem [shape: f32[4,5,256], index: 2, kind: output, shape index: {}]  }
   0x1   :  { %8 = vsyncpa [#allocation5], 0  ;;  %s3953_s9 = smov [#allocation2]  }
   0x2   :  { %s14_s10 = sshll.u32 %s3953_s9, 4  ;;  %s15_s10 = int_to_ptr.vmem [resolvable:$true] %s14_s10 }
   0x3   :  { %s3917_s11 = scalar_lea.vmem %s15_s10, 16384  ;;  %p3922_p1 = scmp.lt.s32.totalorder %s15_s10, %s15_s10 }
   0x4   :  { %p3918_p0 = scmp.ne.s32.totalorder %s15_s10, %s3917_s11  ;;  %p3923_p2 = scmp.lt.s32.totalorder %s3917_s11, %s3917_s11 }
   0x6   :  { %p3924_p3 = por %p3923_p2, %p3922_p1 }
   0x8   :  { %p3925_p4 = pnand %p3924_p3, %p3918_p0 }
   0xa   :  { %3928 = shalt.err (!%p3925_p4)
}
   0xb   :  { %s3954_s12 = smov 128   ;;  %s3955_s13 = smov 8  }
   0xc   :  { %20 = dma.hbm_to_vmem [thread:$0]  %s7082_s0, 16384, %s15_s10, [#allocation3], %s3954_s12, %s3954_s12, %s3955_s13  }
   0xd   :  { %s3956_s16 = smov [#allocation4]  }
   0xe   :  { %s26_s17 = sshll.u32 %s3956_s16, 4  ;;  %s27_s17 = int_to_ptr.vmem [resolvable:$true] %s26_s17 }
   0xf   :  { %s3937_s18 = scalar_lea.vmem %s27_s17, 64  ;;  %p3942_p6 = scmp.lt.s32.totalorder %s27_s17, %s27_s17 }
  0x10   :  { %p3938_p5 = scmp.ne.s32.totalorder %s27_s17, %s3937_s18  ;;  %p3943_p7 = scmp.lt.s32.totalorder %s3937_s18, %s3937_s18 }
  0x12   :  { %p3944_p8 = por %p3943_p7, %p3942_p6 }
  0x14   :  { %p3945_p9 = pnand %p3944_p8, %p3938_p5 }
  0x16   :  { %3948 = shalt.err (!%p3945_p9)
}
  0x17   :  { %s3957_s19 = smov 16   ;;  %s3958_s20 = smov 1  }
  0x18   :  { %32 = dma.hbm_to_vmem [thread:$0]  %s7083_s1, 64, %s27_s17, [#allocation5], %s3957_s19, %s3957_s19, %s3958_s20  }
  0x19   :  { %3949 = dma.done.wait [#allocation3], 16384  }
  0x1a   :  { %3950 = vsyncadd [#allocation3], 4294950912 }
  0x1b   :  { %3951 = dma.done.wait [#allocation5], 64  }
  0x1c   :  { %3952 = vsyncadd [#allocation5], 4294967232  ;;  %v3981_v0 = vld [vmem:[#allocation2 + $0x80] sm:$0xff]  ;;  %v3987_v2 = vld [vmem:[#allocation2 + $0x88] sm:$0xff]  ;;  %vm974_vm0 = vcmask 130112   ;;  %vm981_vm1 = vcmask 195712  }
  0x1d   :  { %v3983_v1 = vld [vmem:[#allocation2] sm:$0xff]  ;;  %611 = vxpose.xlu1.b32.start [1/16] %v3981_v0, 128  ;;  %v3989_v3 = vld [vmem:[#allocation2 + $0x8] sm:$0xff]  ;;  %v3993_v4 = vld [vmem:[#allocation2 + $0x90] sm:$0xff]  ;;  %vm988_vm2 = vcmask 261312   ;;  %vm995_vm3 = vcmask 326912   ;;  %vm1002_vm4 = vcmask 392512  }
  0x1e   :  { %579 = vxpose.xlu0.b32.start [1/16] %v3983_v1, 128  ;;  %v3995_v5 = vld [vmem:[#allocation2 + $0x10] sm:$0xff]  ;;  %v3997_v6 = vld [vmem:[#allocation4] ss:$0 sm:$0xff]  ;;  %v4001_v8 = vld [vmem:[#allocation2 + $0x98] sm:$0xff]  ;;  %vm1009_vm5 = vcmask 458112   ;;  %vm1016_vm6 = vcmask 523712  }
  0x1f   :  { %v69_v7 = vld [vmem:[#allocation2 + $0xf0] sm:$0xff]  ;;  %v4003_v9 = vld [vmem:[#allocation2 + $0x18] sm:$0xff]  ;;  %v4010_v11 = vld [vmem:[#allocation2 + $0xa0] sm:$0xff]  ;;  %vm1023_vm7 = vcmask 589312   ;;  %vm1030_vm8 = vcmask 654912   ;;  %vm1037_vm9 = vcmask 720512  }
  0x20   :  { %v4006_v10 = vmul.f32 %v3997_v6, %v69_v7  ;;  %v4012_v12 = vld [vmem:[#allocation2 + $0x20] sm:$0xff]  ;;  %v4016_v13 = vld [vmem:[#allocation2 + $0xa8] sm:$0xff]  ;;  %v4022_v15 = vld [vmem:[#allocation2 + $0xb0] sm:$0xff]  ;;  %vm1044_vm10 = vcmask 786112   ;;  %vm1051_vm11 = vcmask 851712   ;;  %vm1058_vm12 = vcmask 917312  }
  0x21   :  { %612 = vxpose.xlu1.b32.cont [2/16] %v3987_v2, 128  ;;  %v4018_v14 = vld [vmem:[#allocation2 + $0x28] sm:$0xff]  ;;  %v4024_v16 = vld [vmem:[#allocation2 + $0x30] sm:$0xff]  ;;  %v4028_v17 = vld [vmem:[#allocation2 + $0xb8] sm:$0xff]  ;;  %vm1065_vm13 = vcmask 982912   ;;  %vm1072_vm14 = vcmask 1048512  }
  0x22   :  { %580 = vxpose.xlu0.b32.cont [2/16] %v3989_v3, 128  ;;  %v4030_v18 = vld [vmem:[#allocation2 + $0x38] sm:$0xff]  ;;  %v4034_v19 = vld [vmem:[#allocation2 + $0xc0] sm:$0xff]  ;;  %v4040_v21 = vld [vmem:[#allocation2 + $0xc8] sm:$0xff] }
  0x23   :  { %v4036_v20 = vld [vmem:[#allocation2 + $0x40] sm:$0xff]  ;;  %v4042_v22 = vld [vmem:[#allocation2 + $0x48] sm:$0xff]  ;;  %v4046_v23 = vld [vmem:[#allocation2 + $0xd0] sm:$0xff] }
  0x24   :  { %v4048_v24 = vld [vmem:[#allocation2 + $0x50] sm:$0xff]  ;;  %v4052_v25 = vld [vmem:[#allocation2 + $0xd8] sm:$0xff]  ;;  %v4058_v27 = vld [vmem:[#allocation2 + $0xe0] sm:$0xff] }
  0x25   :  { %613 = vxpose.xlu1.b32.cont [3/16] %v3993_v4, 128  ;;  %v4054_v26 = vld [vmem:[#allocation2 + $0x58] sm:$0xff]  ;;  %v4060_v28 = vld [vmem:[#allocation2 + $0x60] sm:$0xff]  ;;  %v4064_v29 = vld [vmem:[#allocation2 + $0xe8] sm:$0xff] }
  0x26   :  { %581 = vxpose.xlu0.b32.cont [3/16] %v3995_v5, 128  ;;  %v4066_v30 = vld [vmem:[#allocation2 + $0x68] sm:$0xff]  ;;  %v4070_v31 = vld [vmem:[#allocation2 + $0x70] sm:$0xff]  ;;  %v4073_v32 = vld [vmem:[#allocation2 + $0xf8] sm:$0xff] }
  0x27   :  { %v4075_v33 = vld [vmem:[#allocation2 + $0x78] sm:$0xff]  ;;  %v4079_v34 = vld [vmem:[#allocation2 + $0x180] sm:$0xff]  ;;  %v4085_v36 = vld [vmem:[#allocation2 + $0x188] sm:$0xff] }
  0x28   :  { %v4081_v35 = vld [vmem:[#allocation2 + $0x100] sm:$0xff]  ;;  %v4087_v37 = vld [vmem:[#allocation2 + $0x108] sm:$0xff]  ;;  %v4091_v38 = vld [vmem:[#allocation2 + $0x190] sm:$0xff] }
  0x29   :  { %614 = vxpose.xlu1.b32.cont [4/16] %v4001_v8, 128  ;;  %7497 = vst [vmem:[#allocation8_spill] sm:$0xff] %v4091_v38  ;;  %v4093_v39 = vld [vmem:[#allocation2 + $0x110] sm:$0xff]  ;;  %v4097_v40 = vld [vmem:[#allocation2 + $0x198] sm:$0xff]  ;;  %v4103_v42 = vld [vmem:[#allocation2 + $0x1a0] sm:$0xff] }
  0x2a   :  { %582 = vxpose.xlu0.b32.cont [4/16] %v4003_v9, 128  ;;  %v4099_v41 = vld [vmem:[#allocation2 + $0x118] sm:$0xff]  ;;  %7498 = vst [vmem:[#allocation9_spill] sm:$0xff] %v4103_v42  ;;  %v4105_v43 = vld [vmem:[#allocation2 + $0x120] sm:$0xff]  ;;  %v4109_v44 = vld [vmem:[#allocation2 + $0x1a8] sm:$0xff] }
  0x2b   :  { %v4111_v45 = vld [vmem:[#allocation2 + $0x128] sm:$0xff]  ;;  %v4115_v46 = vld [vmem:[#allocation2 + $0x1b0] sm:$0xff]  ;;  %v4121_v48 = vld [vmem:[#allocation2 + $0x1b8] sm:$0xff] }
  0x2c   :  { %7499 = vst [vmem:[#allocation10_spill] sm:$0xff] %v4115_v46  ;;  %v4117_v47 = vld [vmem:[#allocation2 + $0x130] sm:$0xff]  ;;  %7500 = vst [vmem:[#allocation11_spill] sm:$0xff] %v4121_v48  ;;  %v4123_v49 = vld [vmem:[#allocation2 + $0x138] sm:$0xff] }
  0x2d   :  { %615 = vxpose.xlu1.b32.cont [5/16] %v4010_v11, 128  ;;  %v4127_v50 = vld [vmem:[#allocation2 + $0x1c0] sm:$0xff]  ;;  %v4133_v52 = vld [vmem:[#allocation2 + $0x1c8] sm:$0xff]  ;;  %v4139_v54 = vld [vmem:[#allocation2 + $0x1d0] sm:$0xff] }
  0x2e   :  { %583 = vxpose.xlu0.b32.cont [5/16] %v4012_v12, 128  ;;  %7501 = vst [vmem:[#allocation12_spill] sm:$0xff] %v4127_v50  ;;  %v4129_v51 = vld [vmem:[#allocation2 + $0x140] sm:$0xff]  ;;  %7502 = vst [vmem:[#allocation13_spill] sm:$0xff] %v4133_v52  ;;  %v4135_v53 = vld [vmem:[#allocation2 + $0x148] sm:$0xff] }
  0x2f   :  { %7503 = vst [vmem:[#allocation14_spill] sm:$0xff] %v4139_v54  ;;  %v4141_v55 = vld [vmem:[#allocation2 + $0x150] sm:$0xff]  ;;  %v4145_v56 = vld [vmem:[#allocation2 + $0x1d8] sm:$0xff]  ;;  %v4151_v58 = vld [vmem:[#allocation2 + $0x1e0] sm:$0xff] }
  0x30   :  { %7504 = vst [vmem:[#allocation15_spill] sm:$0xff] %v4145_v56  ;;  %v4147_v57 = vld [vmem:[#allocation2 + $0x158] sm:$0xff]  ;;  %7505 = vst [vmem:[#allocation16_spill] sm:$0xff] %v4151_v58  ;;  %v4153_v59 = vld [vmem:[#allocation2 + $0x160] sm:$0xff] }
  0x31   :  { %616 = vxpose.xlu1.b32.cont [6/16] %v4016_v13, 128  ;;  %v4157_v60 = vld [vmem:[#allocation2 + $0x1e8] sm:$0xff]  ;;  %v4163_v62 = vld [vmem:[#allocation2 + $0x1f0] sm:$0xff] }
  0x32   :  { %584 = vxpose.xlu0.b32.cont [6/16] %v4018_v14, 128  ;;  %7506 = vst [vmem:[#allocation17_spill] sm:$0xff] %v4157_v60  ;;  %v4159_v61 = vld [vmem:[#allocation2 + $0x168] sm:$0xff]  ;;  %7507 = vst [vmem:[#allocation18_spill] sm:$0xff] %v4163_v62  ;;  %v4165_v63 = vld [vmem:[#allocation2 + $0x170] sm:$0xff] }
  0x35   :  { %617 = vxpose.xlu1.b32.cont [7/16] %v4022_v15, 128 }
  0x36   :  { %585 = vxpose.xlu0.b32.cont [7/16] %v4024_v16, 128 }
  0x39   :  { %618 = vxpose.xlu1.b32.cont [8/16] %v4028_v17, 128 }
  0x3a   :  { %586 = vxpose.xlu0.b32.cont [8/16] %v4030_v18, 128 }
  0x3d   :  { %619 = vxpose.xlu1.b32.cont [9/16] %v4034_v19, 128 }
  0x3e   :  { %587 = vxpose.xlu0.b32.cont [9/16] %v4036_v20, 128 }
  0x41   :  { %620 = vxpose.xlu1.b32.cont [10/16] %v4040_v21, 128 }
  0x42   :  { %588 = vxpose.xlu0.b32.cont [10/16] %v4042_v22, 128 }
  0x45   :  { %621 = vxpose.xlu1.b32.cont [11/16] %v4046_v23, 128 }
  0x46   :  { %589 = vxpose.xlu0.b32.cont [11/16] %v4048_v24, 128 }
  0x49   :  { %622 = vxpose.xlu1.b32.cont [12/16] %v4052_v25, 128 }
  0x4a   :  { %590 = vxpose.xlu0.b32.cont [12/16] %v4054_v26, 128 }
  0x4d   :  { %623 = vxpose.xlu1.b32.cont [13/16] %v4058_v27, 128 }
  0x4e   :  { %591 = vxpose.xlu0.b32.cont [13/16] %v4060_v28, 128 }
  0x51   :  { %624 = vxpose.xlu1.b32.cont [14/16] %v4064_v29, 128 }
  0x52   :  { %592 = vxpose.xlu0.b32.cont [14/16] %v4066_v30, 128 }
  0x55   :  { %625 = vxpose.xlu1.b32.cont [15/16] %v69_v7, 128  ;;  %v4169_v7 = vld [vmem:[#allocation2 + $0x1f8] sm:$0xff] }
  0x56   :  { %593 = vxpose.xlu0.b32.cont [15/16] %v4070_v31, 128  ;;  %7508 = vst [vmem:[#allocation19_spill] sm:$0xff] %v4169_v7 }
  0x59   :  { %626 = vxpose.xlu1.b32.end [16/16] %v4073_v32, 128 }
  0x5a   :  { %594 = vxpose.xlu0.b32.end [16/16] %v4075_v33, 128 }
  0x5d   :  { %675 = vxpose.xlu1.b32.start [1/16] %v4079_v34, 128 }
  0x5e   :  { %643 = vxpose.xlu0.b32.start [1/16] %v4081_v35, 128 }
  0x61   :  { %676 = vxpose.xlu1.b32.cont [2/16] %v4085_v36, 128 }
  0x62   :  { %644 = vxpose.xlu0.b32.cont [2/16] %v4087_v37, 128 }
  0x65   :  { %677 = vxpose.xlu1.b32.cont [3/16] %v4091_v38, 128 }
  0x66   :  { %645 = vxpose.xlu0.b32.cont [3/16] %v4093_v39, 128 }
  0x69   :  { %678 = vxpose.xlu1.b32.cont [4/16] %v4097_v40, 128 }
  0x6a   :  { %646 = vxpose.xlu0.b32.cont [4/16] %v4099_v41, 128 }
  0x6d   :  { %679 = vxpose.xlu1.b32.cont [5/16] %v4103_v42, 128  ;;  %v4199_v42 = vld [vmem:[#allocation2 + $0x290] sm:$0xff] }
  0x6e   :  { %647 = vxpose.xlu0.b32.cont [5/16] %v4105_v43, 128  ;;  %7519 = vst [vmem:[#allocation30_spill] sm:$0xff] %v4199_v42 }
  0x71   :  { %680 = vxpose.xlu1.b32.cont [6/16] %v4109_v44, 128 }
  0x72   :  { %648 = vxpose.xlu0.b32.cont [6/16] %v4111_v45, 128 }
  0x75   :  { %681 = vxpose.xlu1.b32.cont [7/16] %v4115_v46, 128 }
  0x76   :  { %649 = vxpose.xlu0.b32.cont [7/16] %v4117_v47, 128 }
  0x79   :  { %682 = vxpose.xlu1.b32.cont [8/16] %v4121_v48, 128  ;;  %v4348_v48 = vld [vmem:[#allocation2 + $0x308] sm:$0xff] }
  0x7a   :  { %650 = vxpose.xlu0.b32.cont [8/16] %v4123_v49, 128  ;;  %7579 = vst [vmem:[#allocation90_spill] sm:$0xff] %v4348_v48 }
  0x7d   :  { %683 = vxpose.xlu1.b32.cont [9/16] %v4127_v50, 128  ;;  %v4179_v50 = vld [vmem:[#allocation2 + $0x280] sm:$0xff] }
  0x7e   :  { %651 = vxpose.xlu0.b32.cont [9/16] %v4129_v51, 128  ;;  %7511 = vst [vmem:[#allocation22_spill] sm:$0xff] %v4179_v50 }
  0x81   :  { %684 = vxpose.xlu1.b32.cont [10/16] %v4133_v52, 128  ;;  %v4189_v52 = vld [vmem:[#allocation2 + $0x288] sm:$0xff] }
  0x82   :  { %652 = vxpose.xlu0.b32.cont [10/16] %v4135_v53, 128  ;;  %7515 = vst [vmem:[#allocation26_spill] sm:$0xff] %v4189_v52 }
  0x85   :  { %685 = vxpose.xlu1.b32.cont [11/16] %v4139_v54, 128 }
  0x86   :  { %653 = vxpose.xlu0.b32.cont [11/16] %v4141_v55, 128 }
  0x89   :  { %686 = vxpose.xlu1.b32.cont [12/16] %v4145_v56, 128  ;;  %v4181_v56 = vld [vmem:[#allocation2 + $0x200] sm:$0xff] }
  0x8a   :  { %654 = vxpose.xlu0.b32.cont [12/16] %v4147_v57, 128  ;;  %7512 = vst [vmem:[#allocation23_spill] sm:$0xff] %v4181_v56 }
  0x8d   :  { %687 = vxpose.xlu1.b32.cont [13/16] %v4151_v58, 128  ;;  %v4171_v58 = vld [vmem:[#allocation2 + $0x178] sm:$0xff] }
  0x8e   :  { %655 = vxpose.xlu0.b32.cont [13/16] %v4153_v59, 128 }
  0x91   :  { %688 = vxpose.xlu1.b32.cont [14/16] %v4157_v60, 128 }
  0x92   :  { %656 = vxpose.xlu0.b32.cont [14/16] %v4159_v61, 128 }
  0x95   :  { %689 = vxpose.xlu1.b32.cont [15/16] %v4163_v62, 128 }
  0x96   :  { %657 = vxpose.xlu0.b32.cont [15/16] %v4165_v63, 128 }
  0x99   :  { %690 = vxpose.xlu1.b32.end [16/16] %v4169_v7, 128  ;;  %v4175_v54 = vpop.trf.xlu1  ;;  %v4191_v7 = vld [vmem:[#allocation2 + $0x208] sm:$0xff] }
  0x9a   :  { %658 = vxpose.xlu0.b32.end [16/16] %v4171_v58, 128  ;;  %7509 = vst [vmem:[#allocation20_spill] sm:$0xff] %v4175_v54  ;;  %v4177_v60 = vpop.trf.xlu0  ;;  %7516 = vst [vmem:[#allocation27_spill] sm:$0xff] %v4191_v7 }
  0x9b   :  { %7510 = vst [vmem:[#allocation21_spill] sm:$0xff] %v4177_v60 }
  0x9d   :  { %739 = vxpose.xlu1.b32.start [1/16] %v4179_v50, 128  ;;  %v4185_v62 = vpop.trf.xlu1  ;;  %v4201_v50 = vld [vmem:[#allocation2 + $0x210] sm:$0xff] }
  0x9e   :  { %707 = vxpose.xlu0.b32.start [1/16] %v4181_v56, 128  ;;  %7513 = vst [vmem:[#allocation24_spill] sm:$0xff] %v4185_v62  ;;  %v4187_v46 = vpop.trf.xlu0  ;;  %7520 = vst [vmem:[#allocation31_spill] sm:$0xff] %v4201_v50  ;;  %v4209_v56 = vld [vmem:[#allocation2 + $0x298] sm:$0xff] }
  0x9f   :  { %7514 = vst [vmem:[#allocation25_spill] sm:$0xff] %v4187_v46  ;;  %7523 = vst [vmem:[#allocation34_spill] sm:$0xff] %v4209_v56 }
  0xa1   :  { %740 = vxpose.xlu1.b32.cont [2/16] %v4189_v52, 128  ;;  %v4195_v60 = vpop.trf.xlu1  ;;  %v4211_v52 = vld [vmem:[#allocation2 + $0x218] sm:$0xff] }
  0xa2   :  { %708 = vxpose.xlu0.b32.cont [2/16] %v4191_v7, 128  ;;  %7517 = vst [vmem:[#allocation28_spill] sm:$0xff] %v4195_v60  ;;  %v4197_v54 = vpop.trf.xlu0  ;;  %7524 = vst [vmem:[#allocation35_spill] sm:$0xff] %v4211_v52  ;;  %v4219_v7 = vld [vmem:[#allocation2 + $0x2a0] sm:$0xff] }
  0xa3   :  { %7518 = vst [vmem:[#allocation29_spill] sm:$0xff] %v4197_v54  ;;  %7527 = vst [vmem:[#allocation38_spill] sm:$0xff] %v4219_v7 }
  0xa5   :  { %741 = vxpose.xlu1.b32.cont [3/16] %v4199_v42, 128  ;;  %v4205_v46 = vpop.trf.xlu1  ;;  %v4221_v42 = vld [vmem:[#allocation2 + $0x220] sm:$0xff] }
  0xa6   :  { %709 = vxpose.xlu0.b32.cont [3/16] %v4201_v50, 128  ;;  %7521 = vst [vmem:[#allocation32_spill] sm:$0xff] %v4205_v46  ;;  %v4207_v62 = vpop.trf.xlu0  ;;  %7528 = vst [vmem:[#allocation39_spill] sm:$0xff] %v4221_v42  ;;  %v4229_v50 = vld [vmem:[#allocation2 + $0x2a8] sm:$0xff] }
  0xa7   :  { %7522 = vst [vmem:[#allocation33_spill] sm:$0xff] %v4207_v62  ;;  %7531 = vst [vmem:[#allocation42_spill] sm:$0xff] %v4229_v50 }
  0xa9   :  { %742 = vxpose.xlu1.b32.cont [4/16] %v4209_v56, 128  ;;  %v4215_v54 = vpop.trf.xlu1  ;;  %v4231_v56 = vld [vmem:[#allocation2 + $0x228] sm:$0xff] }
  0xaa   :  { %710 = vxpose.xlu0.b32.cont [4/16] %v4211_v52, 128  ;;  %7525 = vst [vmem:[#allocation36_spill] sm:$0xff] %v4215_v54  ;;  %v4217_v60 = vpop.trf.xlu0  ;;  %7532 = vst [vmem:[#allocation43_spill] sm:$0xff] %v4231_v56  ;;  %v4239_v52 = vld [vmem:[#allocation2 + $0x2b0] sm:$0xff] }
  0xab   :  { %7526 = vst [vmem:[#allocation37_spill] sm:$0xff] %v4217_v60  ;;  %7535 = vst [vmem:[#allocation46_spill] sm:$0xff] %v4239_v52 }
  0xad   :  { %743 = vxpose.xlu1.b32.cont [5/16] %v4219_v7, 128  ;;  %v4225_v62 = vpop.trf.xlu1  ;;  %v4241_v7 = vld [vmem:[#allocation2 + $0x230] sm:$0xff] }
  0xae   :  { %711 = vxpose.xlu0.b32.cont [5/16] %v4221_v42, 128  ;;  %7529 = vst [vmem:[#allocation40_spill] sm:$0xff] %v4225_v62  ;;  %v4227_v46 = vpop.trf.xlu0  ;;  %7536 = vst [vmem:[#allocation47_spill] sm:$0xff] %v4241_v7  ;;  %v4249_v42 = vld [vmem:[#allocation2 + $0x2b8] sm:$0xff] }
  0xaf   :  { %7530 = vst [vmem:[#allocation41_spill] sm:$0xff] %v4227_v46  ;;  %7539 = vst [vmem:[#allocation50_spill] sm:$0xff] %v4249_v42 }
  0xb1   :  { %744 = vxpose.xlu1.b32.cont [6/16] %v4229_v50, 128  ;;  %v4235_v60 = vpop.trf.xlu1  ;;  %v4251_v50 = vld [vmem:[#allocation2 + $0x238] sm:$0xff] }
  0xb2   :  { %712 = vxpose.xlu0.b32.cont [6/16] %v4231_v56, 128  ;;  %7533 = vst [vmem:[#allocation44_spill] sm:$0xff] %v4235_v60  ;;  %v4237_v54 = vpop.trf.xlu0  ;;  %7540 = vst [vmem:[#allocation51_spill] sm:$0xff] %v4251_v50  ;;  %v4259_v56 = vld [vmem:[#allocation2 + $0x2c0] sm:$0xff] }
  0xb3   :  { %7534 = vst [vmem:[#allocation45_spill] sm:$0xff] %v4237_v54  ;;  %7543 = vst [vmem:[#allocation54_spill] sm:$0xff] %v4259_v56 }
  0xb5   :  { %745 = vxpose.xlu1.b32.cont [7/16] %v4239_v52, 128  ;;  %v4245_v46 = vpop.trf.xlu1  ;;  %v4261_v52 = vld [vmem:[#allocation2 + $0x240] sm:$0xff] }
  0xb6   :  { %713 = vxpose.xlu0.b32.cont [7/16] %v4241_v7, 128  ;;  %7537 = vst [vmem:[#allocation48_spill] sm:$0xff] %v4245_v46  ;;  %v4247_v62 = vpop.trf.xlu0  ;;  %7544 = vst [vmem:[#allocation55_spill] sm:$0xff] %v4261_v52  ;;  %v4269_v7 = vld [vmem:[#allocation2 + $0x2c8] sm:$0xff] }
  0xb7   :  { %7538 = vst [vmem:[#allocation49_spill] sm:$0xff] %v4247_v62  ;;  %7547 = vst [vmem:[#allocation58_spill] sm:$0xff] %v4269_v7 }
  0xb9   :  { %746 = vxpose.xlu1.b32.cont [8/16] %v4249_v42, 128  ;;  %v4255_v54 = vpop.trf.xlu1  ;;  %v4271_v42 = vld [vmem:[#allocation2 + $0x248] sm:$0xff] }
  0xba   :  { %714 = vxpose.xlu0.b32.cont [8/16] %v4251_v50, 128  ;;  %7541 = vst [vmem:[#allocation52_spill] sm:$0xff] %v4255_v54  ;;  %v4257_v60 = vpop.trf.xlu0  ;;  %7548 = vst [vmem:[#allocation59_spill] sm:$0xff] %v4271_v42  ;;  %v4279_v50 = vld [vmem:[#allocation2 + $0x2d0] sm:$0xff] }
  0xbb   :  { %7542 = vst [vmem:[#allocation53_spill] sm:$0xff] %v4257_v60  ;;  %7551 = vst [vmem:[#allocation62_spill] sm:$0xff] %v4279_v50 }
  0xbd   :  { %747 = vxpose.xlu1.b32.cont [9/16] %v4259_v56, 128  ;;  %v4265_v62 = vpop.trf.xlu1  ;;  %v4281_v56 = vld [vmem:[#allocation2 + $0x250] sm:$0xff] }
  0xbe   :  { %715 = vxpose.xlu0.b32.cont [9/16] %v4261_v52, 128  ;;  %7545 = vst [vmem:[#allocation56_spill] sm:$0xff] %v4265_v62  ;;  %v4267_v46 = vpop.trf.xlu0  ;;  %7552 = vst [vmem:[#allocation63_spill] sm:$0xff] %v4281_v56  ;;  %v4289_v52 = vld [vmem:[#allocation2 + $0x2d8] sm:$0xff] }
  0xbf   :  { %7546 = vst [vmem:[#allocation57_spill] sm:$0xff] %v4267_v46  ;;  %7555 = vst [vmem:[#allocation66_spill] sm:$0xff] %v4289_v52 }
  0xc1   :  { %748 = vxpose.xlu1.b32.cont [10/16] %v4269_v7, 128  ;;  %v4275_v60 = vpop.trf.xlu1  ;;  %v4291_v7 = vld [vmem:[#allocation2 + $0x258] sm:$0xff] }
  0xc2   :  { %716 = vxpose.xlu0.b32.cont [10/16] %v4271_v42, 128  ;;  %7549 = vst [vmem:[#allocation60_spill] sm:$0xff] %v4275_v60  ;;  %v4277_v54 = vpop.trf.xlu0  ;;  %7556 = vst [vmem:[#allocation67_spill] sm:$0xff] %v4291_v7  ;;  %v4299_v42 = vld [vmem:[#allocation2 + $0x2e0] sm:$0xff] }
  0xc3   :  { %7550 = vst [vmem:[#allocation61_spill] sm:$0xff] %v4277_v54  ;;  %7559 = vst [vmem:[#allocation70_spill] sm:$0xff] %v4299_v42 }
  0xc5   :  { %749 = vxpose.xlu1.b32.cont [11/16] %v4279_v50, 128  ;;  %v4285_v46 = vpop.trf.xlu1  ;;  %v4301_v50 = vld [vmem:[#allocation2 + $0x260] sm:$0xff] }
  0xc6   :  { %717 = vxpose.xlu0.b32.cont [11/16] %v4281_v56, 128  ;;  %7553 = vst [vmem:[#allocation64_spill] sm:$0xff] %v4285_v46  ;;  %v4287_v62 = vpop.trf.xlu0  ;;  %7560 = vst [vmem:[#allocation71_spill] sm:$0xff] %v4301_v50  ;;  %v4309_v56 = vld [vmem:[#allocation2 + $0x2e8] sm:$0xff] }
  0xc7   :  { %7554 = vst [vmem:[#allocation65_spill] sm:$0xff] %v4287_v62  ;;  %7563 = vst [vmem:[#allocation74_spill] sm:$0xff] %v4309_v56 }
  0xc9   :  { %750 = vxpose.xlu1.b32.cont [12/16] %v4289_v52, 128  ;;  %v4295_v54 = vpop.trf.xlu1  ;;  %v4311_v52 = vld [vmem:[#allocation2 + $0x268] sm:$0xff] }
  0xca   :  { %718 = vxpose.xlu0.b32.cont [12/16] %v4291_v7, 128  ;;  %7557 = vst [vmem:[#allocation68_spill] sm:$0xff] %v4295_v54  ;;  %v4297_v60 = vpop.trf.xlu0  ;;  %7564 = vst [vmem:[#allocation75_spill] sm:$0xff] %v4311_v52  ;;  %v4319_v7 = vld [vmem:[#allocation2 + $0x2f0] sm:$0xff] }
  0xcb   :  { %7558 = vst [vmem:[#allocation69_spill] sm:$0xff] %v4297_v60  ;;  %7567 = vst [vmem:[#allocation78_spill] sm:$0xff] %v4319_v7 }
  0xcd   :  { %751 = vxpose.xlu1.b32.cont [13/16] %v4299_v42, 128  ;;  %v4305_v62 = vpop.trf.xlu1  ;;  %v4321_v42 = vld [vmem:[#allocation2 + $0x270] sm:$0xff] }
  0xce   :  { %719 = vxpose.xlu0.b32.cont [13/16] %v4301_v50, 128  ;;  %7561 = vst [vmem:[#allocation72_spill] sm:$0xff] %v4305_v62  ;;  %v4307_v46 = vpop.trf.xlu0  ;;  %7568 = vst [vmem:[#allocation79_spill] sm:$0xff] %v4321_v42  ;;  %v4329_v50 = vld [vmem:[#allocation2 + $0x2f8] sm:$0xff] }
  0xcf   :  { %7562 = vst [vmem:[#allocation73_spill] sm:$0xff] %v4307_v46  ;;  %7571 = vst [vmem:[#allocation82_spill] sm:$0xff] %v4329_v50 }
  0xd1   :  { %752 = vxpose.xlu1.b32.cont [14/16] %v4309_v56, 128  ;;  %v4315_v60 = vpop.trf.xlu1  ;;  %v4331_v56 = vld [vmem:[#allocation2 + $0x278] sm:$0xff] }
  0xd2   :  { %720 = vxpose.xlu0.b32.cont [14/16] %v4311_v52, 128  ;;  %7565 = vst [vmem:[#allocation76_spill] sm:$0xff] %v4315_v60  ;;  %v4317_v54 = vpop.trf.xlu0  ;;  %7572 = vst [vmem:[#allocation83_spill] sm:$0xff] %v4331_v56  ;;  %v151_v52 = vld [vmem:[#allocation2 + $0x380] sm:$0xff] }
  0xd3   :  { %7566 = vst [vmem:[#allocation77_spill] sm:$0xff] %v4317_v54 }
  0xd5   :  { %753 = vxpose.xlu1.b32.cont [15/16] %v4319_v7, 128  ;;  %v4325_v46 = vpop.trf.xlu1  ;;  %v4339_v7 = vld [vmem:[#allocation2 + $0x300] sm:$0xff] }
  0xd6   :  { %721 = vxpose.xlu0.b32.cont [15/16] %v4321_v42, 128  ;;  %7569 = vst [vmem:[#allocation80_spill] sm:$0xff] %v4325_v46  ;;  %v4327_v62 = vpop.trf.xlu0  ;;  %7575 = vst [vmem:[#allocation86_spill] sm:$0xff] %v4339_v7  ;;  %v4346_v42 = vld [vmem:[#allocation2 + $0x388] sm:$0xff] }
  0xd7   :  { %7570 = vst [vmem:[#allocation81_spill] sm:$0xff] %v4327_v62  ;;  %7578 = vst [vmem:[#allocation89_spill] sm:$0xff] %v4346_v42 }
  0xd9   :  { %754 = vxpose.xlu1.b32.end [16/16] %v4329_v50, 128  ;;  %v4335_v54 = vpop.trf.xlu1  ;;  %v153_v50 = vld [vmem:[#allocation2 + $0x390] sm:$0xff] }
  0xda   :  { %722 = vxpose.xlu0.b32.end [16/16] %v4331_v56, 128  ;;  %7573 = vst [vmem:[#allocation84_spill] sm:$0xff] %v4335_v54  ;;  %v4337_v60 = vpop.trf.xlu0  ;;  %v4365_v56 = vld [vmem:[#allocation2 + $0x318] sm:$0xff] }
  0xdb   :  { %7574 = vst [vmem:[#allocation85_spill] sm:$0xff] %v4337_v60  ;;  %7586 = vst [vmem:[#allocation97_spill] sm:$0xff] %v4365_v56 }
  0xdd   :  { %803 = vxpose.xlu1.b32.start [1/16] %v151_v52, 128  ;;  %v4342_v46 = vpop.trf.xlu1  ;;  %v4356_v52 = vld [vmem:[#allocation2 + $0x310] sm:$0xff] }
  0xde   :  { %771 = vxpose.xlu0.b32.start [1/16] %v4339_v7, 128  ;;  %7576 = vst [vmem:[#allocation87_spill] sm:$0xff] %v4342_v46  ;;  %v4344_v62 = vpop.trf.xlu0  ;;  %7582 = vst [vmem:[#allocation93_spill] sm:$0xff] %v4356_v52  ;;  %v4363_v7 = vld [vmem:[#allocation2 + $0x398] sm:$0xff] }
  0xdf   :  { %7577 = vst [vmem:[#allocation88_spill] sm:$0xff] %v4344_v62  ;;  %7585 = vst [vmem:[#allocation96_spill] sm:$0xff] %v4363_v7 }
  0xe1   :  { %804 = vxpose.xlu1.b32.cont [2/16] %v4346_v42, 128  ;;  %v4352_v54 = vpop.trf.xlu1  ;;  %v155_v42 = vld [vmem:[#allocation2 + $0x3a0] sm:$0xff] }
  0xe2   :  { %772 = vxpose.xlu0.b32.cont [2/16] %v4348_v48, 128  ;;  %7580 = vst [vmem:[#allocation91_spill] sm:$0xff] %v4352_v54  ;;  %v4354_v60 = vpop.trf.xlu0  ;;  %v4382_v48 = vld [vmem:[#allocation2 + $0x328] sm:$0xff] }
  0xe3   :  { %7581 = vst [vmem:[#allocation92_spill] sm:$0xff] %v4354_v60  ;;  %7593 = vst [vmem:[#allocation104_spill] sm:$0xff] %v4382_v48 }
  0xe5   :  { %805 = vxpose.xlu1.b32.cont [3/16] %v153_v50, 128  ;;  %v4359_v46 = vpop.trf.xlu1  ;;  %v4373_v50 = vld [vmem:[#allocation2 + $0x320] sm:$0xff] }
  0xe6   :  { %773 = vxpose.xlu0.b32.cont [3/16] %v4356_v52, 128  ;;  %7583 = vst [vmem:[#allocation94_spill] sm:$0xff] %v4359_v46  ;;  %v4361_v62 = vpop.trf.xlu0  ;;  %7589 = vst [vmem:[#allocation100_spill] sm:$0xff] %v4373_v50  ;;  %v4380_v52 = vld [vmem:[#allocation2 + $0x3a8] sm:$0xff] }
  0xe7   :  { %7584 = vst [vmem:[#allocation95_spill] sm:$0xff] %v4361_v62  ;;  %7592 = vst [vmem:[#allocation103_spill] sm:$0xff] %v4380_v52 }
  0xe9   :  { %806 = vxpose.xlu1.b32.cont [4/16] %v4363_v7, 128  ;;  %v4369_v54 = vpop.trf.xlu1  ;;  %v157_v7 = vld [vmem:[#allocation2 + $0x3b0] sm:$0xff] }
  0xea   :  { %774 = vxpose.xlu0.b32.cont [4/16] %v4365_v56, 128  ;;  %7587 = vst [vmem:[#allocation98_spill] sm:$0xff] %v4369_v54  ;;  %v4371_v60 = vpop.trf.xlu0  ;;  %v4399_v56 = vld [vmem:[#allocation2 + $0x338] sm:$0xff] }
  0xeb   :  { %7588 = vst [vmem:[#allocation99_spill] sm:$0xff] %v4371_v60  ;;  %7600 = vst [vmem:[#allocation111_spill] sm:$0xff] %v4399_v56 }
  0xed   :  { %807 = vxpose.xlu1.b32.cont [5/16] %v155_v42, 128  ;;  %v4376_v46 = vpop.trf.xlu1  ;;  %v4390_v42 = vld [vmem:[#allocation2 + $0x330] sm:$0xff] }
  0xee   :  { %775 = vxpose.xlu0.b32.cont [5/16] %v4373_v50, 128  ;;  %7590 = vst [vmem:[#allocation101_spill] sm:$0xff] %v4376_v46  ;;  %v4378_v62 = vpop.trf.xlu0  ;;  %7596 = vst [vmem:[#allocation107_spill] sm:$0xff] %v4390_v42  ;;  %v4397_v50 = vld [vmem:[#allocation2 + $0x3b8] sm:$0xff] }
  0xef   :  { %7591 = vst [vmem:[#allocation102_spill] sm:$0xff] %v4378_v62  ;;  %7599 = vst [vmem:[#allocation110_spill] sm:$0xff] %v4397_v50 }
  0xf1   :  { %808 = vxpose.xlu1.b32.cont [6/16] %v4380_v52, 128  ;;  %v4386_v54 = vpop.trf.xlu1  ;;  %v159_v52 = vld [vmem:[#allocation2 + $0x3c0] sm:$0xff] }
  0xf2   :  { %776 = vxpose.xlu0.b32.cont [6/16] %v4382_v48, 128  ;;  %7594 = vst [vmem:[#allocation105_spill] sm:$0xff] %v4386_v54  ;;  %v4388_v60 = vpop.trf.xlu0  ;;  %v4416_v48 = vld [vmem:[#allocation2 + $0x348] sm:$0xff] }
  0xf3   :  { %7595 = vst [vmem:[#allocation106_spill] sm:$0xff] %v4388_v60  ;;  %7607 = vst [vmem:[#allocation118_spill] sm:$0xff] %v4416_v48 }
  0xf5   :  { %809 = vxpose.xlu1.b32.cont [7/16] %v157_v7, 128  ;;  %v4393_v46 = vpop.trf.xlu1  ;;  %v4407_v7 = vld [vmem:[#allocation2 + $0x340] sm:$0xff] }
  0xf6   :  { %777 = vxpose.xlu0.b32.cont [7/16] %v4390_v42, 128  ;;  %7597 = vst [vmem:[#allocation108_spill] sm:$0xff] %v4393_v46  ;;  %v4395_v62 = vpop.trf.xlu0  ;;  %7603 = vst [vmem:[#allocation114_spill] sm:$0xff] %v4407_v7  ;;  %v4414_v42 = vld [vmem:[#allocation2 + $0x3c8] sm:$0xff] }
  0xf7   :  { %7598 = vst [vmem:[#allocation109_spill] sm:$0xff] %v4395_v62  ;;  %7606 = vst [vmem:[#allocation117_spill] sm:$0xff] %v4414_v42 }
  0xf9   :  { %810 = vxpose.xlu1.b32.cont [8/16] %v4397_v50, 128  ;;  %v4403_v54 = vpop.trf.xlu1  ;;  %v161_v50 = vld [vmem:[#allocation2 + $0x3d0] sm:$0xff] }
  0xfa   :  { %778 = vxpose.xlu0.b32.cont [8/16] %v4399_v56, 128  ;;  %7601 = vst [vmem:[#allocation112_spill] sm:$0xff] %v4403_v54  ;;  %v4405_v60 = vpop.trf.xlu0  ;;  %v4433_v56 = vld [vmem:[#allocation2 + $0x358] sm:$0xff] }
  0xfb   :  { %7602 = vst [vmem:[#allocation113_spill] sm:$0xff] %v4405_v60  ;;  %7614 = vst [vmem:[#allocation125_spill] sm:$0xff] %v4433_v56 }
  0xfd   :  { %811 = vxpose.xlu1.b32.cont [9/16] %v159_v52, 128  ;;  %v4410_v46 = vpop.trf.xlu1  ;;  %v4424_v52 = vld [vmem:[#allocation2 + $0x350] sm:$0xff] }
  0xfe   :  { %779 = vxpose.xlu0.b32.cont [9/16] %v4407_v7, 128  ;;  %7604 = vst [vmem:[#allocation115_spill] sm:$0xff] %v4410_v46  ;;  %v4412_v62 = vpop.trf.xlu0  ;;  %7610 = vst [vmem:[#allocation121_spill] sm:$0xff] %v4424_v52  ;;  %v4431_v7 = vld [vmem:[#allocation2 + $0x3d8] sm:$0xff] }
  0xff   :  { %7605 = vst [vmem:[#allocation116_spill] sm:$0xff] %v4412_v62  ;;  %7613 = vst [vmem:[#allocation124_spill] sm:$0xff] %v4431_v7 }
 0x101   :  { %812 = vxpose.xlu1.b32.cont [10/16] %v4414_v42, 128  ;;  %v4420_v54 = vpop.trf.xlu1  ;;  %v163_v42 = vld [vmem:[#allocation2 + $0x3e0] sm:$0xff] }
 0x102   :  { %780 = vxpose.xlu0.b32.cont [10/16] %v4416_v48, 128  ;;  %7608 = vst [vmem:[#allocation119_spill] sm:$0xff] %v4420_v54  ;;  %v4422_v60 = vpop.trf.xlu0  ;;  %v4450_v48 = vld [vmem:[#allocation2 + $0x368] sm:$0xff] }
 0x103   :  { %7609 = vst [vmem:[#allocation120_spill] sm:$0xff] %v4422_v60  ;;  %7621 = vst [vmem:[#allocation132_spill] sm:$0xff] %v4450_v48 }
 0x105   :  { %813 = vxpose.xlu1.b32.cont [11/16] %v161_v50, 128  ;;  %v4427_v46 = vpop.trf.xlu1  ;;  %v4441_v50 = vld [vmem:[#allocation2 + $0x360] sm:$0xff] }
 0x106   :  { %781 = vxpose.xlu0.b32.cont [11/16] %v4424_v52, 128  ;;  %7611 = vst [vmem:[#allocation122_spill] sm:$0xff] %v4427_v46  ;;  %v4429_v62 = vpop.trf.xlu0  ;;  %7617 = vst [vmem:[#allocation128_spill] sm:$0xff] %v4441_v50  ;;  %v4448_v52 = vld [vmem:[#allocation2 + $0x3e8] sm:$0xff] }
 0x107   :  { %7612 = vst [vmem:[#allocation123_spill] sm:$0xff] %v4429_v62  ;;  %7620 = vst [vmem:[#allocation131_spill] sm:$0xff] %v4448_v52 }
 0x109   :  { %814 = vxpose.xlu1.b32.cont [12/16] %v4431_v7, 128  ;;  %v4437_v54 = vpop.trf.xlu1  ;;  %v165_v7 = vld [vmem:[#allocation2 + $0x3f0] sm:$0xff] }
 0x10a   :  { %782 = vxpose.xlu0.b32.cont [12/16] %v4433_v56, 128  ;;  %7615 = vst [vmem:[#allocation126_spill] sm:$0xff] %v4437_v54  ;;  %v4439_v60 = vpop.trf.xlu0  ;;  %v4467_v56 = vld [vmem:[#allocation2 + $0x378] sm:$0xff] }
 0x10b   :  { %7616 = vst [vmem:[#allocation127_spill] sm:$0xff] %v4439_v60  ;;  %7628 = vst [vmem:[#allocation139_spill] sm:$0xff] %v4467_v56 }
 0x10d   :  { %815 = vxpose.xlu1.b32.cont [13/16] %v163_v42, 128  ;;  %v4444_v46 = vpop.trf.xlu1  ;;  %v4458_v42 = vld [vmem:[#allocation2 + $0x370] sm:$0xff] }
 0x10e   :  { %783 = vxpose.xlu0.b32.cont [13/16] %v4441_v50, 128  ;;  %7618 = vst [vmem:[#allocation129_spill] sm:$0xff] %v4444_v46  ;;  %v4446_v62 = vpop.trf.xlu0  ;;  %7624 = vst [vmem:[#allocation135_spill] sm:$0xff] %v4458_v42  ;;  %v4465_v50 = vld [vmem:[#allocation2 + $0x3f8] sm:$0xff] }
 0x10f   :  { %7619 = vst [vmem:[#allocation130_spill] sm:$0xff] %v4446_v62  ;;  %7627 = vst [vmem:[#allocation138_spill] sm:$0xff] %v4465_v50 }
 0x111   :  { %816 = vxpose.xlu1.b32.cont [14/16] %v4448_v52, 128  ;;  %v4454_v54 = vpop.trf.xlu1 }
 0x112   :  { %784 = vxpose.xlu0.b32.cont [14/16] %v4450_v48, 128  ;;  %7622 = vst [vmem:[#allocation133_spill] sm:$0xff] %v4454_v54  ;;  %v4456_v60 = vpop.trf.xlu0 }
 0x113   :  { %7623 = vst [vmem:[#allocation134_spill] sm:$0xff] %v4456_v60 }
 0x115   :  { %817 = vxpose.xlu1.b32.cont [15/16] %v165_v7, 128  ;;  %v4461_v46 = vpop.trf.xlu1 }
 0x116   :  { %785 = vxpose.xlu0.b32.cont [15/16] %v4458_v42, 128  ;;  %7625 = vst [vmem:[#allocation136_spill] sm:$0xff] %v4461_v46  ;;  %v4463_v62 = vpop.trf.xlu0 }
 0x117   :  { %7626 = vst [vmem:[#allocation137_spill] sm:$0xff] %v4463_v62 }
 0x119   :  { %818 = vxpose.xlu1.b32.end [16/16] %v4465_v50, 128  ;;  %v4471_v54 = vpop.trf.xlu1 }
 0x11a   :  { %786 = vxpose.xlu0.b32.end [16/16] %v4467_v56, 128  ;;  %7629 = vst [vmem:[#allocation140_spill] sm:$0xff] %v4471_v54  ;;  %v4473_v60 = vpop.trf.xlu0 }
 0x11b   :  { %7630 = vst [vmem:[#allocation141_spill] sm:$0xff] %v4473_v60 }
 0x11d   :  { %v4475_v52 = vpop.trf.xlu1 }
 0x11e   :  { %7631 = vst [vmem:[#allocation142_spill] sm:$0xff] %v4475_v52  ;;  %v4477_v7 = vpop.trf.xlu0 }
 0x11f   :  { %7632 = vst [vmem:[#allocation143_spill] sm:$0xff] %v4477_v7 }
 0x121   :  { %v4479_v42 = vpop.trf.xlu1 }
 0x122   :  { %7633 = vst [vmem:[#allocation144_spill] sm:$0xff] %v4479_v42  ;;  %v4481_v46 = vpop.trf.xlu0 }
 0x123   :  { %7634 = vst [vmem:[#allocation145_spill] sm:$0xff] %v4481_v46 }
 0x125   :  { %v4483_v62 = vpop.trf.xlu1 }
 0x126   :  { %v4485_v48 = vpop.trf.xlu0 }
 0x127   :  { %7635 = vst [vmem:[#allocation146_spill] sm:$0xff] %v4485_v48  ;;  %v197_v48 = vmul.f32 %v3997_v6, %v3995_v5  ;;  %v196_v5 = vmul.f32 %v3997_v6, %v3989_v3  ;;  %v201_v3 = vmul.f32 %v3997_v6, %v4024_v16  ;;  %v205_v16 = vmul.f32 %v3997_v6, %v4048_v24 }
 0x129   :  { %v4487_v38 = vpop.trf.xlu1 }
 0x12a   :  { %7636 = vst [vmem:[#allocation147_spill] sm:$0xff] %v4487_v38  ;;  %v4489_v50 = vpop.trf.xlu0 }
 0x12b   :  { %7637 = vst [vmem:[#allocation148_spill] sm:$0xff] %v4489_v50 }
 0x12d   :  { %v4491_v56 = vpop.trf.xlu1 }
 0x12e   :  { %7638 = vst [vmem:[#allocation149_spill] sm:$0xff] %v4491_v56  ;;  %v4493_v54 = vpop.trf.xlu0  ;;  %v7743_v56 = vld [vmem:[#allocation128_spill] sm:$0xff] }
 0x12f   :  { %7639 = vst [vmem:[#allocation150_spill] sm:$0xff] %v4493_v54  ;;  %v198_v54 = vmul.f32 %v3997_v6, %v4003_v9  ;;  %v199_v9 = vmul.f32 %v3997_v6, %v4012_v12 }
 0x131   :  { %v4495_v60 = vpop.trf.xlu1 }
 0x132   :  { %7640 = vst [vmem:[#allocation151_spill] sm:$0xff] %v4495_v60  ;;  %v4497_v52 = vpop.trf.xlu0 }
 0x133   :  { %7641 = vst [vmem:[#allocation152_spill] sm:$0xff] %v4497_v52  ;;  %v195_v52 = vmul.f32 %v3997_v6, %v3983_v1 }
 0x135   :  { %v4499_v7 = vpop.trf.xlu1 }
 0x136   :  { %7642 = vst [vmem:[#allocation153_spill] sm:$0xff] %v4499_v7  ;;  %v4503_v46 = vpop.trf.xlu0  ;;  %v200_v7 = vmul.f32 %v3997_v6, %v4018_v14 }
 0x137   :  { %7644 = vst [vmem:[#allocation155_spill] sm:$0xff] %v4503_v46 }
 0x139   :  { %v4501_v42 = vpop.trf.xlu1 }
 0x13a   :  { %7643 = vst [vmem:[#allocation154_spill] sm:$0xff] %v4501_v42  ;;  %v4509_v50 = vpop.trf.xlu0 }
 0x13b   :  { %7646 = vst [vmem:[#allocation157_spill] sm:$0xff] %v4509_v50 }
 0x13d   :  { %v4507_v38 = vpop.trf.xlu1 }
 0x13e   :  { %7645 = vst [vmem:[#allocation156_spill] sm:$0xff] %v4507_v38  ;;  %v4519_v46 = vpop.trf.xlu0  ;;  %v202_v38 = vmul.f32 %v3997_v6, %v4030_v18  ;;  %v206_v18 = vmul.f32 %v3997_v6, %v4054_v26 }
 0x13f   :  { %7648 = vst [vmem:[#allocation159_spill] sm:$0xff] %v4519_v46 }
 0x140   :  { %327 = vadd.xlane.f32.xlu1 %v197_v48  ;;  %v204_v48 = vmul.f32 %v3997_v6, %v4042_v22  ;;  %v208_v22 = vmul.f32 %v3997_v6, %v4066_v30  ;;  %v212_v30 = vmul.f32 %v3997_v6, %v3987_v2 }
 0x141   :  { %v4517_v42 = vpop.trf.xlu1 }
 0x142   :  { %7647 = vst [vmem:[#allocation158_spill] sm:$0xff] %v4517_v42  ;;  %v4529_v14 = vpop.trf.xlu0  ;;  %v7729_v42 = vld [vmem:[#allocation78_spill] sm:$0xff] }
 0x143   :  { %7650 = vst [vmem:[#allocation161_spill] sm:$0xff] %v4529_v14  ;;  %v7727_v14 = vld [vmem:[#allocation70_spill] sm:$0xff] }
 0x144   :  { %329 = vadd.xlane.f32.xlu1 %v198_v54 }
 0x145   :  { %v4527_v1 = vpop.trf.xlu1 }
 0x146   :  { %7649 = vst [vmem:[#allocation160_spill] sm:$0xff] %v4527_v1  ;;  %v4539_v12 = vpop.trf.xlu0 }
 0x147   :  { %323 = vadd.xlane.f32.xlu0 %v195_v52  ;;  %7652 = vst [vmem:[#allocation163_spill] sm:$0xff] %v4539_v12  ;;  %v203_v52 = vmul.f32 %v3997_v6, %v4036_v20  ;;  %v207_v20 = vmul.f32 %v3997_v6, %v4060_v28  ;;  %v211_v28 = vmul.f32 %v3997_v6, %v3981_v0 }
 0x148   :  { %333 = vadd.xlane.f32.xlu1 %v200_v7  ;;  %v210_v7 = vmul.f32 %v3997_v6, %v4075_v33  ;;  %v214_v33 = vmul.f32 %v3997_v6, %v4001_v8  ;;  %v218_v8 = vmul.f32 %v3997_v6, %v4028_v17 }
 0x149   :  { %v4537_v54 = vpop.trf.xlu1 }
 0x14a   :  { %7651 = vst [vmem:[#allocation162_spill] sm:$0xff] %v4537_v54  ;;  %v4549_v26 = vpop.trf.xlu0 }
 0x14b   :  { %325 = vadd.xlane.f32.xlu0 %v196_v5  ;;  %7654 = vst [vmem:[#allocation165_spill] sm:$0xff] %v4549_v26  ;;  %v7710_v26 = vld [vmem:[#allocation83_spill] sm:$0xff] }
 0x14c   :  { %337 = vadd.xlane.f32.xlu1 %v202_v38 }
 0x14d   :  { %v4547_v38 = vpop.trf.xlu1 }
 0x14e   :  { %7653 = vst [vmem:[#allocation164_spill] sm:$0xff] %v4547_v38  ;;  %v4559_v24 = vpop.trf.xlu0 }
 0x14f   :  { %331 = vadd.xlane.f32.xlu0 %v199_v9  ;;  %7656 = vst [vmem:[#allocation167_spill] sm:$0xff] %v4559_v24  ;;  %v209_v9 = vmul.f32 %v3997_v6, %v4070_v31  ;;  %v213_v31 = vmul.f32 %v3997_v6, %v3993_v4  ;;  %v217_v4 = vmul.f32 %v3997_v6, %v4022_v15 }
 0x150   :  { %341 = vadd.xlane.f32.xlu1 %v204_v48 }
 0x151   :  { %v4557_v5 = vpop.trf.xlu1 }
 0x152   :  { %7655 = vst [vmem:[#allocation166_spill] sm:$0xff] %v4557_v5  ;;  %v4569_v2 = vpop.trf.xlu0  ;;  %v7708_v5 = vld [vmem:[#allocation75_spill] sm:$0xff] }
 0x153   :  { %335 = vadd.xlane.f32.xlu0 %v201_v3  ;;  %7658 = vst [vmem:[#allocation169_spill] sm:$0xff] %v4569_v2  ;;  %v216_v3 = vmul.f32 %v3997_v6, %v4016_v13  ;;  %v220_v13 = vmul.f32 %v3997_v6, %v4040_v21  ;;  %v224_v21 = vmul.f32 %v3997_v6, %v4064_v29 }
 0x154   :  { %345 = vadd.xlane.f32.xlu1 %v206_v18 }
 0x155   :  { %v4567_v48 = vpop.trf.xlu1 }
 0x156   :  { %7657 = vst [vmem:[#allocation168_spill] sm:$0xff] %v4567_v48  ;;  %v4579_v0 = vpop.trf.xlu0  ;;  %v7706_v48 = vld [vmem:[#allocation67_spill] sm:$0xff] }
 0x157   :  { %339 = vadd.xlane.f32.xlu0 %v203_v52  ;;  %7659 = vst [vmem:[#allocation170_spill] sm:$0xff] %v4579_v0  ;;  %v215_v52 = vmul.f32 %v3997_v6, %v4010_v11  ;;  %v219_v11 = vmul.f32 %v3997_v6, %v4034_v19  ;;  %v223_v19 = vmul.f32 %v3997_v6, %v4058_v27  ;;  %v7705_v0 = vld [vmem:[#allocation47_spill] sm:$0xff] }
 0x158   :  { %349 = vadd.xlane.f32.xlu1 %v208_v22 }
 0x159   :  { %v4577_v18 = vpop.trf.xlu1 }
 0x15a   :  { %v4589_v17 = vpop.trf.xlu0 }
 0x15b   :  { %343 = vadd.xlane.f32.xlu0 %v205_v16  ;;  %v222_v16 = vmul.f32 %v3997_v6, %v4052_v25  ;;  %v226_v25 = vmul.f32 %v3997_v6, %v4073_v32 }
 0x15c   :  { %353 = vadd.xlane.f32.xlu1 %v210_v7 }
 0x15d   :  { %v4587_v22 = vpop.trf.xlu1 }
 0x15e   :  { %v4599_v15 = vpop.trf.xlu0 }
 0x15f   :  { %347 = vadd.xlane.f32.xlu0 %v207_v20  ;;  %v221_v20 = vmul.f32 %v3997_v6, %v4046_v23 }
 0x160   :  { %357 = vadd.xlane.f32.xlu1 %v212_v30  ;;  %v4605_v30 = vld [vmem:[#allocation4 + $0x1] ss:$0 sm:$0xff] }
 0x161   :  { %v4597_v7 = vpop.trf.xlu1  ;;  %v230_v23 = vmul.f32 %v4605_v30, %v4099_v41  ;;  %v227_v6 = vmul.f32 %v4605_v30, %v4081_v35  ;;  %v232_v27 = vmul.f32 %v4605_v30, %v4111_v45  ;;  %v231_v35 = vmul.f32 %v4605_v30, %v4105_v43 }
 0x162   :  { %v235_v43 = vmul.f32 %v4605_v30, %v4129_v51 }
 0x163   :  { %351 = vadd.xlane.f32.xlu0 %v209_v9  ;;  %v4611_v9 = vpop.trf.xlu0 }
 0x164   :  { %361 = vadd.xlane.f32.xlu1 %v214_v33  ;;  %v228_v33 = vmul.f32 %v4605_v30, %v4087_v37  ;;  %v229_v37 = vmul.f32 %v4605_v30, %v4093_v39 }
 0x165   :  { %v4609_v29 = vpop.trf.xlu1 }
 0x167   :  { %355 = vadd.xlane.f32.xlu0 %v211_v28  ;;  %v4619_v28 = vpop.trf.xlu0 }
 0x168   :  { %365 = vadd.xlane.f32.xlu1 %v216_v3 }
 0x169   :  { %v4617_v32 = vpop.trf.xlu1 }
 0x16a   :  { %7660 = vst [vmem:[#allocation171_spill] sm:$0xff] %v4617_v32  ;;  %v3903_v32 = vld [vmem:[#allocation2 + $0x3a0] sm:$0xff] }
 0x16b   :  { %359 = vadd.xlane.f32.xlu0 %v213_v31  ;;  %v4630_v41 = vpop.trf.xlu0  ;;  %v234_v31 = vmul.f32 %v4605_v30, %v4123_v49  ;;  %v238_v49 = vmul.f32 %v4605_v30, %v4147_v57  ;;  %v242_v57 = vmul.f32 %v4605_v30, %v4171_v58 }
 0x16c   :  { %369 = vadd.xlane.f32.xlu1 %v218_v8  ;;  %7662 = vst [vmem:[#allocation173_spill] sm:$0xff] %v4630_v41  ;;  %v233_v8 = vmul.f32 %v4605_v30, %v4117_v47  ;;  %v237_v47 = vmul.f32 %v4605_v30, %v4141_v55  ;;  %v241_v55 = vmul.f32 %v4605_v30, %v4165_v63 }
 0x16d   :  { %v4628_v3 = vpop.trf.xlu1 }
 0x16e   :  { %7661 = vst [vmem:[#allocation172_spill] sm:$0xff] %v4628_v3  ;;  %v7744_v3 = vld [vmem:[#allocation89_spill] sm:$0xff] }
 0x16f   :  { %363 = vadd.xlane.f32.xlu0 %v215_v52  ;;  %v4640_v39 = vpop.trf.xlu0 }
 0x170   :  { %373 = vadd.xlane.f32.xlu1 %v220_v13  ;;  %7664 = vst [vmem:[#allocation175_spill] sm:$0xff] %v4640_v39  ;;  %v240_v13 = vmul.f32 %v4605_v30, %v4159_v61  ;;  %v244_v61 = vmul.f32 %v4605_v30, %v4085_v36  ;;  %v248_v36 = vmul.f32 %v4605_v30, %v4109_v44 }
 0x171   :  { %v4638_v45 = vpop.trf.xlu1 }
 0x172   :  { %7663 = vst [vmem:[#allocation174_spill] sm:$0xff] %v4638_v45 }
 0x173   :  { %367 = vadd.xlane.f32.xlu0 %v217_v4 }
 0x174   :  { %377 = vadd.xlane.f32.xlu1 %v222_v16  ;;  %v239_v16 = vmul.f32 %v4605_v30, %v4153_v59  ;;  %v243_v59 = vmul.f32 %v4605_v30, %v4079_v34 }
 0x175   :  { %v4648_v52 = vpop.trf.xlu1 }
 0x176   :  { %7665 = vst [vmem:[#allocation176_spill] sm:$0xff] %v4648_v52 }
 0x177   :  { %371 = vadd.xlane.f32.xlu0 %v219_v11 }
 0x178   :  { %381 = vadd.xlane.f32.xlu1 %v224_v21  ;;  %v246_v21 = vmul.f32 %v4605_v30, %v4097_v40 }
 0x179   :  { %v4658_v4 = vpop.trf.xlu1 }
 0x17a   :  { %7667 = vst [vmem:[#allocation178_spill] sm:$0xff] %v4658_v4 }
 0x17b   :  { %375 = vadd.xlane.f32.xlu0 %v221_v20 }
 0x17c   :  { %385 = vadd.xlane.f32.xlu1 %v226_v25  ;;  %v7673_v25 = vld [vmem:[#allocation8_spill] sm:$0xff] }
 0x17d   :  { %v4668_v11 = vpop.trf.xlu1 }
 0x17e   :  { %7669 = vst [vmem:[#allocation180_spill] sm:$0xff] %v4668_v11 }
 0x17f   :  { %379 = vadd.xlane.f32.xlu0 %v223_v19  ;;  %v245_v19 = vmul.f32 %v4605_v30, %v7673_v25 }
 0x180   :  { %389 = vadd.xlane.f32.xlu1 %v228_v33  ;;  %v7674_v33 = vld [vmem:[#allocation11_spill] sm:$0xff] }
 0x181   :  { %v4678_v20 = vpop.trf.xlu1  ;;  %v250_v40 = vmul.f32 %v4605_v30, %v7674_v33  ;;  %v7689_v33 = vld [vmem:[#allocation16_spill] sm:$0xff] }
 0x182   :  { %7671 = vst [vmem:[#allocation182_spill] sm:$0xff] %v4678_v20  ;;  %v7730_v20 = vld [vmem:[#allocation97_spill] sm:$0xff] }
 0x183   :  { %383 = vadd.xlane.f32.xlu0 %v4006_v10  ;;  %v236_v10 = vmul.f32 %v4605_v30, %v4135_v53  ;;  %v4650_v53 = vpop.trf.xlu0 }
 0x184   :  { %393 = vadd.xlane.f32.xlu1 %v230_v23  ;;  %7666 = vst [vmem:[#allocation177_spill] sm:$0xff] %v4650_v53  ;;  %v7675_v23 = vld [vmem:[#allocation9_spill] sm:$0xff] }
 0x185   :  { %v247_v34 = vmul.f32 %v4605_v30, %v7675_v23  ;;  %v7690_v23 = vld [vmem:[#allocation27_spill] sm:$0xff] }
 0x187   :  { %387 = vadd.xlane.f32.xlu0 %v227_v6  ;;  %v4660_v51 = vpop.trf.xlu0  ;;  %v4688_v6 = vpop.trf.xlu1 }
 0x188   :  { %397 = vadd.xlane.f32.xlu1 %v232_v27  ;;  %7668 = vst [vmem:[#allocation179_spill] sm:$0xff] %v4660_v51  ;;  %7676 = vst [vmem:[#allocation8_spill] sm:$0xff] %v4688_v6  ;;  %v7678_v27 = vld [vmem:[#allocation13_spill] sm:$0xff] }
 0x18b   :  { %391 = vadd.xlane.f32.xlu0 %v229_v37  ;;  %v4670_v58 = vpop.trf.xlu0  ;;  %v252_v37 = vmul.f32 %v4605_v30, %v7678_v27 }
 0x18c   :  { %401 = vadd.xlane.f32.xlu1 %v234_v31  ;;  %7670 = vst [vmem:[#allocation181_spill] sm:$0xff] %v4670_v58  ;;  %v7679_v31 = vld [vmem:[#allocation10_spill] sm:$0xff] }
 0x18f   :  { %395 = vadd.xlane.f32.xlu0 %v231_v35  ;;  %v4680_v63 = vpop.trf.xlu0  ;;  %v249_v35 = vmul.f32 %v4605_v30, %v7679_v31  ;;  %v7693_v31 = vld [vmem:[#allocation18_spill] sm:$0xff] }
 0x190   :  { %405 = vadd.xlane.f32.xlu1 %v236_v10  ;;  %7672 = vst [vmem:[#allocation183_spill] sm:$0xff] %v4680_v63  ;;  %v7680_v10 = vld [vmem:[#allocation15_spill] sm:$0xff] }
 0x193   :  { %399 = vadd.xlane.f32.xlu0 %v233_v8  ;;  %v4690_v44 = vpop.trf.xlu0  ;;  %v254_v8 = vmul.f32 %v4605_v30, %v7680_v10  ;;  %v7694_v10 = vld [vmem:[#allocation35_spill] sm:$0xff] }
 0x194   :  { %409 = vadd.xlane.f32.xlu1 %v238_v49  ;;  %7677 = vst [vmem:[#allocation11_spill] sm:$0xff] %v4690_v44  ;;  %v4698_v49 = vpop.trf.xlu1  ;;  %v7728_v44 = vld [vmem:[#allocation90_spill] sm:$0xff] }
 0x195   :  { %7681 = vst [vmem:[#allocation9_spill] sm:$0xff] %v4698_v49 }
 0x197   :  { %403 = vadd.xlane.f32.xlu0 %v235_v43  ;;  %v4700_v43 = vpop.trf.xlu0 }
 0x198   :  { %413 = vadd.xlane.f32.xlu1 %v240_v13  ;;  %7682 = vst [vmem:[#allocation13_spill] sm:$0xff] %v4700_v43  ;;  %v7683_v13 = vld [vmem:[#allocation12_spill] sm:$0xff] }
 0x19b   :  { %407 = vadd.xlane.f32.xlu0 %v237_v47  ;;  %v251_v47 = vmul.f32 %v4605_v30, %v7683_v13  ;;  %v7695_v13 = vld [vmem:[#allocation23_spill] sm:$0xff] }
 0x19c   :  { %417 = vadd.xlane.f32.xlu1 %v242_v57  ;;  %v7684_v57 = vld [vmem:[#allocation17_spill] sm:$0xff] }
 0x19f   :  { %411 = vadd.xlane.f32.xlu0 %v239_v16  ;;  %v256_v16 = vmul.f32 %v4605_v30, %v7684_v57 }
 0x1a0   :  { %421 = vadd.xlane.f32.xlu1 %v244_v61  ;;  %v7685_v61 = vld [vmem:[#allocation14_spill] sm:$0xff] }
 0x1a3   :  { %415 = vadd.xlane.f32.xlu0 %v241_v55  ;;  %v253_v55 = vmul.f32 %v4605_v30, %v7685_v61  ;;  %v7698_v61 = vld [vmem:[#allocation43_spill] sm:$0xff] }
 0x1a4   :  { %425 = vadd.xlane.f32.xlu1 %v246_v21  ;;  %v4708_v21 = vpop.trf.xlu1 }
 0x1a5   :  { %7686 = vst [vmem:[#allocation10_spill] sm:$0xff] %v4708_v21 }
 0x1a7   :  { %419 = vadd.xlane.f32.xlu0 %v243_v59  ;;  %v4710_v59 = vpop.trf.xlu0 }
 0x1a8   :  { %429 = vadd.xlane.f32.xlu1 %v248_v36  ;;  %7687 = vst [vmem:[#allocation15_spill] sm:$0xff] %v4710_v59  ;;  %v7688_v36 = vld [vmem:[#allocation19_spill] sm:$0xff]  ;;  %v4720_v27 = vpop.trf.xlu1 }
 0x1a9   :  { %v258_v25 = vmul.f32 %v4605_v30, %v7688_v36  ;;  %7691 = vst [vmem:[#allocation12_spill] sm:$0xff] %v4720_v27  ;;  %v7153_v36 = vlaneseq }
 0x1ab   :  { %423 = vadd.xlane.f32.xlu0 %v245_v19  ;;  %v4714_v19 = vld [vmem:[#allocation4 + $0x2] ss:$0 sm:$0xff] }
 0x1ac   :  { %433 = vadd.xlane.f32.xlu1 %v250_v40  ;;  %v255_v40 = vmul.f32 %v4605_v30, %v7689_v33  ;;  %v4730_v57 = vpop.trf.xlu1  ;;  %v7700_v33 = vld [vmem:[#allocation51_spill] sm:$0xff] }
 0x1ad   :  { %7696 = vst [vmem:[#allocation14_spill] sm:$0xff] %v4730_v57 }
 0x1af   :  { %427 = vadd.xlane.f32.xlu0 %v247_v34  ;;  %v260_v34 = vmul.f32 %v4714_v19, %v7690_v23  ;;  %v4741_v23 = vand.u32 127, %v7153_v36 }
 0x1b0   :  { %437 = vadd.xlane.f32.xlu1 %v252_v37  ;;  %v4722_v37 = vpop.trf.xlu0 }
 0x1b1   :  { %7692 = vst [vmem:[#allocation17_spill] sm:$0xff] %v4722_v37  ;;  %v1053_v12 = vadd.s32 4294967192, %v4741_v23  ;;  %v1067_v1 = vadd.s32 4294967176, %v4741_v23 }
 0x1b3   :  { %431 = vadd.xlane.f32.xlu0 %v249_v35  ;;  %v257_v35 = vmul.f32 %v4605_v30, %v7693_v31 }
 0x1b4   :  { %441 = vadd.xlane.f32.xlu1 %v254_v8  ;;  %v262_v8 = vmul.f32 %v4714_v19, %v7694_v10 }
 0x1b7   :  { %435 = vadd.xlane.f32.xlu0 %v251_v47  ;;  %v259_v47 = vmul.f32 %v4714_v19, %v7695_v13 }
 0x1b8   :  { %445 = vadd.xlane.f32.xlu1 %v256_v16  ;;  %v4732_v16 = vpop.trf.xlu0 }
 0x1b9   :  { %7697 = vst [vmem:[#allocation19_spill] sm:$0xff] %v4732_v16  ;;  %v7707_v16 = vld [vmem:[#allocation55_spill] sm:$0xff] }
 0x1ba   :  { %v267_v27 = vmul.f32 %v4714_v19, %v7707_v16 }
 0x1bb   :  { %439 = vadd.xlane.f32.xlu0 %v253_v55  ;;  %v264_v55 = vmul.f32 %v4714_v19, %v7698_v61  ;;  %v4750_v61 = vshrl.u32 %v7153_v36, 7  ;;  %v270_v36 = vmul.f32 %v4714_v19, %v7706_v48  ;;  %v272_v48 = vmul.f32 %v4714_v19, %v7708_v5 }
 0x1bc   :  { %449 = vadd.xlane.f32.xlu1 %v258_v25  ;;  %v7699_v25 = vld [vmem:[#allocation31_spill] sm:$0xff]  ;;  %v4743_v31 = vpop.trf.xlu0  ;;  %v1004_v5 = vadd.s32 4294967248, %v4741_v23 }
 0x1bd   :  { %v261_v30 = vmul.f32 %v4714_v19, %v7699_v25  ;;  %7701 = vst [vmem:[#allocation16_spill] sm:$0xff] %v4743_v31  ;;  %7704 = vst [vmem:[#allocation27_spill] sm:$0xff] %v4750_v61  ;;  %v976_v25 = vadd.s32 4294967280, %v4741_v23  ;;  %v265_v31 = vmul.f32 %v4714_v19, %v7705_v0  ;;  %v4766_v57 = vsub.s32 %v4741_v23, %v4750_v61 }
 0x1bf   :  { %443 = vadd.xlane.f32.xlu0 %v255_v40  ;;  %v266_v40 = vmul.f32 %v4714_v19, %v7700_v33  ;;  %v4772_v0 = vsub.s32 %v976_v25, %v4750_v61 }
 0x1c0   :  { %453 = vadd.xlane.f32.xlu1 %v260_v34 }
 0x1c3   :  { %447 = vadd.xlane.f32.xlu0 %v257_v35  ;;  %v7702_v35 = vld [vmem:[#allocation39_spill] sm:$0xff] }
 0x1c4   :  { %457 = vadd.xlane.f32.xlu1 %v262_v8  ;;  %v263_v10 = vmul.f32 %v4714_v19, %v7702_v35  ;;  %v7703_v8 = vld [vmem:[#allocation59_spill] sm:$0xff] }
 0x1c5   :  { %v268_v13 = vmul.f32 %v4714_v19, %v7703_v8  ;;  %v990_v8 = vadd.s32 4294967264, %v4741_v23 }
 0x1c7   :  { %451 = vadd.xlane.f32.xlu0 %v259_v47  ;;  %v983_v47 = vadd.s32 4294967272, %v4741_v23 }
 0x1c8   :  { %461 = vadd.xlane.f32.xlu1 %v264_v55  ;;  %v969_v55 = vadd.s32 4294967288, %v4741_v23 }
 0x1c9   :  { %v328_v34 = vpop.xlane.xlu1 %327 }
 0x1ca   :  { %v4769_v2 = vsub.s32 %v969_v55, %v4750_v61  ;;  %v4783_v55 = vsub.s32 %v990_v8, %v4750_v61  ;;  %v274_v8 = vmul.f32 %v4714_v19, %v7710_v26  ;;  %v4804_v26 = vsub.s32 %v1004_v5, %v4750_v61 }
 0x1cb   :  { %455 = vadd.xlane.f32.xlu0 %v261_v30  ;;  %v997_v30 = vadd.s32 4294967256, %v4741_v23 }
 0x1cc   :  { %465 = vadd.xlane.f32.xlu1 %v266_v40  ;;  %v4762_v40 = vsub.s32 %v983_v47, %v4750_v61  ;;  %v1011_v47 = vadd.s32 4294967240, %v4741_v23 }
 0x1cd   :  { %v330_v33 = vpop.xlane.xlu1 %329  ;;  %v4780_v24 = vsub.s32 %v997_v30, %v4750_v61  ;;  %v980_v30 = vrot.slane %v328_v34, %v4772_v0 }
 0x1ce   :  { %v987_v25 = vrot.slane %v330_v33, %v4762_v40  ;;  %v4796_v33 = vsub.s32 %v1011_v47, %v4750_v61  ;;  %v7711_v47 = vld [vmem:[#allocation26_spill] sm:$0xff] }
 0x1cf   :  { %459 = vadd.xlane.f32.xlu0 %v263_v10 }
 0x1d0   :  { %v324_v35 = vpop.xlane.xlu0 %323  ;;  %469 = vadd.xlane.f32.xlu1 %v268_v13 }
 0x1d1   :  { %v334_v10 = vpop.xlane.xlu1 %333  ;;  %v968_v37 = vrot.slane %v324_v35, %v4766_v57 }
 0x1d3   :  { %463 = vadd.xlane.f32.xlu0 %v265_v31  ;;  %v7709_v31 = vld [vmem:[#allocation63_spill] sm:$0xff] }
 0x1d4   :  { %v326_v13 = vpop.xlane.xlu0 %325  ;;  %473 = vadd.xlane.f32.xlu1 %v270_v36  ;;  %v269_v38 = vmul.f32 %v4714_v19, %v7709_v31  ;;  %v1001_v36 = vrot.slane %v334_v10, %v4780_v24  ;;  %v1025_v31 = vadd.s32 4294967224, %v4741_v23  ;;  %v276_v10 = vmul.f32 %v4714_v19, %v7711_v47 }
 0x1d5   :  { %v973_v16 = vrot.slane %v326_v13, %v4769_v2  ;;  %v338_v21 = vpop.xlane.xlu1 %337 }
 0x1d7   :  { %v975_v59 = vsel %vm974_vm0, %v973_v16, %v968_v37  ;;  %467 = vadd.xlane.f32.xlu0 %v267_v27  ;;  %v1018_v37 = vadd.s32 4294967232, %v4741_v23  ;;  %v7712_v16 = vld [vmem:[#allocation71_spill] sm:$0xff] }
 0x1d8   :  { %v982_v35 = vsel %vm981_vm1, %v980_v30, %v975_v59  ;;  %v332_v13 = vpop.xlane.xlu0 %331  ;;  %477 = vadd.xlane.f32.xlu1 %v272_v48  ;;  %v271_v59 = vmul.f32 %v4714_v19, %v7712_v16  ;;  %v4814_v48 = vsub.s32 %v1025_v31, %v4750_v61  ;;  %v7714_v31 = vld [vmem:[#allocation79_spill] sm:$0xff] }
 0x1d9   :  { %v989_v34 = vsel %vm988_vm2, %v987_v25, %v982_v35  ;;  %v994_v54 = vrot.slane %v332_v13, %v4783_v55  ;;  %v342_v27 = vpop.xlane.xlu1 %341  ;;  %v1015_v25 = vrot.slane %v338_v21, %v4796_v33  ;;  %v1039_v13 = vadd.s32 4294967208, %v4741_v23 }
 0x1da   :  { %v4820_v47 = vsub.s32 %v1018_v37, %v4750_v61  ;;  %v273_v16 = vmul.f32 %v4714_v19, %v7714_v31 }
 0x1db   :  { %v996_v30 = vsel %vm995_vm3, %v994_v54, %v989_v34  ;;  %471 = vadd.xlane.f32.xlu0 %v269_v38  ;;  %v1032_v54 = vadd.s32 4294967216, %v4741_v23  ;;  %v7713_v34 = vld [vmem:[#allocation34_spill] sm:$0xff] }
 0x1dc   :  { %v1003_v5 = vsel %vm1002_vm4, %v1001_v36, %v996_v30  ;;  %v336_v35 = vpop.xlane.xlu0 %335  ;;  %481 = vadd.xlane.f32.xlu1 %v274_v8  ;;  %v278_v21 = vmul.f32 %v4714_v19, %v7713_v34  ;;  %v1029_v30 = vrot.slane %v342_v27, %v4814_v48  ;;  %v4830_v8 = vsub.s32 %v1039_v13, %v4750_v61  ;;  %v7716_v13 = vld [vmem:[#allocation42_spill] sm:$0xff] }
 0x1dd   :  { %v1008_v49 = vrot.slane %v336_v35, %v4804_v26  ;;  %v346_v38 = vpop.xlane.xlu1 %345  ;;  %v4836_v34 = vsub.s32 %v1032_v54, %v4750_v61  ;;  %v280_v31 = vmul.f32 %v4714_v19, %v7716_v13  ;;  %v4860_v13 = vsub.s32 %v1067_v1, %v4750_v61 }
 0x1df   :  { %v1010_v36 = vsel %vm1009_vm5, %v1008_v49, %v1003_v5  ;;  %475 = vadd.xlane.f32.xlu0 %v271_v59  ;;  %v1046_v49 = vadd.s32 4294967200, %v4741_v23  ;;  %v7715_v5 = vld [vmem:[#allocation22_spill] sm:$0xff] }
 0x1e0   :  { %v1017_v37 = vsel %vm1016_vm6, %v1015_v25, %v1010_v36  ;;  %v340_v35 = vpop.xlane.xlu0 %339  ;;  %485 = vadd.xlane.f32.xlu1 %v276_v10  ;;  %v275_v27 = vmul.f32 %v4714_v19, %v7715_v5  ;;  %v1043_v36 = vrot.slane %v346_v38, %v4830_v8  ;;  %v4846_v10 = vsub.s32 %v1053_v12, %v4750_v61 }
 0x1e1   :  { %v1022_v43 = vrot.slane %v340_v35, %v4820_v47  ;;  %v350_v59 = vpop.xlane.xlu1 %349  ;;  %v4852_v5 = vsub.s32 %v1046_v49, %v4750_v61  ;;  %v7718_v49 = vld [vmem:[#allocation50_spill] sm:$0xff] }
 0x1e3   :  { %v1024_v25 = vsel %vm1023_vm7, %v1022_v43, %v1017_v37  ;;  %479 = vadd.xlane.f32.xlu0 %v273_v16  ;;  %v1060_v43 = vadd.s32 4294967184, %v4741_v23  ;;  %v7717_v37 = vld [vmem:[#allocation30_spill] sm:$0xff] }
 0x1e4   :  { %v1031_v54 = vsel %vm1030_vm8, %v1029_v30, %v1024_v25  ;;  %v344_v35 = vpop.xlane.xlu0 %343  ;;  %489 = vadd.xlane.f32.xlu1 %v278_v21  ;;  %v277_v38 = vmul.f32 %v4714_v19, %v7717_v37  ;;  %v1057_v30 = vrot.slane %v350_v59, %v4846_v10  ;;  %v7719_v59 = vld [vmem:[#allocation38_spill] sm:$0xff] }
 0x1e5   :  { %v1036_v6 = vrot.slane %v344_v35, %v4836_v34  ;;  %v354_v16 = vpop.xlane.xlu1 %353  ;;  %v282_v35 = vmul.f32 %v4714_v19, %v7718_v49  ;;  %v4867_v37 = vsub.s32 %v1060_v43, %v4750_v61  ;;  %v279_v1 = vmul.f32 %v4714_v19, %v7719_v59  ;;  %v7721_v61 = vld [vmem:[#allocation46_spill] sm:$0xff] }
 0x1e6   :  { %v281_v59 = vmul.f32 %v4714_v19, %v7721_v61  ;;  %v7724_v61 = vld [vmem:[#allocation74_spill] sm:$0xff] }
 0x1e7   :  { %v1038_v12 = vsel %vm1037_vm9, %v1036_v6, %v1031_v54  ;;  %483 = vadd.xlane.f32.xlu0 %v275_v27 }
 0x1e8   :  { %v1045_v21 = vsel %vm1044_vm10, %v1043_v36, %v1038_v12  ;;  %v348_v25 = vpop.xlane.xlu0 %347  ;;  %493 = vadd.xlane.f32.xlu1 %v280_v31  ;;  %v1071_v36 = vrot.slane %v354_v16, %v4860_v13 }
 0x1e9   :  { %v1050_v23 = vrot.slane %v348_v25, %v4852_v5  ;;  %v4869_v6 = vpop.xlane.xlu1 %357  ;;  %v7720_v25 = vld [vmem:[#allocation58_spill] sm:$0xff] }
 0x1ea   :  { %v284_v31 = vmul.f32 %v4714_v19, %v7720_v25 }
 0x1eb   :  { %v1052_v27 = vsel %vm1051_vm11, %v1050_v23, %v1045_v21  ;;  %487 = vadd.xlane.f32.xlu0 %v277_v38  ;;  %v7722_v21 = vld [vmem:[#allocation66_spill] sm:$0xff] }
 0x1ec   :  { %v1059_v54 = vsel %vm1058_vm12, %v1057_v30, %v1052_v27  ;;  %v352_v12 = vpop.xlane.xlu0 %351  ;;  %497 = vadd.xlane.f32.xlu1 %v282_v35  ;;  %v286_v23 = vmul.f32 %v4714_v19, %v7722_v21  ;;  %v7723_v35 = vld [vmem:[#allocation54_spill] sm:$0xff] }
 0x1ed   :  { %v1064_v43 = vrot.slane %v352_v12, %v4867_v37  ;;  %v4879_v49 = vpop.xlane.xlu1 %361  ;;  %v283_v12 = vmul.f32 %v4714_v19, %v7723_v35  ;;  %v4907_v35 = vld [vmem:[#allocation4 + $0x3] ss:$0 sm:$0xff] }
 0x1ee   :  { %v294_v46 = vmul.f32 %v4907_v35, %v7730_v20 }
 0x1ef   :  { %v1066_v38 = vsel %vm1065_vm13, %v1064_v43, %v1059_v54  ;;  %491 = vadd.xlane.f32.xlu0 %v279_v1  ;;  %v288_v1 = vmul.f32 %v4714_v19, %v7724_v61  ;;  %v7725_v54 = vld [vmem:[#allocation62_spill] sm:$0xff]  ;;  %v287_v61 = vmul.f32 %v4714_v19, %v7727_v14 }
 0x1f0   :  { %v4885_v16 = vsel %vm1072_vm14, %v1071_v36, %v1066_v38  ;;  %v4887_v30 = vpop.xlane.xlu0 %355  ;;  %501 = vadd.xlane.f32.xlu1 %v284_v31  ;;  %v285_v43 = vmul.f32 %v4714_v19, %v7725_v54  ;;  %v7726_v31 = vld [vmem:[#allocation82_spill] sm:$0xff]  ;;  %v292_v54 = vmul.f32 %v4907_v35, %v7728_v44 }
 0x1f1   :  { %v4891_v27 = vpop.xlane.xlu1 %365  ;;  %v290_v21 = vmul.f32 %v4714_v19, %v7726_v31  ;;  %v289_v31 = vmul.f32 %v4714_v19, %v7729_v42  ;;  %v7733_v19 = vld [vmem:[#allocation93_spill] sm:$0xff] }
 0x1f3   :  { %495 = vadd.xlane.f32.xlu0 %v281_v59 }
 0x1f4   :  { %v4895_v25 = vpop.xlane.xlu0 %359  ;;  %505 = vadd.xlane.f32.xlu1 %v286_v23 }
 0x1f5   :  { %v4899_v36 = vpop.xlane.xlu1 %369 }
 0x1f7   :  { %499 = vadd.xlane.f32.xlu0 %v283_v12 }
 0x1f8   :  { %v4903_v38 = vpop.xlane.xlu0 %363  ;;  %509 = vadd.xlane.f32.xlu1 %v288_v1 }
 0x1f9   :  { %v4909_v59 = vpop.xlane.xlu1 %373 }
 0x1fb   :  { %503 = vadd.xlane.f32.xlu0 %v285_v43  ;;  %v7731_v43 = vld [vmem:[#allocation86_spill] sm:$0xff] }
 0x1fc   :  { %v4913_v23 = vpop.xlane.xlu0 %367  ;;  %513 = vadd.xlane.f32.xlu1 %v290_v21  ;;  %v291_v63 = vmul.f32 %v4907_v35, %v7731_v43  ;;  %v7732_v21 = vld [vmem:[#allocation104_spill] sm:$0xff] }
 0x1fd   :  { %v4917_v12 = vpop.xlane.xlu1 %377  ;;  %v296_v11 = vmul.f32 %v4907_v35, %v7732_v21 }
 0x1ff   :  { %507 = vadd.xlane.f32.xlu0 %v287_v61  ;;  %v293_v61 = vmul.f32 %v4907_v35, %v7733_v19 }
 0x200   :  { %v4921_v1 = vpop.xlane.xlu0 %371  ;;  %517 = vadd.xlane.f32.xlu1 %v292_v54  ;;  %v7734_v54 = vld [vmem:[#allocation111_spill] sm:$0xff] }
 0x201   :  { %v4925_v14 = vpop.xlane.xlu1 %381  ;;  %v298_v50 = vmul.f32 %v4907_v35, %v7734_v54 }
 0x203   :  { %511 = vadd.xlane.f32.xlu0 %v289_v31  ;;  %v7735_v31 = vld [vmem:[#allocation100_spill] sm:$0xff] }
 0x204   :  { %v4929_v44 = vpop.xlane.xlu0 %375  ;;  %521 = vadd.xlane.f32.xlu1 %v294_v46  ;;  %v295_v58 = vmul.f32 %v4907_v35, %v7735_v31  ;;  %v7736_v46 = vld [vmem:[#allocation118_spill] sm:$0xff] }
 0x205   :  { %v4933_v42 = vpop.xlane.xlu1 %385  ;;  %v300_v4 = vmul.f32 %v4907_v35, %v7736_v46 }
 0x207   :  { %515 = vadd.xlane.f32.xlu0 %v291_v63  ;;  %v7737_v63 = vld [vmem:[#allocation107_spill] sm:$0xff] }
 0x208   :  { %v4937_v20 = vpop.xlane.xlu0 %379  ;;  %525 = vadd.xlane.f32.xlu1 %v296_v11  ;;  %v297_v51 = vmul.f32 %v4907_v35, %v7737_v63  ;;  %v7738_v11 = vld [vmem:[#allocation125_spill] sm:$0xff] }
 0x209   :  { %v4941_v43 = vpop.xlane.xlu1 %389  ;;  %v302_v52 = vmul.f32 %v4907_v35, %v7738_v11  ;;  %v1077_v11 = vrot.slane %v4887_v30, %v4766_v57 }
 0x20b   :  { %519 = vadd.xlane.f32.xlu0 %v293_v61  ;;  %v7739_v61 = vld [vmem:[#allocation114_spill] sm:$0xff] }
 0x20c   :  { %v4945_v21 = vpop.xlane.xlu0 %383  ;;  %529 = vadd.xlane.f32.xlu1 %v298_v50  ;;  %v299_v53 = vmul.f32 %v4907_v35, %v7739_v61  ;;  %v7740_v50 = vld [vmem:[#allocation132_spill] sm:$0xff] }
 0x20d   :  { %v4949_v19 = vpop.xlane.xlu1 %393  ;;  %v304_v60 = vmul.f32 %v4907_v35, %v7740_v50 }
 0x20f   :  { %523 = vadd.xlane.f32.xlu0 %v295_v58  ;;  %v7741_v58 = vld [vmem:[#allocation121_spill] sm:$0xff] }
 0x210   :  { %v4953_v54 = vpop.xlane.xlu0 %387  ;;  %533 = vadd.xlane.f32.xlu1 %v300_v4  ;;  %v301_v45 = vmul.f32 %v4907_v35, %v7741_v58  ;;  %v1081_v4 = vrot.slane %v4869_v6, %v4769_v2  ;;  %v1091_v6 = vrot.slane %v4879_v49, %v4762_v40  ;;  %v1101_v49 = vrot.slane %v4891_v27, %v4780_v24 }
 0x211   :  { %v4957_v31 = vpop.xlane.xlu1 %397 }
 0x212   :  { %v1082_v30 = vsel %vm974_vm0, %v1081_v4, %v1077_v11 }
 0x213   :  { %527 = vadd.xlane.f32.xlu0 %v297_v51  ;;  %v7742_v51 = vld [vmem:[#allocation139_spill] sm:$0xff] }
 0x214   :  { %v4961_v46 = vpop.xlane.xlu0 %391  ;;  %537 = vadd.xlane.f32.xlu1 %v302_v52  ;;  %v306_v39 = vmul.f32 %v4907_v35, %v7742_v51  ;;  %v1086_v52 = vrot.slane %v4895_v25, %v4772_v0  ;;  %v308_v51 = vmul.f32 %v4907_v35, %v7744_v3  ;;  %v7746_v3 = vld [vmem:[#allocation96_spill] sm:$0xff] }
 0x215   :  { %v4965_v63 = vpop.xlane.xlu1 %401 }
 0x216   :  { %v1087_v41 = vsel %vm981_vm1, %v1086_v52, %v1082_v30  ;;  %v310_v52 = vmul.f32 %v4907_v35, %v7746_v3  ;;  %v7747_v3 = vld [vmem:[#allocation103_spill] sm:$0xff] }
 0x217   :  { %531 = vadd.xlane.f32.xlu0 %v299_v53  ;;  %v303_v53 = vmul.f32 %v4907_v35, %v7743_v56  ;;  %v7745_v56 = vld [vmem:[#allocation135_spill] sm:$0xff]  ;;  %v1092_v4 = vsel %vm988_vm2, %v1091_v6, %v1087_v41  ;;  %v1111_v41 = vrot.slane %v4899_v36, %v4796_v33  ;;  %v1121_v36 = vrot.slane %v4909_v59, %v4814_v48 }
 0x218   :  { %v4973_v61 = vpop.xlane.xlu0 %395  ;;  %541 = vadd.xlane.f32.xlu1 %v304_v60  ;;  %v1096_v60 = vrot.slane %v4903_v38, %v4783_v55  ;;  %v1131_v59 = vrot.slane %v4917_v12, %v4830_v8 }
 0x219   :  { %v4979_v50 = vpop.xlane.xlu1 %405 }
 0x21a   :  { %v1097_v30 = vsel %vm995_vm3, %v1096_v60, %v1092_v4  ;;  %v312_v60 = vmul.f32 %v4907_v35, %v7747_v3  ;;  %v7748_v3 = vld [vmem:[#allocation110_spill] sm:$0xff] }
 0x21b   :  { %535 = vadd.xlane.f32.xlu0 %v301_v45  ;;  %v305_v45 = vmul.f32 %v4907_v35, %v7745_v56  ;;  %v3901_v56 = vld [vmem:[#allocation2 + $0x380] sm:$0xff]  ;;  %v1102_v27 = vsel %vm1002_vm4, %v1101_v49, %v1097_v30 }
 0x21c   :  { %v4986_v58 = vpop.xlane.xlu0 %399  ;;  %545 = vadd.xlane.f32.xlu1 %v306_v39  ;;  %v1106_v39 = vrot.slane %v4913_v23, %v4804_v26  ;;  %v1116_v23 = vrot.slane %v4921_v1, %v4820_v47  ;;  %v1126_v1 = vrot.slane %v4929_v44, %v4836_v34  ;;  %v1136_v44 = vrot.slane %v4937_v20, %v4852_v5 }
 0x21d   :  { %v4993_v25 = vpop.xlane.xlu1 %409 }
 0x21e   :  { %v1107_v4 = vsel %vm1009_vm5, %v1106_v39, %v1102_v27  ;;  %v314_v39 = vmul.f32 %v4907_v35, %v7748_v3 }
 0x21f   :  { %539 = vadd.xlane.f32.xlu0 %v303_v53  ;;  %v307_v53 = vmul.f32 %v3901_v56, %v4907_v35  ;;  %v3902_v56 = vld [vmem:[#allocation2 + $0x390] sm:$0xff]  ;;  %v1112_v49 = vsel %vm1016_vm6, %v1111_v41, %v1107_v4 }
 0x220   :  { %v5000_v11 = vpop.xlane.xlu0 %403  ;;  %549 = vadd.xlane.f32.xlu1 %v308_v51  ;;  %v1117_v27 = vsel %vm1023_vm7, %v1116_v23, %v1112_v49  ;;  %v1165_v49 = vrot.slane %v4961_v46, %v4772_v0 }
 0x221   :  { %v5007_v38 = vpop.xlane.xlu1 %413  ;;  %v1122_v41 = vsel %vm1030_vm8, %v1121_v36, %v1117_v27  ;;  %v1141_v27 = vrot.slane %v4925_v14, %v4846_v10 }
 0x222   :  { %v1127_v23 = vsel %vm1037_vm9, %v1126_v1, %v1122_v41  ;;  %v7750_v1 = vld [vmem:[#allocation124_spill] sm:$0xff] }
 0x223   :  { %543 = vadd.xlane.f32.xlu0 %v305_v45  ;;  %v309_v45 = vmul.f32 %v3902_v56, %v4907_v35  ;;  %v7749_v56 = vld [vmem:[#allocation117_spill] sm:$0xff]  ;;  %v1132_v20 = vsel %vm1044_vm10, %v1131_v59, %v1127_v23  ;;  %v3905_v23 = vld [vmem:[#allocation2 + $0x3c0] sm:$0xff] }
 0x224   :  { %v5013_v6 = vpop.xlane.xlu0 %407  ;;  %553 = vadd.xlane.f32.xlu1 %v310_v52  ;;  %v316_v3 = vmul.f32 %v4907_v35, %v7749_v56  ;;  %v1137_v41 = vsel %vm1051_vm11, %v1136_v44, %v1132_v20  ;;  %v1170_v56 = vrot.slane %v4949_v19, %v4762_v40  ;;  %v1175_v44 = vrot.slane %v4973_v61, %v4783_v55 }
 0x225   :  { %v5020_v51 = vpop.xlane.xlu1 %417  ;;  %v1142_v19 = vsel %vm1058_vm12, %v1141_v27, %v1137_v41  ;;  %v3906_v27 = vld [vmem:[#allocation2 + $0x3d0] sm:$0xff] }
 0x226   :  { %v317_v41 = vmul.f32 %v3906_v27, %v4907_v35 }
 0x227   :  { %547 = vadd.xlane.f32.xlu0 %v307_v53  ;;  %v311_v53 = vmul.f32 %v3903_v32, %v4907_v35  ;;  %v1160_v32 = vrot.slane %v4941_v43, %v4769_v2  ;;  %v318_v43 = vmul.f32 %v4907_v35, %v7750_v1 }
 0x228   :  { %v5026_v30 = vpop.xlane.xlu0 %411  ;;  %557 = vadd.xlane.f32.xlu1 %v312_v60  ;;  %v1156_v60 = vrot.slane %v4953_v54, %v4766_v57  ;;  %v1146_v54 = vrot.slane %v4945_v21, %v4867_v37  ;;  %v1151_v21 = vrot.slane %v4933_v42, %v4860_v13 }
 0x229   :  { %v422_v52 = vpop.xlane.xlu1 %421 }
 0x22a   :  { %v1161_v46 = vsel %vm974_vm0, %v1160_v32, %v1156_v60  ;;  %v7751_v32 = vld [vmem:[#allocation131_spill] sm:$0xff]  ;;  %v1147_v60 = vsel %vm1065_vm13, %v1146_v54, %v1142_v19  ;;  %v1185_v54 = vrot.slane %v4986_v58, %v4804_v26 }
 0x22b   :  { %551 = vadd.xlane.f32.xlu0 %v309_v45  ;;  %v3904_v45 = vld [vmem:[#allocation2 + $0x3b0] sm:$0xff]  ;;  %v1166_v1 = vsel %vm981_vm1, %v1165_v49, %v1161_v46  ;;  %v1180_v49 = vrot.slane %v4957_v31, %v4780_v24  ;;  %v5086_v31 = vsel %vm1072_vm14, %v1151_v21, %v1147_v60 }
 0x22c   :  { %v5037_v4 = vpop.xlane.xlu0 %415  ;;  %561 = vadd.xlane.f32.xlu1 %v314_v39  ;;  %v313_v36 = vmul.f32 %v3904_v45, %v4907_v35  ;;  %v315_v45 = vmul.f32 %v3905_v23, %v4907_v35  ;;  %v1171_v61 = vsel %vm988_vm2, %v1170_v56, %v1166_v1  ;;  %v3907_v23 = vld [vmem:[#allocation2 + $0x3e0] sm:$0xff] }
 0x22d   :  { %v426_v12 = vpop.xlane.xlu1 %425  ;;  %v1176_v46 = vsel %vm995_vm3, %v1175_v44, %v1171_v61  ;;  %v1190_v44 = vrot.slane %v4965_v63, %v4796_v33  ;;  %v3908_v61 = vld [vmem:[#allocation2 + $0x3f0] sm:$0xff] }
 0x22e   :  { %v1181_v58 = vsel %vm1002_vm4, %v1180_v49, %v1176_v46  ;;  %v321_v49 = vmul.f32 %v3908_v61, %v4907_v35 }
 0x22f   :  { %555 = vadd.xlane.f32.xlu0 %v311_v53  ;;  %v1239_v53 = vrot.slane %v422_v52, %v4769_v2  ;;  %v320_v52 = vmul.f32 %v4907_v35, %v7751_v32  ;;  %v1195_v32 = vrot.slane %v5000_v11, %v4820_v47  ;;  %v1200_v11 = vrot.slane %v4979_v50, %v4814_v48 }
 0x230   :  { %v420_v39 = vpop.xlane.xlu0 %419  ;;  %565 = vadd.xlane.f32.xlu1 %v316_v3 }
 0x231   :  { %v1235_v14 = vrot.slane %v420_v39, %v4766_v57  ;;  %v430_v59 = vpop.xlane.xlu1 %429 }
 0x233   :  { %559 = vadd.xlane.f32.xlu0 %v313_v36  ;;  %v1249_v36 = vrot.slane %v426_v12, %v4762_v40  ;;  %v1240_v42 = vsel %vm974_vm0, %v1239_v53, %v1235_v14  ;;  %v319_v12 = vmul.f32 %v3907_v23, %v4907_v35  ;;  %v7752_v53 = vld [vmem:[#allocation138_spill] sm:$0xff] }
 0x234   :  { %v424_v3 = vpop.xlane.xlu0 %423  ;;  %569 = vadd.xlane.f32.xlu1 %v318_v43  ;;  %v322_v14 = vmul.f32 %v4907_v35, %v7752_v53  ;;  %v1205_v35 = vrot.slane %v5013_v6, %v4836_v34 }
 0x235   :  { %v1244_v20 = vrot.slane %v424_v3, %v4772_v0  ;;  %v434_v39 = vpop.xlane.xlu1 %433  ;;  %v1186_v3 = vsel %vm1009_vm5, %v1185_v54, %v1181_v58 }
 0x236   :  { %v1191_v27 = vsel %vm1016_vm6, %v1190_v44, %v1186_v3 }
 0x237   :  { %v1245_v43 = vsel %vm981_vm1, %v1244_v20, %v1240_v42  ;;  %563 = vadd.xlane.f32.xlu0 %v315_v45  ;;  %v1259_v45 = vrot.slane %v430_v59, %v4780_v24  ;;  %v7753_v20 = vld [vmem:[#allocation24_spill] sm:$0xff] }
 0x238   :  { %v428_v56 = vpop.xlane.xlu0 %427  ;;  %573 = vadd.xlane.f32.xlu1 %v320_v52  ;;  %v1250_v21 = vsel %vm988_vm2, %v1249_v36, %v1245_v43  ;;  %v5103_v52 = vmul.f32 %v5086_v31, %v7753_v20  ;;  %v7755_v36 = vld [vmem:[#allocation25_spill] sm:$0xff]  ;;  %v1196_v43 = vsel %vm1023_vm7, %v1195_v32, %v1191_v27 }
 0x239   :  { %v1254_v1 = vrot.slane %v428_v56, %v4783_v55  ;;  %v438_v19 = vpop.xlane.xlu1 %437  ;;  %v5109_v42 = vmul.f32 %v4885_v16, %v7755_v36  ;;  %v1201_v44 = vsel %vm1030_vm8, %v1200_v11, %v1196_v43  ;;  %v7759_v32 = vld [vmem:[#allocation21_spill] sm:$0xff]  ;;  %v1225_v11 = vrot.slane %v5037_v4, %v4867_v37 }
 0x23a   :  { %7754 = vst [vmem:[#allocation18_spill] sm:$0xff] %v5103_v52  ;;  %v1279_v6 = vrot.slane %v438_v19, %v4814_v48 }
 0x23b   :  { %v1255_v60 = vsel %vm995_vm3, %v1254_v1, %v1250_v21  ;;  %567 = vadd.xlane.f32.xlu0 %v317_v41  ;;  %7756 = vst [vmem:[#allocation35_spill] sm:$0xff] %v5109_v42  ;;  %v1269_v41 = vrot.slane %v434_v39, %v4796_v33  ;;  %v1820_v23 = vmax.f32 %v5109_v42, %v5103_v52 }
 0x23c   :  { %v432_v63 = vpop.xlane.xlu0 %431  ;;  %577 = vadd.xlane.f32.xlu1 %v322_v14  ;;  %v1260_v46 = vsel %vm1002_vm4, %v1259_v45, %v1255_v60  ;;  %v7757_v14 = vld [vmem:[#allocation20_spill] sm:$0xff]  ;;  %v1210_v1 = vrot.slane %v4993_v25, %v4830_v8  ;;  %v1206_v45 = vsel %vm1037_vm9, %v1205_v35, %v1201_v44  ;;  %v1215_v21 = vrot.slane %v5026_v30, %v4852_v5 }
 0x23d   :  { %v1264_v59 = vrot.slane %v432_v63, %v4804_v26  ;;  %v442_v54 = vpop.xlane.xlu1 %441  ;;  %v5125_v39 = vmul.f32 %v5086_v31, %v7757_v14  ;;  %v5138_v60 = vmul.f32 %v4885_v16, %v7759_v32  ;;  %v1220_v63 = vrot.slane %v5007_v38, %v4846_v10 }
 0x23e   :  { %v1211_v61 = vsel %vm1044_vm10, %v1210_v1, %v1206_v45  ;;  %v1289_v30 = vrot.slane %v442_v54, %v4830_v8  ;;  %v1230_v38 = vrot.slane %v5020_v51, %v4860_v13  ;;  %v7761_v45 = vld [vmem:[#allocation88_spill] sm:$0xff] }
 0x23f   :  { %v1265_v56 = vsel %vm1009_vm5, %v1264_v59, %v1260_v46  ;;  %571 = vadd.xlane.f32.xlu0 %v319_v12  ;;  %7758 = vst [vmem:[#allocation23_spill] sm:$0xff] %v5125_v39  ;;  %7760 = vst [vmem:[#allocation43_spill] sm:$0xff] %v5138_v60  ;;  %v1817_v19 = vmax.f32 %v5138_v60, %v5125_v39  ;;  %v1216_v36 = vsel %vm1051_vm11, %v1215_v21, %v1211_v61 }
 0x240   :  { %v436_v53 = vpop.xlane.xlu0 %435  ;;  %1821 = vmax.xlane.f32.xlu1 %v1820_v23  ;;  %v1270_v12 = vsel %vm1016_vm6, %v1269_v41, %v1265_v56  ;;  %v1221_v43 = vsel %vm1058_vm12, %v1220_v63, %v1216_v36 }
 0x241   :  { %v1274_v50 = vrot.slane %v436_v53, %v4820_v47  ;;  %v446_v58 = vpop.xlane.xlu1 %445  ;;  %v1226_v23 = vsel %vm1065_vm13, %v1225_v11, %v1221_v43 }
 0x242   :  { %v1299_v54 = vrot.slane %v446_v58, %v4846_v10  ;;  %v5163_v1 = vsel %vm1072_vm14, %v1230_v38, %v1226_v23 }
 0x243   :  { %v1275_v3 = vsel %vm1023_vm7, %v1274_v50, %v1270_v12  ;;  %575 = vadd.xlane.f32.xlu0 %v321_v49  ;;  %v5172_v21 = vmul.f32 %v5163_v1, %v7761_v45 }
 0x244   :  { %v440_v25 = vpop.xlane.xlu0 %439  ;;  %v1280_v59 = vsel %vm1030_vm8, %v1279_v6, %v1275_v3  ;;  %v7763_v3 = vld [vmem:[#allocation87_spill] sm:$0xff] }
 0x245   :  { %v1284_v20 = vrot.slane %v440_v25, %v4836_v34  ;;  %v450_v49 = vpop.xlane.xlu1 %449  ;;  %7762 = vst [vmem:[#allocation31_spill] sm:$0xff] %v5172_v21  ;;  %v7765_v25 = vld [vmem:[#allocation85_spill] sm:$0xff] }
 0x246   :  { %v1309_v53 = vrot.slane %v450_v49, %v4860_v13 }
 0x247   :  { %v1285_v27 = vsel %vm1037_vm9, %v1284_v20, %v1280_v59  ;;  %1818 = vmax.xlane.f32.xlu0 %v1817_v19  ;;  %v5180_v20 = vmul.f32 %v5163_v1, %v7765_v25  ;;  %v7767_v19 = vld [vmem:[#allocation84_spill] sm:$0xff] }
 0x248   :  { %v444_v41 = vpop.xlane.xlu0 %443  ;;  %v1290_v35 = vsel %vm1044_vm10, %v1289_v30, %v1285_v27 }
 0x249   :  { %v1294_v46 = vrot.slane %v444_v41, %v4852_v5  ;;  %v454_v56 = vpop.xlane.xlu1 %453  ;;  %7766 = vst [vmem:[#allocation39_spill] sm:$0xff] %v5180_v20 }
 0x24b   :  { %v1295_v4 = vsel %vm1051_vm11, %v1294_v46, %v1290_v35 }
 0x24c   :  { %v448_v50 = vpop.xlane.xlu0 %447  ;;  %v1300_v51 = vsel %vm1058_vm12, %v1299_v54, %v1295_v4 }
 0x24d   :  { %v1304_v14 = vrot.slane %v448_v50, %v4867_v37  ;;  %v458_v44 = vpop.xlane.xlu1 %457  ;;  %v1318_v50 = vrot.slane %v454_v56, %v4769_v2 }
 0x24f   :  { %v1305_v6 = vsel %vm1065_vm13, %v1304_v14, %v1300_v51 }
 0x250   :  { %v5168_v12 = vsel %vm1072_vm14, %v1309_v53, %v1305_v6  ;;  %v452_v58 = vpop.xlane.xlu0 %451 }
 0x251   :  { %v5176_v32 = vmul.f32 %v5168_v12, %v7763_v3  ;;  %v5184_v63 = vmul.f32 %v5168_v12, %v7767_v19  ;;  %v462_v61 = vpop.xlane.xlu1 %461  ;;  %v1314_v14 = vrot.slane %v452_v58, %v4766_v57  ;;  %v1328_v3 = vrot.slane %v458_v44, %v4762_v40 }
 0x253   :  { %7764 = vst [vmem:[#allocation51_spill] sm:$0xff] %v5176_v32  ;;  %7768 = vst [vmem:[#allocation59_spill] sm:$0xff] %v5184_v63  ;;  %v1868_v30 = vmax.f32 %v5172_v21, %v5176_v32  ;;  %v1865_v59 = vmax.f32 %v5180_v20, %v5184_v63  ;;  %v1319_v25 = vsel %vm974_vm0, %v1318_v50, %v1314_v14 }
 0x254   :  { %v456_v49 = vpop.xlane.xlu0 %455  ;;  %v1338_v32 = vrot.slane %v462_v61, %v4780_v24 }
 0x255   :  { %1869 = vmax.xlane.f32.xlu1 %v1868_v30  ;;  %1866 = vmax.xlane.f32.xlu0 %v1865_v59  ;;  %v466_v36 = vpop.xlane.xlu1 %465  ;;  %v1323_v6 = vrot.slane %v456_v49, %v4772_v0 }
 0x257   :  { %v1324_v63 = vsel %vm981_vm1, %v1323_v6, %v1319_v25 }
 0x258   :  { %v460_v11 = vpop.xlane.xlu0 %459  ;;  %v1329_v49 = vsel %vm988_vm2, %v1328_v3, %v1324_v63 }
 0x259   :  { %v470_v27 = vpop.xlane.xlu1 %469  ;;  %v1333_v20 = vrot.slane %v460_v11, %v4783_v55 }
 0x25c   :  { %v464_v41 = vpop.xlane.xlu0 %463 }
 0x25d   :  { %v5190_v46 = vpop.xlane.xlu1 %473 }
 0x260   :  { %v468_v38 = vpop.xlane.xlu0 %467 }
 0x261   :  { %v5192_v43 = vpop.xlane.xlu1 %477 }
 0x264   :  { %v472_v54 = vpop.xlane.xlu0 %471 }
 0x265   :  { %v5194_v35 = vpop.xlane.xlu1 %481 }
 0x268   :  { %v5196_v23 = vpop.xlane.xlu0 %475 }
 0x269   :  { %v486_v4 = vpop.xlane.xlu1 %485 }
 0x26a   :  { %v1397_v19 = vrot.slane %v486_v4, %v4769_v2  ;;  %v1334_v4 = vsel %vm995_vm3, %v1333_v20, %v1329_v49  ;;  %v1353_v20 = vrot.slane %v468_v38, %v4820_v47  ;;  %v1358_v49 = vrot.slane %v470_v27, %v4814_v48 }
 0x26b   :  { %v1339_v61 = vsel %vm1002_vm4, %v1338_v32, %v1334_v4  ;;  %v1363_v4 = vrot.slane %v472_v54, %v4836_v34  ;;  %v1373_v54 = vrot.slane %v5196_v23, %v4852_v5 }
 0x26c   :  { %v5198_v53 = vpop.xlane.xlu0 %479 }
 0x26d   :  { %v490_v51 = vpop.xlane.xlu1 %489  ;;  %v1383_v23 = vrot.slane %v5198_v53, %v4867_v37 }
 0x26e   :  { %v1407_v44 = vrot.slane %v490_v51, %v4762_v40 }
 0x270   :  { %v484_v45 = vpop.xlane.xlu0 %483 }
 0x271   :  { %v1393_v30 = vrot.slane %v484_v45, %v4766_v57  ;;  %v494_v59 = vpop.xlane.xlu1 %493  ;;  %v1343_v45 = vrot.slane %v464_v41, %v4804_v26 }
 0x272   :  { %v1417_v63 = vrot.slane %v494_v59, %v4780_v24 }
 0x273   :  { %v1398_v50 = vsel %vm974_vm0, %v1397_v19, %v1393_v30  ;;  %v1344_v19 = vsel %vm1009_vm5, %v1343_v45, %v1339_v61 }
 0x274   :  { %v488_v56 = vpop.xlane.xlu0 %487 }
 0x275   :  { %v1402_v58 = vrot.slane %v488_v56, %v4772_v0  ;;  %v498_v14 = vpop.xlane.xlu1 %497  ;;  %v1348_v56 = vrot.slane %v466_v36, %v4796_v33 }
 0x276   :  { %v1427_v32 = vrot.slane %v498_v14, %v4796_v33 }
 0x277   :  { %v1403_v6 = vsel %vm981_vm1, %v1402_v58, %v1398_v50  ;;  %v1349_v36 = vsel %vm1016_vm6, %v1348_v56, %v1344_v19 }
 0x278   :  { %v492_v25 = vpop.xlane.xlu0 %491  ;;  %v1408_v51 = vsel %vm988_vm2, %v1407_v44, %v1403_v6  ;;  %v1354_v44 = vsel %vm1023_vm7, %v1353_v20, %v1349_v36 }
 0x279   :  { %v1412_v11 = vrot.slane %v492_v25, %v4783_v55  ;;  %v502_v3 = vpop.xlane.xlu1 %501  ;;  %v1368_v25 = vrot.slane %v5190_v46, %v4830_v8  ;;  %v1359_v27 = vsel %vm1030_vm8, %v1358_v49, %v1354_v44  ;;  %v1378_v46 = vrot.slane %v5192_v43, %v4846_v10 }
 0x27a   :  { %v1364_v61 = vsel %vm1037_vm9, %v1363_v4, %v1359_v27  ;;  %v1388_v43 = vrot.slane %v5194_v35, %v4860_v13 }
 0x27b   :  { %v1413_v41 = vsel %vm995_vm3, %v1412_v11, %v1408_v51  ;;  %v1437_v11 = vrot.slane %v502_v3, %v4814_v48  ;;  %v1369_v20 = vsel %vm1044_vm10, %v1368_v25, %v1364_v61 }
 0x27c   :  { %v496_v30 = vpop.xlane.xlu0 %495  ;;  %v1418_v59 = vsel %vm1002_vm4, %v1417_v63, %v1413_v41 }
 0x27d   :  { %v1422_v58 = vrot.slane %v496_v30, %v4804_v26  ;;  %v506_v50 = vpop.xlane.xlu1 %505 }
 0x27e   :  { %v1447_v3 = vrot.slane %v506_v50, %v4830_v8 }
 0x27f   :  { %v1423_v38 = vsel %vm1009_vm5, %v1422_v58, %v1418_v59  ;;  %v1374_v58 = vsel %vm1051_vm11, %v1373_v54, %v1369_v20  ;;  %v7769_v54 = vld [vmem:[#allocation143_spill] sm:$0xff] }
 0x280   :  { %v500_v45 = vpop.xlane.xlu0 %499  ;;  %v1428_v14 = vsel %vm1016_vm6, %v1427_v32, %v1423_v38  ;;  %v1379_v59 = vsel %vm1058_vm12, %v1378_v46, %v1374_v58  ;;  %v7773_v46 = vld [vmem:[#allocation141_spill] sm:$0xff] }
 0x281   :  { %v1432_v6 = vrot.slane %v500_v45, %v4820_v47  ;;  %v510_v56 = vpop.xlane.xlu1 %509  ;;  %v1384_v38 = vsel %vm1065_vm13, %v1383_v23, %v1379_v59 }
 0x282   :  { %v1457_v50 = vrot.slane %v510_v56, %v4846_v10  ;;  %v5264_v27 = vsel %vm1072_vm14, %v1388_v43, %v1384_v38 }
 0x283   :  { %v1433_v63 = vsel %vm1023_vm7, %v1432_v6, %v1428_v14  ;;  %v5281_v20 = vmul.f32 %v5264_v27, %v7773_v46 }
 0x284   :  { %v504_v51 = vpop.xlane.xlu0 %503  ;;  %v1438_v41 = vsel %vm1030_vm8, %v1437_v11, %v1433_v63  ;;  %v5273_v63 = vmul.f32 %v5264_v27, %v7769_v54 }
 0x285   :  { %v1442_v19 = vrot.slane %v504_v51, %v4836_v34  ;;  %v514_v30 = vpop.xlane.xlu1 %513  ;;  %v7771_v51 = vld [vmem:[#allocation142_spill] sm:$0xff]  ;;  %7774 = vst [vmem:[#allocation55_spill] sm:$0xff] %v5281_v20 }
 0x286   :  { %v1467_v53 = vrot.slane %v514_v30, %v4860_v13  ;;  %7770 = vst [vmem:[#allocation47_spill] sm:$0xff] %v5273_v63 }
 0x287   :  { %v1443_v49 = vsel %vm1037_vm9, %v1442_v19, %v1438_v41 }
 0x288   :  { %v508_v36 = vpop.xlane.xlu0 %507  ;;  %v1448_v44 = vsel %vm1044_vm10, %v1447_v3, %v1443_v49  ;;  %v7775_v3 = vld [vmem:[#allocation140_spill] sm:$0xff] }
 0x289   :  { %v1452_v32 = vrot.slane %v508_v36, %v4852_v5  ;;  %v518_v4 = vpop.xlane.xlu1 %517 }
 0x28b   :  { %v1453_v45 = vsel %vm1051_vm11, %v1452_v32, %v1448_v44 }
 0x28c   :  { %v512_v6 = vpop.xlane.xlu0 %511  ;;  %v1458_v35 = vsel %vm1058_vm12, %v1457_v50, %v1453_v45 }
 0x28d   :  { %v1462_v25 = vrot.slane %v512_v6, %v4867_v37  ;;  %v522_v11 = vpop.xlane.xlu1 %521 }
 0x28f   :  { %v1463_v14 = vsel %vm1065_vm13, %v1462_v25, %v1458_v35 }
 0x290   :  { %v5269_v56 = vsel %vm1072_vm14, %v1467_v53, %v1463_v14  ;;  %v516_v61 = vpop.xlane.xlu0 %515  ;;  %v1476_v14 = vrot.slane %v518_v4, %v4769_v2 }
 0x291   :  { %v5277_v19 = vmul.f32 %v5269_v56, %v7771_v51  ;;  %v5285_v41 = vmul.f32 %v5269_v56, %v7775_v3  ;;  %v526_v30 = vpop.xlane.xlu1 %525  ;;  %v1472_v54 = vrot.slane %v516_v61, %v4766_v57 }
 0x292   :  { %v1496_v39 = vrot.slane %v526_v30, %v4780_v24 }
 0x293   :  { %7772 = vst [vmem:[#allocation67_spill] sm:$0xff] %v5277_v19  ;;  %7776 = vst [vmem:[#allocation75_spill] sm:$0xff] %v5285_v41  ;;  %v1916_v58 = vmax.f32 %v5273_v63, %v5277_v19  ;;  %v1913_v23 = vmax.f32 %v5281_v20, %v5285_v41 }
 0x294   :  { %v520_v49 = vpop.xlane.xlu0 %519 }
 0x295   :  { %1917 = vmax.xlane.f32.xlu1 %v1916_v58  ;;  %1914 = vmax.xlane.f32.xlu0 %v1913_v23  ;;  %v530_v36 = vpop.xlane.xlu1 %529  ;;  %v1481_v46 = vrot.slane %v520_v49, %v4772_v0  ;;  %v1486_v58 = vrot.slane %v522_v11, %v4762_v40  ;;  %v1477_v23 = vsel %vm974_vm0, %v1476_v14, %v1472_v54 }
 0x297   :  { %v1482_v63 = vsel %vm981_vm1, %v1481_v46, %v1477_v23 }
 0x298   :  { %v524_v32 = vpop.xlane.xlu0 %523  ;;  %v1487_v49 = vsel %vm988_vm2, %v1486_v58, %v1482_v63 }
 0x299   :  { %v534_v43 = vpop.xlane.xlu1 %533  ;;  %v1491_v21 = vrot.slane %v524_v32, %v4783_v55 }
 0x29c   :  { %v528_v59 = vpop.xlane.xlu0 %527 }
 0x29d   :  { %v5291_v50 = vpop.xlane.xlu1 %537 }
 0x2a0   :  { %v532_v44 = vpop.xlane.xlu0 %531 }
 0x2a1   :  { %v5293_v38 = vpop.xlane.xlu1 %541 }
 0x2a4   :  { %v536_v45 = vpop.xlane.xlu0 %535 }
 0x2a5   :  { %v5295_v53 = vpop.xlane.xlu1 %545  ;;  %v1521_v58 = vrot.slane %v536_v45, %v4836_v34 }
 0x2a8   :  { %v5297_v6 = vpop.xlane.xlu0 %539 }
 0x2a9   :  { %v550_v25 = vpop.xlane.xlu1 %549  ;;  %v1531_v45 = vrot.slane %v5297_v6, %v4852_v5 }
 0x2aa   :  { %v1555_v41 = vrot.slane %v550_v25, %v4769_v2  ;;  %v1492_v2 = vsel %vm995_vm3, %v1491_v21, %v1487_v49  ;;  %v1511_v21 = vrot.slane %v532_v44, %v4820_v47 }
 0x2ab   :  { %v1497_v30 = vsel %vm1002_vm4, %v1496_v39, %v1492_v2 }
 0x2ac   :  { %v5299_v35 = vpop.xlane.xlu0 %543 }
 0x2ad   :  { %v554_v51 = vpop.xlane.xlu1 %553  ;;  %v1541_v6 = vrot.slane %v5299_v35, %v4867_v37 }
 0x2ae   :  { %v1565_v11 = vrot.slane %v554_v51, %v4762_v40 }
 0x2b0   :  { %v548_v3 = vpop.xlane.xlu0 %547 }
 0x2b1   :  { %v1551_v20 = vrot.slane %v548_v3, %v4766_v57  ;;  %v558_v19 = vpop.xlane.xlu1 %557  ;;  %v1501_v57 = vrot.slane %v528_v59, %v4804_v26 }
 0x2b2   :  { %v1575_v63 = vrot.slane %v558_v19, %v4780_v24 }
 0x2b3   :  { %v1556_v14 = vsel %vm974_vm0, %v1555_v41, %v1551_v20  ;;  %v1502_v20 = vsel %vm1009_vm5, %v1501_v57, %v1497_v30 }
 0x2b4   :  { %v552_v4 = vpop.xlane.xlu0 %551 }
 0x2b5   :  { %v1560_v61 = vrot.slane %v552_v4, %v4772_v0  ;;  %v562_v54 = vpop.xlane.xlu1 %561  ;;  %v1506_v0 = vrot.slane %v530_v36, %v4796_v33 }
 0x2b6   :  { %v1585_v39 = vrot.slane %v562_v54, %v4796_v33 }
 0x2b7   :  { %v1561_v25 = vsel %vm981_vm1, %v1560_v61, %v1556_v14  ;;  %v1507_v36 = vsel %vm1016_vm6, %v1506_v0, %v1502_v20 }
 0x2b8   :  { %v556_v46 = vpop.xlane.xlu0 %555  ;;  %v1566_v40 = vsel %vm988_vm2, %v1565_v11, %v1561_v25  ;;  %v1512_v19 = vsel %vm1023_vm7, %v1511_v21, %v1507_v36 }
 0x2b9   :  { %v1570_v32 = vrot.slane %v556_v46, %v4783_v55  ;;  %v566_v51 = vpop.xlane.xlu1 %565  ;;  %v1516_v55 = vrot.slane %v534_v43, %v4814_v48 }
 0x2ba   :  { %v1595_v49 = vrot.slane %v566_v51, %v4814_v48 }
 0x2bb   :  { %v1571_v41 = vsel %vm995_vm3, %v1570_v32, %v1566_v40  ;;  %v1517_v43 = vsel %vm1030_vm8, %v1516_v55, %v1512_v19 }
 0x2bc   :  { %v560_v59 = vpop.xlane.xlu0 %559  ;;  %v1576_v24 = vsel %vm1002_vm4, %v1575_v63, %v1571_v41  ;;  %v1522_v11 = vsel %vm1037_vm9, %v1521_v58, %v1517_v43  ;;  %v7782_v58 = vld [vmem:[#allocation29_spill] sm:$0xff] }
 0x2bd   :  { %v1580_v3 = vrot.slane %v560_v59, %v4804_v26  ;;  %v570_v44 = vpop.xlane.xlu1 %569  ;;  %v1526_v26 = vrot.slane %v5291_v50, %v4830_v8  ;;  %v1536_v50 = vrot.slane %v5293_v38, %v4846_v10 }
 0x2be   :  { %v1605_v48 = vrot.slane %v570_v44, %v4830_v8 }
 0x2bf   :  { %v1581_v23 = vsel %vm1009_vm5, %v1580_v3, %v1576_v24  ;;  %v1527_v57 = vsel %vm1044_vm10, %v1526_v26, %v1522_v11  ;;  %v7783_v26 = vld [vmem:[#allocation144_spill] sm:$0xff] }
 0x2c0   :  { %v564_v4 = vpop.xlane.xlu0 %563  ;;  %v1586_v33 = vsel %vm1016_vm6, %v1585_v39, %v1581_v23  ;;  %v1532_v46 = vsel %vm1051_vm11, %v1531_v45, %v1527_v57  ;;  %v5406_v23 = vmul.f32 %v4885_v16, %v7782_v58  ;;  %v5418_v43 = vmul.f32 %v5269_v56, %v7783_v26  ;;  %v7793_v57 = vld [vmem:[#allocation33_spill] sm:$0xff] }
 0x2c1   :  { %v1590_v61 = vrot.slane %v564_v4, %v4820_v47  ;;  %v574_v2 = vpop.xlane.xlu1 %573  ;;  %v1537_v38 = vsel %vm1058_vm12, %v1536_v50, %v1532_v46  ;;  %v7816_v26 = vld [vmem:[#allocation101_spill] sm:$0xff] }
 0x2c2   :  { %v1615_v63 = vrot.slane %v574_v2, %v4846_v10  ;;  %v1542_v40 = vsel %vm1065_vm13, %v1541_v6, %v1537_v38  ;;  %7784 = vst [vmem:[#allocation26_spill] sm:$0xff] %v5418_v43  ;;  %v7789_v2 = vld [vmem:[#allocation32_spill] sm:$0xff] }
 0x2c3   :  { %v1591_v14 = vsel %vm1023_vm7, %v1590_v61, %v1586_v33  ;;  %v7785_v33 = vld [vmem:[#allocation145_spill] sm:$0xff] }
 0x2c4   :  { %v568_v54 = vpop.xlane.xlu0 %567  ;;  %v1596_v25 = vsel %vm1030_vm8, %v1595_v49, %v1591_v14  ;;  %v5426_v11 = vmul.f32 %v5264_v27, %v7785_v33  ;;  %v7787_v14 = vld [vmem:[#allocation94_spill] sm:$0xff]  ;;  %v5514_v33 = vmul.f32 %v5168_v12, %v7816_v26 }
 0x2c5   :  { %v1600_v47 = vrot.slane %v568_v54, %v4836_v34  ;;  %v1546_v34 = vrot.slane %v5295_v53, %v4860_v13  ;;  %v578_v51 = vpop.xlane.xlu1 %577  ;;  %v5434_v54 = vmul.f32 %v5168_v12, %v7787_v14  ;;  %v7820_v14 = vld [vmem:[#allocation102_spill] sm:$0xff] }
 0x2c6   :  { %v1625_v35 = vrot.slane %v578_v51, %v4860_v13  ;;  %7786 = vst [vmem:[#allocation71_spill] sm:$0xff] %v5426_v11  ;;  %7817 = vst [vmem:[#allocation78_spill] sm:$0xff] %v5514_v33 }
 0x2c7   :  { %v1601_v32 = vsel %vm1037_vm9, %v1600_v47, %v1596_v25  ;;  %7788 = vst [vmem:[#allocation34_spill] sm:$0xff] %v5434_v54  ;;  %v5438_v47 = vmul.f32 %v5086_v31, %v7789_v2  ;;  %v5522_v2 = vmul.f32 %v5163_v1, %v7820_v14 }
 0x2c8   :  { %v572_v0 = vpop.xlane.xlu0 %571  ;;  %v1606_v8 = vsel %vm1044_vm10, %v1605_v48, %v1601_v32  ;;  %v5446_v48 = vmul.f32 %v4885_v16, %v7793_v57  ;;  %v5458_v32 = vmul.f32 %v5269_v56, %v4483_v62 }
 0x2c9   :  { %v1610_v30 = vrot.slane %v572_v0, %v4852_v5  ;;  %v5365_v5 = vsel %vm1072_vm14, %v1546_v34, %v1542_v40  ;;  %7790 = vst [vmem:[#allocation79_spill] sm:$0xff] %v5438_v47  ;;  %7821 = vst [vmem:[#allocation86_spill] sm:$0xff] %v5522_v2 }
 0x2ca   :  { %v5374_v3 = vmul.f32 %v5365_v5, %v4599_v15  ;;  %v7779_v15 = vld [vmem:[#allocation91_spill] sm:$0xff]  ;;  %v5422_v49 = vmul.f32 %v5365_v5, %v4611_v9  ;;  %7794 = vst [vmem:[#allocation42_spill] sm:$0xff] %v5446_v48  ;;  %v1826_v46 = vmax.f32 %v5446_v48, %v5438_v47  ;;  %7796 = vst [vmem:[#allocation50_spill] sm:$0xff] %v5458_v32 }
 0x2cb   :  { %v1611_v20 = vsel %vm1051_vm11, %v1610_v30, %v1606_v8  ;;  %v5394_v24 = vmul.f32 %v5168_v12, %v7779_v15  ;;  %v7791_v9 = vld [vmem:[#allocation95_spill] sm:$0xff]  ;;  %v5462_v0 = vmul.f32 %v5365_v5, %v4619_v28  ;;  %v7798_v30 = vld [vmem:[#allocation146_spill] sm:$0xff]  ;;  %v7802_v8 = vld [vmem:[#allocation36_spill] sm:$0xff] }
 0x2cc   :  { %v576_v21 = vpop.xlane.xlu0 %575  ;;  %v1616_v53 = vsel %vm1058_vm12, %v1615_v63, %v1611_v20  ;;  %v5442_v50 = vmul.f32 %v5163_v1, %v7791_v9  ;;  %v5466_v34 = vmul.f32 %v5264_v27, %v7798_v30  ;;  %v7800_v63 = vld [vmem:[#allocation98_spill] sm:$0xff]  ;;  %v5478_v40 = vmul.f32 %v5086_v31, %v7802_v8  ;;  %v7804_v28 = vld [vmem:[#allocation99_spill] sm:$0xff]  ;;  %v7806_v20 = vld [vmem:[#allocation37_spill] sm:$0xff] }
 0x2cd   :  { %v1620_v41 = vrot.slane %v576_v21, %v4867_v37  ;;  %v5382_v37 = vmul.f32 %v5365_v5, %v4589_v17  ;;  %v7781_v17 = vld [vmem:[#allocation92_spill] sm:$0xff]  ;;  %7797 = vst [vmem:[#allocation38_spill] sm:$0xff] %v5462_v0  ;;  %v5474_v62 = vmul.f32 %v5168_v12, %v7800_v63  ;;  %v5482_v51 = vmul.f32 %v5163_v1, %v7804_v28  ;;  %v7812_v15 = vld [vmem:[#allocation173_spill] sm:$0xff]  ;;  %v7828_v8 = vld [vmem:[#allocation175_spill] sm:$0xff] }
 0x2ce   :  { %7792 = vst [vmem:[#allocation22_spill] sm:$0xff] %v5442_v50  ;;  %v1874_v25 = vmax.f32 %v5442_v50, %v5434_v54  ;;  %7799 = vst [vmem:[#allocation58_spill] sm:$0xff] %v5466_v34  ;;  %v7822_v9 = vld [vmem:[#allocation41_spill] sm:$0xff]  ;;  %v7824_v30 = vld [vmem:[#allocation172_spill] sm:$0xff]  ;;  %v5542_v28 = vmul.f32 %v5365_v5, %v7828_v8 }
 0x2cf   :  { %v1621_v59 = vsel %vm1065_vm13, %v1620_v41, %v1616_v53  ;;  %7778 = vst [vmem:[#allocation83_spill] sm:$0xff] %v5382_v37  ;;  %7801 = vst [vmem:[#allocation46_spill] sm:$0xff] %v5474_v62  ;;  %v1877_v21 = vmax.f32 %v5482_v51, %v5474_v62  ;;  %v7808_v53 = vld [vmem:[#allocation171_spill] sm:$0xff]  ;;  %v5526_v57 = vmul.f32 %v4885_v16, %v7822_v9 }
 0x2d0   :  { %v5370_v10 = vsel %vm1072_vm14, %v1625_v35, %v1621_v59  ;;  %7803 = vst [vmem:[#allocation66_spill] sm:$0xff] %v5478_v40  ;;  %7805 = vst [vmem:[#allocation54_spill] sm:$0xff] %v5482_v51  ;;  %v5486_v35 = vmul.f32 %v4885_v16, %v7806_v20  ;;  %v7830_v20 = vld [vmem:[#allocation150_spill] sm:$0xff] }
 0x2d1   :  { %v5378_v13 = vmul.f32 %v5370_v10, %v4587_v22  ;;  %v5386_v55 = vmul.f32 %v5370_v10, %v4577_v18  ;;  %v7780_v22 = vld [vmem:[#allocation28_spill] sm:$0xff]  ;;  %v5402_v18 = vmul.f32 %v5163_v1, %v7781_v17  ;;  %v5414_v61 = vmul.f32 %v5370_v10, %v4597_v7  ;;  %7823 = vst [vmem:[#allocation104_spill] sm:$0xff] %v5526_v57 }
 0x2d2   :  { %v5398_v19 = vmul.f32 %v5086_v31, %v7780_v22  ;;  %v1919_v7 = vmax.f32 %v5426_v11, %v5418_v43  ;;  %v5454_v6 = vmul.f32 %v5370_v10, %v4609_v29  ;;  %v1922_v29 = vmax.f32 %v5466_v34, %v5458_v32  ;;  %7807 = vst [vmem:[#allocation74_spill] sm:$0xff] %v5486_v35  ;;  %v7814_v17 = vld [vmem:[#allocation148_spill] sm:$0xff] }
 0x2d3   :  { %7777 = vst [vmem:[#allocation63_spill] sm:$0xff] %v5378_v13  ;;  %v1964_v36 = vmax.f32 %v5374_v3, %v5378_v13  ;;  %v1961_v39 = vmax.f32 %v5382_v37, %v5386_v55  ;;  %v1871_v44 = vmax.f32 %v5402_v18, %v5394_v24  ;;  %v1967_v45 = vmax.f32 %v5422_v49, %v5414_v61 }
 0x2d4   :  { %v1823_v4 = vmax.f32 %v5406_v23, %v5398_v19  ;;  %7795 = vst [vmem:[#allocation30_spill] sm:$0xff] %v5454_v6  ;;  %v1970_v38 = vmax.f32 %v5462_v0, %v5454_v6  ;;  %v1829_v41 = vmax.f32 %v5486_v35, %v5478_v40  ;;  %v5494_v59 = vmul.f32 %v5370_v10, %v7808_v53 }
 0x2d5   :  { %1965 = vmax.xlane.f32.xlu1 %v1964_v36  ;;  %1962 = vmax.xlane.f32.xlu0 %v1961_v39  ;;  %v7810_v36 = vld [vmem:[#allocation147_spill] sm:$0xff]  ;;  %v5502_v22 = vmul.f32 %v5365_v5, %v7812_v15  ;;  %v5506_v58 = vmul.f32 %v5264_v27, %v7814_v17  ;;  %7829 = vst [vmem:[#allocation100_spill] sm:$0xff] %v5542_v28  ;;  %v7834_v17 = vld [vmem:[#allocation44_spill] sm:$0xff] }
 0x2d6   :  { %7809 = vst [vmem:[#allocation62_spill] sm:$0xff] %v5494_v59  ;;  %v5498_v39 = vmul.f32 %v5269_v56, %v7810_v36  ;;  %v7832_v36 = vld [vmem:[#allocation105_spill] sm:$0xff] }
 0x2d7   :  { %7813 = vst [vmem:[#allocation70_spill] sm:$0xff] %v5502_v22  ;;  %7815 = vst [vmem:[#allocation90_spill] sm:$0xff] %v5506_v58  ;;  %v5554_v15 = vmul.f32 %v5168_v12, %v7832_v36 }
 0x2d8   :  { %7811 = vst [vmem:[#allocation82_spill] sm:$0xff] %v5498_v39 }
 0x2d9   :  { %1872 = vmax.xlane.f32.xlu1 %v1871_v44  ;;  %1824 = vmax.xlane.f32.xlu0 %v1823_v4  ;;  %v1973_v44 = vmax.f32 %v5502_v22, %v5494_v59  ;;  %v1925_v4 = vmax.f32 %v5506_v58, %v5498_v39  ;;  %7833 = vst [vmem:[#allocation107_spill] sm:$0xff] %v5554_v15  ;;  %v7974_v39 = vld [vmem:[#allocation67_spill] sm:$0xff] }
 0x2dd   :  { %1968 = vmax.xlane.f32.xlu1 %v1967_v45  ;;  %1920 = vmax.xlane.f32.xlu0 %v1919_v7  ;;  %v7818_v45 = vld [vmem:[#allocation40_spill] sm:$0xff] }
 0x2de   :  { %v5518_v7 = vmul.f32 %v5086_v31, %v7818_v45  ;;  %v7838_v45 = vld [vmem:[#allocation45_spill] sm:$0xff] }
 0x2df   :  { %v5566_v14 = vmul.f32 %v4885_v16, %v7838_v45  ;;  %v7848_v45 = vld [vmem:[#allocation108_spill] sm:$0xff] }
 0x2e0   :  { %7819 = vst [vmem:[#allocation97_spill] sm:$0xff] %v5518_v7 }
 0x2e1   :  { %1875 = vmax.xlane.f32.xlu1 %v1874_v25  ;;  %1827 = vmax.xlane.f32.xlu0 %v1826_v46  ;;  %v1880_v25 = vmax.f32 %v5522_v2, %v5514_v33  ;;  %v1832_v46 = vmax.f32 %v5526_v57, %v5518_v7  ;;  %7839 = vst [vmem:[#allocation132_spill] sm:$0xff] %v5566_v14  ;;  %v7968_v57 = vld [vmem:[#allocation134_spill] sm:$0xff] }
 0x2e5   :  { %1971 = vmax.xlane.f32.xlu1 %v1970_v38  ;;  %1923 = vmax.xlane.f32.xlu0 %v1922_v29  ;;  %v5534_v38 = vmul.f32 %v5370_v10, %v7824_v30  ;;  %v7826_v29 = vld [vmem:[#allocation149_spill] sm:$0xff] }
 0x2e6   :  { %v5538_v63 = vmul.f32 %v5269_v56, %v7826_v29  ;;  %v7842_v29 = vld [vmem:[#allocation151_spill] sm:$0xff] }
 0x2e7   :  { %7825 = vst [vmem:[#allocation93_spill] sm:$0xff] %v5534_v38  ;;  %v5578_v8 = vmul.f32 %v5269_v56, %v7842_v29  ;;  %v7852_v29 = vld [vmem:[#allocation109_spill] sm:$0xff] }
 0x2e8   :  { %7827 = vst [vmem:[#allocation111_spill] sm:$0xff] %v5538_v63 }
 0x2e9   :  { %1878 = vmax.xlane.f32.xlu1 %v1877_v21  ;;  %1830 = vmax.xlane.f32.xlu0 %v1829_v41  ;;  %v5546_v21 = vmul.f32 %v5264_v27, %v7830_v20  ;;  %v1976_v41 = vmax.f32 %v5542_v28, %v5534_v38  ;;  %7843 = vst [vmem:[#allocation139_spill] sm:$0xff] %v5578_v8  ;;  %v7844_v20 = vld [vmem:[#allocation177_spill] sm:$0xff]  ;;  %v7967_v28 = vld [vmem:[#allocation39_spill] sm:$0xff] }
 0x2ea   :  { %v7963_v38 = vld [vmem:[#allocation17_spill] sm:$0xff] }
 0x2eb   :  { %7831 = vst [vmem:[#allocation118_spill] sm:$0xff] %v5546_v21  ;;  %v1928_v53 = vmax.f32 %v5546_v21, %v5538_v63  ;;  %v7953_v63 = vld [vmem:[#allocation10_spill] sm:$0xff]  ;;  %v7958_v21 = vld [vmem:[#allocation133_spill] sm:$0xff] }
 0x2ed   :  { %1974 = vmax.xlane.f32.xlu1 %v1973_v44  ;;  %1926 = vmax.xlane.f32.xlu0 %v1925_v4  ;;  %v5558_v44 = vmul.f32 %v5086_v31, %v7834_v17  ;;  %v7836_v4 = vld [vmem:[#allocation106_spill] sm:$0xff] }
 0x2ee   :  { %v5562_v26 = vmul.f32 %v5163_v1, %v7836_v4 }
 0x2ef   :  { %7835 = vst [vmem:[#allocation125_spill] sm:$0xff] %v5558_v44 }
 0x2f0   :  { %7837 = vst [vmem:[#allocation114_spill] sm:$0xff] %v5562_v26  ;;  %v1883_v9 = vmax.f32 %v5562_v26, %v5554_v15  ;;  %v7950_v26 = vld [vmem:[#allocation130_spill] sm:$0xff] }
 0x2f1   :  { %1881 = vmax.xlane.f32.xlu1 %v1880_v25  ;;  %1833 = vmax.xlane.f32.xlu0 %v1832_v46  ;;  %v1835_v25 = vmax.f32 %v5566_v14, %v5558_v44  ;;  %v7840_v46 = vld [vmem:[#allocation174_spill] sm:$0xff]  ;;  %v7942_v44 = vld [vmem:[#allocation165_spill] sm:$0xff] }
 0x2f2   :  { %v5574_v30 = vmul.f32 %v5370_v10, %v7840_v46  ;;  %v5594_v46 = vmul.f32 %v5168_v12, %v7848_v45  ;;  %v7948_v14 = vld [vmem:[#allocation73_spill] sm:$0xff] }
 0x2f4   :  { %7841 = vst [vmem:[#allocation121_spill] sm:$0xff] %v5574_v30  ;;  %7849 = vst [vmem:[#allocation135_spill] sm:$0xff] %v5594_v46 }
 0x2f5   :  { %1977 = vmax.xlane.f32.xlu1 %v1976_v41  ;;  %1929 = vmax.xlane.f32.xlu0 %v1928_v53  ;;  %v5582_v41 = vmul.f32 %v5365_v5, %v7844_v20  ;;  %v7846_v53 = vld [vmem:[#allocation152_spill] sm:$0xff]  ;;  %v5602_v20 = vmul.f32 %v5163_v1, %v7852_v29  ;;  %v7860_v29 = vld [vmem:[#allocation179_spill] sm:$0xff] }
 0x2f6   :  { %v5586_v36 = vmul.f32 %v5264_v27, %v7846_v53  ;;  %v7854_v53 = vld [vmem:[#allocation49_spill] sm:$0xff] }
 0x2f7   :  { %7845 = vst [vmem:[#allocation128_spill] sm:$0xff] %v5582_v41  ;;  %v1979_v17 = vmax.f32 %v5582_v41, %v5574_v30  ;;  %7853 = vst [vmem:[#allocation103_spill] sm:$0xff] %v5602_v20  ;;  %v5606_v30 = vmul.f32 %v4885_v16, %v7854_v53  ;;  %v5622_v53 = vmul.f32 %v5365_v5, %v7860_v29  ;;  %v7862_v41 = vld [vmem:[#allocation155_spill] sm:$0xff]  ;;  %v7868_v29 = vld [vmem:[#allocation113_spill] sm:$0xff] }
 0x2f8   :  { %7847 = vst [vmem:[#allocation89_spill] sm:$0xff] %v5586_v36  ;;  %v1931_v4 = vmax.f32 %v5586_v36, %v5578_v8  ;;  %v1886_v8 = vmax.f32 %v5602_v20, %v5594_v46  ;;  %v7856_v36 = vld [vmem:[#allocation176_spill] sm:$0xff]  ;;  %v5626_v46 = vmul.f32 %v5264_v27, %v7862_v41  ;;  %v5642_v41 = vmul.f32 %v5163_v1, %v7868_v29  ;;  %v7870_v20 = vld [vmem:[#allocation53_spill] sm:$0xff] }
 0x2f9   :  { %1884 = vmax.xlane.f32.xlu1 %v1883_v9  ;;  %1836 = vmax.xlane.f32.xlu0 %v1835_v25  ;;  %v7850_v9 = vld [vmem:[#allocation48_spill] sm:$0xff]  ;;  %7855 = vst [vmem:[#allocation110_spill] sm:$0xff] %v5606_v30  ;;  %7861 = vst [vmem:[#allocation131_spill] sm:$0xff] %v5622_v53  ;;  %v7876_v29 = vld [vmem:[#allocation181_spill] sm:$0xff] }
 0x2fa   :  { %v5598_v25 = vmul.f32 %v5086_v31, %v7850_v9  ;;  %v5614_v9 = vmul.f32 %v5370_v10, %v7856_v36  ;;  %7863 = vst [vmem:[#allocation138_spill] sm:$0xff] %v5626_v46  ;;  %7869 = vst [vmem:[#allocation20_spill] sm:$0xff] %v5642_v41 }
 0x2fc   :  { %7851 = vst [vmem:[#allocation96_spill] sm:$0xff] %v5598_v25  ;;  %v1838_v45 = vmax.f32 %v5606_v30, %v5598_v25  ;;  %7857 = vst [vmem:[#allocation117_spill] sm:$0xff] %v5614_v9  ;;  %v1982_v25 = vmax.f32 %v5622_v53, %v5614_v9  ;;  %v7864_v30 = vld [vmem:[#allocation112_spill] sm:$0xff]  ;;  %v5646_v9 = vmul.f32 %v4885_v16, %v7870_v20  ;;  %v7878_v53 = vld [vmem:[#allocation157_spill] sm:$0xff] }
 0x2fd   :  { %1980 = vmax.xlane.f32.xlu1 %v1979_v17  ;;  %1932 = vmax.xlane.f32.xlu0 %v1931_v4  ;;  %v7858_v17 = vld [vmem:[#allocation153_spill] sm:$0xff]  ;;  %v5662_v20 = vmul.f32 %v5365_v5, %v7876_v29  ;;  %v7884_v29 = vld [vmem:[#allocation116_spill] sm:$0xff] }
 0x2fe   :  { %v5618_v4 = vmul.f32 %v5269_v56, %v7858_v17  ;;  %v5634_v17 = vmul.f32 %v5168_v12, %v7864_v30  ;;  %7871 = vst [vmem:[#allocation21_spill] sm:$0xff] %v5646_v9 }
 0x2ff   :  { %7877 = vst [vmem:[#allocation85_spill] sm:$0xff] %v5662_v20 }
 0x300   :  { %7859 = vst [vmem:[#allocation124_spill] sm:$0xff] %v5618_v4  ;;  %v1934_v36 = vmax.f32 %v5626_v46, %v5618_v4  ;;  %7865 = vst [vmem:[#allocation24_spill] sm:$0xff] %v5634_v17  ;;  %v1889_v4 = vmax.f32 %v5642_v41, %v5634_v17  ;;  %v7872_v46 = vld [vmem:[#allocation178_spill] sm:$0xff]  ;;  %v5666_v17 = vmul.f32 %v5264_v27, %v7878_v53  ;;  %v7886_v41 = vld [vmem:[#allocation57_spill] sm:$0xff] }
 0x301   :  { %1887 = vmax.xlane.f32.xlu1 %v1886_v8  ;;  %1839 = vmax.xlane.f32.xlu0 %v1838_v45  ;;  %v7866_v8 = vld [vmem:[#allocation52_spill] sm:$0xff]  ;;  %v5682_v53 = vmul.f32 %v5163_v1, %v7884_v29  ;;  %v7892_v29 = vld [vmem:[#allocation183_spill] sm:$0xff] }
 0x302   :  { %v5638_v45 = vmul.f32 %v5086_v31, %v7866_v8  ;;  %v5654_v8 = vmul.f32 %v5370_v10, %v7872_v46  ;;  %7879 = vst [vmem:[#allocation84_spill] sm:$0xff] %v5666_v17 }
 0x303   :  { %7885 = vst [vmem:[#allocation141_spill] sm:$0xff] %v5682_v53 }
 0x304   :  { %7867 = vst [vmem:[#allocation25_spill] sm:$0xff] %v5638_v45  ;;  %v1841_v30 = vmax.f32 %v5646_v9, %v5638_v45  ;;  %7873 = vst [vmem:[#allocation88_spill] sm:$0xff] %v5654_v8  ;;  %v1985_v45 = vmax.f32 %v5662_v20, %v5654_v8  ;;  %v7880_v9 = vld [vmem:[#allocation115_spill] sm:$0xff]  ;;  %v5686_v8 = vmul.f32 %v4885_v16, %v7886_v41 }
 0x305   :  { %1983 = vmax.xlane.f32.xlu1 %v1982_v25  ;;  %1935 = vmax.xlane.f32.xlu0 %v1934_v36  ;;  %v7874_v25 = vld [vmem:[#allocation154_spill] sm:$0xff]  ;;  %v5702_v41 = vmul.f32 %v5365_v5, %v7892_v29  ;;  %v7894_v20 = vld [vmem:[#allocation159_spill] sm:$0xff]  ;;  %v7900_v29 = vld [vmem:[#allocation120_spill] sm:$0xff] }
 0x306   :  { %v5658_v36 = vmul.f32 %v5269_v56, %v7874_v25  ;;  %v5674_v25 = vmul.f32 %v5168_v12, %v7880_v9  ;;  %7887 = vst [vmem:[#allocation140_spill] sm:$0xff] %v5686_v8 }
 0x307   :  { %7893 = vst [vmem:[#allocation92_spill] sm:$0xff] %v5702_v41 }
 0x308   :  { %7875 = vst [vmem:[#allocation87_spill] sm:$0xff] %v5658_v36  ;;  %v1937_v46 = vmax.f32 %v5666_v17, %v5658_v36  ;;  %7881 = vst [vmem:[#allocation143_spill] sm:$0xff] %v5674_v25  ;;  %v1892_v36 = vmax.f32 %v5682_v53, %v5674_v25  ;;  %v7888_v17 = vld [vmem:[#allocation180_spill] sm:$0xff]  ;;  %v5706_v25 = vmul.f32 %v5264_v27, %v7894_v20  ;;  %v7902_v53 = vld [vmem:[#allocation61_spill] sm:$0xff] }
 0x309   :  { %1890 = vmax.xlane.f32.xlu1 %v1889_v4  ;;  %1842 = vmax.xlane.f32.xlu0 %v1841_v30  ;;  %v7882_v4 = vld [vmem:[#allocation56_spill] sm:$0xff]  ;;  %v5722_v20 = vmul.f32 %v5163_v1, %v7900_v29  ;;  %v7908_v29 = vld [vmem:[#allocation11_spill] sm:$0xff] }
 0x30a   :  { %v5678_v30 = vmul.f32 %v5086_v31, %v7882_v4  ;;  %v5694_v4 = vmul.f32 %v5370_v10, %v7888_v17  ;;  %7895 = vst [vmem:[#allocation29_spill] sm:$0xff] %v5706_v25 }
 0x30b   :  { %7901 = vst [vmem:[#allocation94_spill] sm:$0xff] %v5722_v20 }
 0x30c   :  { %7883 = vst [vmem:[#allocation142_spill] sm:$0xff] %v5678_v30  ;;  %v1844_v9 = vmax.f32 %v5686_v8, %v5678_v30  ;;  %7889 = vst [vmem:[#allocation91_spill] sm:$0xff] %v5694_v4  ;;  %v1988_v30 = vmax.f32 %v5702_v41, %v5694_v4  ;;  %v7896_v8 = vld [vmem:[#allocation119_spill] sm:$0xff]  ;;  %v5726_v4 = vmul.f32 %v4885_v16, %v7902_v53  ;;  %v7910_v41 = vld [vmem:[#allocation161_spill] sm:$0xff] }
 0x30d   :  { %1986 = vmax.xlane.f32.xlu1 %v1985_v45  ;;  %1938 = vmax.xlane.f32.xlu0 %v1937_v46  ;;  %v7890_v45 = vld [vmem:[#allocation156_spill] sm:$0xff]  ;;  %v5742_v53 = vmul.f32 %v5365_v5, %v7908_v29  ;;  %v7916_v29 = vld [vmem:[#allocation123_spill] sm:$0xff] }
 0x30e   :  { %v5698_v46 = vmul.f32 %v5269_v56, %v7890_v45  ;;  %v5714_v45 = vmul.f32 %v5168_v12, %v7896_v8  ;;  %7903 = vst [vmem:[#allocation32_spill] sm:$0xff] %v5726_v4 }
 0x30f   :  { %7909 = vst [vmem:[#allocation146_spill] sm:$0xff] %v5742_v53 }
 0x310   :  { %7891 = vst [vmem:[#allocation28_spill] sm:$0xff] %v5698_v46  ;;  %v1940_v17 = vmax.f32 %v5706_v25, %v5698_v46  ;;  %7897 = vst [vmem:[#allocation144_spill] sm:$0xff] %v5714_v45  ;;  %v1895_v46 = vmax.f32 %v5722_v20, %v5714_v45  ;;  %v7904_v25 = vld [vmem:[#allocation182_spill] sm:$0xff]  ;;  %v5746_v45 = vmul.f32 %v5264_v27, %v7910_v41  ;;  %v7918_v20 = vld [vmem:[#allocation65_spill] sm:$0xff] }
 0x311   :  { %1893 = vmax.xlane.f32.xlu1 %v1892_v36  ;;  %1845 = vmax.xlane.f32.xlu0 %v1844_v9  ;;  %v7898_v36 = vld [vmem:[#allocation60_spill] sm:$0xff]  ;;  %v5762_v41 = vmul.f32 %v5163_v1, %v7916_v29  ;;  %v7924_v29 = vld [vmem:[#allocation13_spill] sm:$0xff] }
 0x312   :  { %v5718_v9 = vmul.f32 %v5086_v31, %v7898_v36  ;;  %v5734_v36 = vmul.f32 %v5370_v10, %v7904_v25  ;;  %7911 = vst [vmem:[#allocation98_spill] sm:$0xff] %v5746_v45 }
 0x313   :  { %7917 = vst [vmem:[#allocation37_spill] sm:$0xff] %v5762_v41 }
 0x314   :  { %7899 = vst [vmem:[#allocation145_spill] sm:$0xff] %v5718_v9  ;;  %v1847_v8 = vmax.f32 %v5726_v4, %v5718_v9  ;;  %7905 = vst [vmem:[#allocation95_spill] sm:$0xff] %v5734_v36  ;;  %v1991_v9 = vmax.f32 %v5742_v53, %v5734_v36  ;;  %v7912_v4 = vld [vmem:[#allocation122_spill] sm:$0xff]  ;;  %v5766_v36 = vmul.f32 %v4885_v16, %v7918_v20  ;;  %v7926_v53 = vld [vmem:[#allocation163_spill] sm:$0xff] }
 0x315   :  { %1989 = vmax.xlane.f32.xlu1 %v1988_v30  ;;  %1941 = vmax.xlane.f32.xlu0 %v1940_v17  ;;  %v7906_v30 = vld [vmem:[#allocation158_spill] sm:$0xff]  ;;  %v5782_v20 = vmul.f32 %v5365_v5, %v7924_v29  ;;  %v7932_v29 = vld [vmem:[#allocation127_spill] sm:$0xff] }
 0x316   :  { %v5738_v17 = vmul.f32 %v5269_v56, %v7906_v30  ;;  %v5754_v30 = vmul.f32 %v5168_v12, %v7912_v4  ;;  %7919 = vst [vmem:[#allocation171_spill] sm:$0xff] %v5766_v36 }
 0x317   :  { %7925 = vst [vmem:[#allocation148_spill] sm:$0xff] %v5782_v20 }
 0x318   :  { %7907 = vst [vmem:[#allocation33_spill] sm:$0xff] %v5738_v17  ;;  %v1943_v25 = vmax.f32 %v5746_v45, %v5738_v17  ;;  %7913 = vst [vmem:[#allocation36_spill] sm:$0xff] %v5754_v30  ;;  %v1898_v17 = vmax.f32 %v5762_v41, %v5754_v30  ;;  %v7920_v45 = vld [vmem:[#allocation8_spill] sm:$0xff]  ;;  %v5786_v30 = vmul.f32 %v5264_v27, %v7926_v53  ;;  %v7934_v41 = vld [vmem:[#allocation69_spill] sm:$0xff] }
 0x319   :  { %1896 = vmax.xlane.f32.xlu1 %v1895_v46  ;;  %1848 = vmax.xlane.f32.xlu0 %v1847_v8  ;;  %v7914_v46 = vld [vmem:[#allocation64_spill] sm:$0xff]  ;;  %v5802_v53 = vmul.f32 %v5163_v1, %v7932_v29  ;;  %v1822_v29 = vpop.xlane.xlu1 %1821 }
 0x31a   :  { %v5758_v8 = vmul.f32 %v5086_v31, %v7914_v46  ;;  %v5774_v46 = vmul.f32 %v5370_v10, %v7920_v45  ;;  %7927 = vst [vmem:[#allocation101_spill] sm:$0xff] %v5786_v30 }
 0x31b   :  { %7933 = vst [vmem:[#allocation41_spill] sm:$0xff] %v5802_v53 }
 0x31c   :  { %7915 = vst [vmem:[#allocation99_spill] sm:$0xff] %v5758_v8  ;;  %v1850_v4 = vmax.f32 %v5766_v36, %v5758_v8  ;;  %7921 = vst [vmem:[#allocation147_spill] sm:$0xff] %v5774_v46  ;;  %v1994_v8 = vmax.f32 %v5782_v20, %v5774_v46  ;;  %v7928_v36 = vld [vmem:[#allocation126_spill] sm:$0xff]  ;;  %v5806_v46 = vmul.f32 %v4885_v16, %v7934_v41  ;;  %v7940_v20 = vld [vmem:[#allocation15_spill] sm:$0xff] }
 0x31d   :  { %1992 = vmax.xlane.f32.xlu1 %v1991_v9  ;;  %1944 = vmax.xlane.f32.xlu0 %v1943_v25  ;;  %v7922_v9 = vld [vmem:[#allocation160_spill] sm:$0xff]  ;;  %v5822_v41 = vmul.f32 %v5365_v5, %v7940_v20  ;;  %v2011_v20 = vsub.f32 %v5109_v42, %v1822_v29  ;;  %v1870_v15 = vpop.xlane.xlu1 %1869 }
 0x31e   :  { %v5778_v25 = vmul.f32 %v5269_v56, %v7922_v9  ;;  %v5794_v9 = vmul.f32 %v5168_v12, %v7928_v36  ;;  %7935 = vst [vmem:[#allocation172_spill] sm:$0xff] %v5806_v46 }
 0x31f   :  { %7941 = vst [vmem:[#allocation150_spill] sm:$0xff] %v5822_v41 }
 0x320   :  { %7923 = vst [vmem:[#allocation173_spill] sm:$0xff] %v5778_v25  ;;  %v1946_v45 = vmax.f32 %v5786_v30, %v5778_v25  ;;  %7929 = vst [vmem:[#allocation40_spill] sm:$0xff] %v5794_v9  ;;  %v1901_v25 = vmax.f32 %v5802_v53, %v5794_v9  ;;  %v7936_v30 = vld [vmem:[#allocation9_spill] sm:$0xff]  ;;  %v5826_v9 = vmul.f32 %v5264_v27, %v7942_v44 }
 0x321   :  { %1899 = vmax.xlane.f32.xlu1 %v1898_v17  ;;  %1851 = vmax.xlane.f32.xlu0 %v1850_v4  ;;  %v7930_v17 = vld [vmem:[#allocation68_spill] sm:$0xff]  ;;  %v5843_v44 = vmul.f32 %v4885_v16, %v7948_v14 }
 0x322   :  { %v5798_v4 = vmul.f32 %v5086_v31, %v7930_v17  ;;  %v5814_v17 = vmul.f32 %v5370_v10, %v7936_v30  ;;  %7943 = vst [vmem:[#allocation105_spill] sm:$0xff] %v5826_v9  ;;  %v1819_v30 = vpop.xlane.xlu0 %1818 }
 0x323   :  { %7949 = vst [vmem:[#allocation45_spill] sm:$0xff] %v5843_v44 }
 0x324   :  { %7931 = vst [vmem:[#allocation102_spill] sm:$0xff] %v5798_v4  ;;  %v1853_v36 = vmax.f32 %v5806_v46, %v5798_v4  ;;  %7937 = vst [vmem:[#allocation149_spill] sm:$0xff] %v5814_v17  ;;  %v7944_v4 = vld [vmem:[#allocation72_spill] sm:$0xff] }
 0x325   :  { %1995 = vmax.xlane.f32.xlu1 %v1994_v8  ;;  %1947 = vmax.xlane.f32.xlu0 %v1946_v45  ;;  %v7938_v8 = vld [vmem:[#allocation162_spill] sm:$0xff]  ;;  %v5830_v46 = vmul.f32 %v5086_v31, %v7944_v4  ;;  %v2012_v4 = vsub.f32 %v5103_v52, %v1822_v29  ;;  %v5858_v29 = vmul.f32 %v5370_v10, %v7953_v63  ;;  %v7957_v52 = vld [vmem:[#allocation31_spill] sm:$0xff]  ;;  %v1918_v63 = vpop.xlane.xlu1 %1917 }
 0x326   :  { %v5818_v45 = vmul.f32 %v5269_v56, %v7938_v8  ;;  %v1997_v8 = vmax.f32 %v5822_v41, %v5814_v17  ;;  %v5848_v17 = vmul.f32 %v5163_v1, %v7950_v26  ;;  %v1867_v41 = vpop.xlane.xlu0 %1866  ;;  %v2141_v26 = vmul.f32 1.442695, %v2011_v20  ;;  %v7965_v20 = vld [vmem:[#allocation167_spill] sm:$0xff] }
 0x327   :  { %7945 = vst [vmem:[#allocation44_spill] sm:$0xff] %v5830_v46  ;;  %7954 = vst [vmem:[#allocation151_spill] sm:$0xff] %v5858_v29  ;;  %v2041_v7 = vsub.f32 %v7967_v28, %v1867_v41  ;;  %v7973_v28 = vld [vmem:[#allocation47_spill] sm:$0xff] }
 0x328   :  { %7939 = vst [vmem:[#allocation175_spill] sm:$0xff] %v5818_v45  ;;  %7951 = vst [vmem:[#allocation174_spill] sm:$0xff] %v5848_v17  ;;  %3453 = vpow2.f32 %v2141_v26  ;;  %v2075_v2 = vsub.f32 %v7973_v28, %v1918_v63  ;;  %v7976_v26 = vld [vmem:[#allocation166_spill] sm:$0xff] }
 0x329   :  { %1902 = vmax.xlane.f32.xlu1 %v1901_v25  ;;  %1854 = vmax.xlane.f32.xlu0 %v1853_v36  ;;  %v1949_v25 = vmax.f32 %v5826_v9, %v5818_v45  ;;  %v7946_v36 = vld [vmem:[#allocation129_spill] sm:$0xff]  ;;  %v2009_v45 = vsub.f32 %v5138_v60, %v1819_v30  ;;  %v7952_v9 = vld [vmem:[#allocation23_spill] sm:$0xff]  ;;  %v2043_v60 = vsub.f32 %v7957_v52, %v1870_v15 }
 0x32a   :  { %v5838_v53 = vmul.f32 %v5168_v12, %v7946_v36  ;;  %v1856_v36 = vmax.f32 %v5843_v44, %v5830_v46  ;;  %v2010_v42 = vsub.f32 %v7952_v9, %v1819_v30  ;;  %v5867_v46 = vmul.f32 %v5168_v12, %v7958_v21  ;;  %v7960_v30 = vld [vmem:[#allocation76_spill] sm:$0xff] }
 0x32b   :  { %v5871_v9 = vmul.f32 %v5086_v31, %v7960_v30  ;;  %v2143_v44 = vmul.f32 1.442695, %v2012_v4  ;;  %v5880_v52 = vmul.f32 %v5264_v27, %v7965_v20  ;;  %v2137_v21 = vmul.f32 1.442695, %v2009_v45  ;;  %v7970_v4 = vld [vmem:[#allocation77_spill] sm:$0xff] }
 0x32c   :  { %7947 = vst [vmem:[#allocation106_spill] sm:$0xff] %v5838_v53  ;;  %v1904_v14 = vmax.f32 %v5848_v17, %v5838_v53  ;;  %7959 = vst [vmem:[#allocation152_spill] sm:$0xff] %v5867_v46  ;;  %v7962_v53 = vld [vmem:[#allocation51_spill] sm:$0xff]  ;;  %v5885_v30 = vmul.f32 %v5163_v1, %v7968_v57  ;;  %v2205_v20 = vmul.f32 1.442695, %v2043_v60  ;;  %v5905_v60 = vmul.f32 %v5269_v56, %v7976_v26  ;;  %v7983_v26 = vld [vmem:[#allocation169_spill] sm:$0xff] }
 0x32d   :  { %1998 = vmax.xlane.f32.xlu1 %v1997_v8  ;;  %1950 = vmax.xlane.f32.xlu0 %v1949_v25  ;;  %v7955_v8 = vld [vmem:[#allocation164_spill] sm:$0xff]  ;;  %7961 = vst [vmem:[#allocation108_spill] sm:$0xff] %v5871_v9  ;;  %v2044_v17 = vsub.f32 %v7962_v53, %v1870_v15  ;;  %7966 = vst [vmem:[#allocation109_spill] sm:$0xff] %v5880_v52  ;;  %v5889_v15 = vmul.f32 %v4885_v16, %v7970_v4  ;;  %3455 = vpow2.f32 %v2143_v44 }
 0x32e   :  { %v5862_v25 = vmul.f32 %v5269_v56, %v7955_v8  ;;  %v5876_v8 = vmul.f32 %v5365_v5, %v7963_v38  ;;  %7969 = vst [vmem:[#allocation49_spill] sm:$0xff] %v5885_v30  ;;  %v1915_v38 = vpop.xlane.xlu0 %1914  ;;  %3457 = vpow2.f32 %v2137_v21  ;;  %7977 = vst [vmem:[#allocation153_spill] sm:$0xff] %v5905_v60 }
 0x32f   :  { %7971 = vst [vmem:[#allocation176_spill] sm:$0xff] %v5889_v15  ;;  %v1859_v57 = vmax.f32 %v5889_v15, %v5871_v9  ;;  %v2207_v4 = vmul.f32 1.442695, %v2044_v17  ;;  %v7978_v9 = vld [vmem:[#allocation75_spill] sm:$0xff]  ;;  %v7979_v17 = vld [vmem:[#allocation12_spill] sm:$0xff] }
 0x330   :  { %7956 = vst [vmem:[#allocation177_spill] sm:$0xff] %v5862_v25  ;;  %7964 = vst [vmem:[#allocation48_spill] sm:$0xff] %v5876_v8  ;;  %v2000_v33 = vmax.f32 %v5876_v8, %v5858_v29  ;;  %v1952_v45 = vmax.f32 %v5880_v52, %v5862_v25  ;;  %v7975_v29 = vld [vmem:[#allocation55_spill] sm:$0xff]  ;;  %v2074_v44 = vsub.f32 %v7978_v9, %v1915_v38 }
 0x331   :  { %1905 = vmax.xlane.f32.xlu1 %v1904_v14  ;;  %1857 = vmax.xlane.f32.xlu0 %v1856_v36  ;;  %v2139_v36 = vmul.f32 1.442695, %v2010_v42  ;;  %v7972_v14 = vld [vmem:[#allocation59_spill] sm:$0xff]  ;;  %v2076_v42 = vsub.f32 %v7974_v39, %v1918_v63  ;;  %v2073_v25 = vsub.f32 %v7975_v29, %v1915_v38  ;;  %v5910_v63 = vmul.f32 %v5370_v10, %v7979_v17  ;;  %v7985_v38 = vld [vmem:[#allocation136_spill] sm:$0xff] }
 0x332   :  { %v2042_v53 = vsub.f32 %v7972_v14, %v1867_v41  ;;  %v1907_v41 = vmax.f32 %v5885_v30, %v5867_v46  ;;  %v2201_v14 = vmul.f32 1.442695, %v2041_v7  ;;  %v7981_v7 = vld [vmem:[#allocation19_spill] sm:$0xff]  ;;  %v5922_v17 = vmul.f32 %v5168_v12, %v7985_v38  ;;  %v7991_v12 = vld [vmem:[#allocation137_spill] sm:$0xff] }
 0x333   :  { %3459 = vpow2.f32 %v2139_v36  ;;  %7980 = vst [vmem:[#allocation179_spill] sm:$0xff] %v5910_v63  ;;  %v5914_v21 = vmul.f32 %v5365_v5, %v7981_v7  ;;  %v5918_v36 = vmul.f32 %v5264_v27, %v7983_v26 }
 0x334   :  { %v2203_v28 = vmul.f32 1.442695, %v2042_v53  ;;  %3461 = vpow2.f32 %v2205_v20  ;;  %v2265_v53 = vmul.f32 1.442695, %v2073_v25  ;;  %7986 = vst [vmem:[#allocation52_spill] sm:$0xff] %v5922_v17  ;;  %v7987_v20 = vld [vmem:[#allocation80_spill] sm:$0xff] }
 0x335   :  { %2001 = vmax.xlane.f32.xlu1 %v2000_v33  ;;  %1953 = vmax.xlane.f32.xlu0 %v1952_v45  ;;  %v2269_v33 = vmul.f32 1.442695, %v2075_v2  ;;  %3463 = vpow2.f32 %v2207_v4  ;;  %v2271_v45 = vmul.f32 1.442695, %v2076_v42  ;;  %7982 = vst [vmem:[#allocation155_spill] sm:$0xff] %v5914_v21  ;;  %7984 = vst [vmem:[#allocation112_spill] sm:$0xff] %v5918_v36  ;;  %v5926_v2 = vmul.f32 %v5086_v31, %v7987_v20  ;;  %v5952_v7 = vpop.eup %3453 }
 0x336   :  { %3465 = vpow2.f32 %v2201_v14  ;;  %v2003_v4 = vmax.f32 %v5914_v21, %v5910_v63  ;;  %v1955_v42 = vmax.f32 %v5918_v36, %v5905_v60  ;;  %v5938_v31 = vmul.f32 %v5163_v1, %v7991_v12  ;;  %v7997_v1 = vld [vmem:[#allocation16_spill] sm:$0xff] }
 0x337   :  { %7988 = vst [vmem:[#allocation113_spill] sm:$0xff] %v5926_v2  ;;  %3467 = vpow2.f32 %v2203_v28  ;;  %v5956_v26 = vmul.f32 %v5365_v5, %v7997_v1 }
 0x338   :  { %3469 = vpow2.f32 %v2269_v33  ;;  %7992 = vst [vmem:[#allocation178_spill] sm:$0xff] %v5938_v31  ;;  %v1910_v14 = vmax.f32 %v5938_v31, %v5922_v17 }
 0x339   :  { %1908 = vmax.xlane.f32.xlu1 %v1907_v41  ;;  %1860 = vmax.xlane.f32.xlu0 %v1859_v57  ;;  %v2267_v57 = vmul.f32 1.442695, %v2074_v44  ;;  %v7989_v41 = vld [vmem:[#allocation81_spill] sm:$0xff]  ;;  %3471 = vpow2.f32 %v2271_v45  ;;  %v7993_v44 = vld [vmem:[#allocation14_spill] sm:$0xff]  ;;  %7998 = vst [vmem:[#allocation157_spill] sm:$0xff] %v5956_v26 }
 0x33a   :  { %v5934_v25 = vmul.f32 %v4885_v16, %v7989_v41  ;;  %3473 = vpow2.f32 %v2265_v53  ;;  %v5946_v33 = vmul.f32 %v5370_v10, %v7993_v44  ;;  %v7995_v16 = vld [vmem:[#allocation168_spill] sm:$0xff]  ;;  %v7999_v53 = vld [vmem:[#allocation170_spill] sm:$0xff]  ;;  %v5962_v20 = vpop.eup %3455 }
 0x33b   :  { %3475 = vpow2.f32 %v2267_v57  ;;  %v5950_v45 = vmul.f32 %v5269_v56, %v7995_v16  ;;  %v5960_v38 = vmul.f32 %v5264_v27, %v7999_v53  ;;  %v5964_v10 = vpop.eup %3457  ;;  %v2396_v41 = vadd.f32 %v5962_v20, %v5952_v7 }
 0x33c   :  { %7990 = vst [vmem:[#allocation53_spill] sm:$0xff] %v5934_v25  ;;  %v1862_v28 = vmax.f32 %v5934_v25, %v5926_v2  ;;  %7994 = vst [vmem:[#allocation154_spill] sm:$0xff] %v5946_v33  ;;  %v2006_v56 = vmax.f32 %v5956_v26, %v5946_v33 }
 0x33d   :  { %2004 = vmax.xlane.f32.xlu1 %v2003_v4  ;;  %1956 = vmax.xlane.f32.xlu0 %v1955_v42  ;;  %7996 = vst [vmem:[#allocation181_spill] sm:$0xff] %v5950_v45  ;;  %8000 = vst [vmem:[#allocation115_spill] sm:$0xff] %v5960_v38  ;;  %v1958_v57 = vmax.f32 %v5960_v38, %v5950_v45 }
 0x340   :  { %v5970_v4 = vpop.eup %3459 }
 0x341   :  { %1911 = vmax.xlane.f32.xlu1 %v1910_v14  ;;  %1863 = vmax.xlane.f32.xlu0 %v1862_v28  ;;  %v5972_v42 = vpop.eup %3461  ;;  %v2393_v12 = vadd.f32 %v5970_v4, %v5964_v10 }
 0x342   :  { %8001 = vst [vmem:[#allocation56_spill] sm:$0xff] %v5972_v42  ;;  %v5974_v5 = vpop.eup %3463 }
 0x343   :  { %8002 = vst [vmem:[#allocation116_spill] sm:$0xff] %v5974_v5  ;;  %v5976_v27 = vpop.eup %3465  ;;  %v2444_v1 = vadd.f32 %v5974_v5, %v5972_v42 }
 0x344   :  { %8003 = vst [vmem:[#allocation57_spill] sm:$0xff] %v5976_v27  ;;  %v5982_v28 = vpop.eup %3467 }
 0x345   :  { %2007 = vmax.xlane.f32.xlu1 %v2006_v56  ;;  %1959 = vmax.xlane.f32.xlu0 %v1958_v57  ;;  %8004 = vst [vmem:[#allocation180_spill] sm:$0xff] %v5982_v28  ;;  %v5984_v14 = vpop.eup %3469  ;;  %v2441_v53 = vadd.f32 %v5982_v28, %v5976_v27 }
 0x346   :  { %8005 = vst [vmem:[#allocation156_spill] sm:$0xff] %v5984_v14  ;;  %v5986_v44 = vpop.eup %3471 }
 0x347   :  { %8006 = vst [vmem:[#allocation183_spill] sm:$0xff] %v5986_v44  ;;  %v5988_v16 = vpop.eup %3473  ;;  %v2492_v57 = vadd.f32 %v5986_v44, %v5984_v14 }
 0x348   :  { %v5994_v56 = vpop.eup %3475 }
 0x349   :  { %2397 = vadd.xlane.f32.xlu1 %v2396_v41  ;;  %2394 = vadd.xlane.f32.xlu0 %v2393_v12  ;;  %8007 = vst [vmem:[#allocation159_spill] sm:$0xff] %v5994_v56  ;;  %v2489_v41 = vadd.f32 %v5994_v56, %v5988_v16 }
 0x34d   :  { %2445 = vadd.xlane.f32.xlu1 %v2444_v1  ;;  %2442 = vadd.xlane.f32.xlu0 %v2441_v53 }
 0x351   :  { %2493 = vadd.xlane.f32.xlu1 %v2492_v57  ;;  %2490 = vadd.xlane.f32.xlu0 %v2489_v41 }
 0x35e   :  { %v1966_v12 = vpop.xlane.xlu1 %1965  ;;  %v1963_v9 = vpop.xlane.xlu0 %1962 }
 0x35f   :  { %v2107_v29 = vsub.f32 %v5374_v3, %v1966_v12  ;;  %v2108_v39 = vsub.f32 %v5378_v13, %v1966_v12  ;;  %v2105_v28 = vsub.f32 %v5382_v37, %v1963_v9  ;;  %v2106_v27 = vsub.f32 %v5386_v55, %v1963_v9 }
 0x361   :  { %v2333_v1 = vmul.f32 1.442695, %v2107_v29  ;;  %v2335_v53 = vmul.f32 1.442695, %v2108_v39  ;;  %v2329_v5 = vmul.f32 1.442695, %v2105_v28 }
 0x362   :  { %v2331_v42 = vmul.f32 1.442695, %v2106_v27  ;;  %v1873_v44 = vpop.xlane.xlu1 %1872  ;;  %v1825_v14 = vpop.xlane.xlu0 %1824 }
 0x363   :  { %3477 = vpow2.f32 %v2333_v1  ;;  %v2045_v57 = vsub.f32 %v5402_v18, %v1873_v44  ;;  %v2046_v41 = vsub.f32 %v5394_v24, %v1873_v44  ;;  %v2013_v56 = vsub.f32 %v5406_v23, %v1825_v14 }
 0x364   :  { %3479 = vpow2.f32 %v2335_v53  ;;  %v2014_v12 = vsub.f32 %v5398_v19, %v1825_v14 }
 0x365   :  { %3481 = vpow2.f32 %v2329_v5  ;;  %v2209_v37 = vmul.f32 1.442695, %v2045_v57  ;;  %v2211_v13 = vmul.f32 1.442695, %v2046_v41  ;;  %v2145_v9 = vmul.f32 1.442695, %v2013_v56 }
 0x366   :  { %3483 = vpow2.f32 %v2331_v42  ;;  %v2147_v39 = vmul.f32 1.442695, %v2014_v12  ;;  %v1969_v29 = vpop.xlane.xlu1 %1968  ;;  %v1921_v27 = vpop.xlane.xlu0 %1920 }
 0x367   :  { %3485 = vpow2.f32 %v2209_v37  ;;  %v2109_v28 = vsub.f32 %v5422_v49, %v1969_v29  ;;  %v2110_v1 = vsub.f32 %v5414_v61, %v1969_v29  ;;  %v2077_v44 = vsub.f32 %v5426_v11, %v1921_v27 }
 0x368   :  { %3487 = vpow2.f32 %v2211_v13  ;;  %v2078_v53 = vsub.f32 %v5418_v43, %v1921_v27  ;;  %v8018_v43 = vld [vmem:[#allocation93_spill] sm:$0xff] }
 0x369   :  { %3489 = vpow2.f32 %v2145_v9  ;;  %v2337_v14 = vmul.f32 1.442695, %v2109_v28  ;;  %v2339_v5 = vmul.f32 1.442695, %v2110_v1  ;;  %v2273_v57 = vmul.f32 1.442695, %v2077_v44 }
 0x36a   :  { %3491 = vpow2.f32 %v2147_v39  ;;  %v2275_v56 = vmul.f32 1.442695, %v2078_v53  ;;  %v1876_v42 = vpop.xlane.xlu1 %1875  ;;  %v1828_v41 = vpop.xlane.xlu0 %1827 }
 0x36b   :  { %3493 = vpow2.f32 %v2337_v14  ;;  %v2047_v37 = vsub.f32 %v5442_v50, %v1876_v42  ;;  %v2048_v12 = vsub.f32 %v5434_v54, %v1876_v42  ;;  %v2015_v29 = vsub.f32 %v5446_v48, %v1828_v41 }
 0x36c   :  { %3495 = vpow2.f32 %v2339_v5  ;;  %v2016_v13 = vsub.f32 %v5438_v47, %v1828_v41 }
 0x36d   :  { %3497 = vpow2.f32 %v2273_v57  ;;  %v2213_v27 = vmul.f32 1.442695, %v2047_v37  ;;  %v2215_v9 = vmul.f32 1.442695, %v2048_v12  ;;  %v2149_v28 = vmul.f32 1.442695, %v2015_v29 }
 0x36e   :  { %3499 = vpow2.f32 %v2275_v56  ;;  %v2151_v1 = vmul.f32 1.442695, %v2016_v13  ;;  %v1972_v39 = vpop.xlane.xlu1 %1971  ;;  %v1924_v44 = vpop.xlane.xlu0 %1923 }
 0x36f   :  { %3501 = vpow2.f32 %v2213_v27  ;;  %v2111_v53 = vsub.f32 %v5462_v0, %v1972_v39  ;;  %v2112_v14 = vsub.f32 %v5454_v6, %v1972_v39  ;;  %v2079_v42 = vsub.f32 %v5466_v34, %v1924_v44  ;;  %v8010_v0 = vld [vmem:[#allocation78_spill] sm:$0xff] }
 0x370   :  { %v6019_v54 = vpop.eup %3477  ;;  %3503 = vpow2.f32 %v2215_v9  ;;  %v2080_v5 = vsub.f32 %v5458_v32, %v1924_v44 }
 0x371   :  { %v6022_v57 = vpop.eup %3479  ;;  %3505 = vpow2.f32 %v2149_v28  ;;  %v2341_v41 = vmul.f32 1.442695, %v2111_v53  ;;  %v2343_v56 = vmul.f32 1.442695, %v2112_v14  ;;  %v2277_v37 = vmul.f32 1.442695, %v2079_v42 }
 0x372   :  { %v6024_v12 = vpop.eup %3481  ;;  %3507 = vpow2.f32 %v2151_v1  ;;  %v2279_v29 = vmul.f32 1.442695, %v2080_v5  ;;  %v1879_v13 = vpop.xlane.xlu1 %1878  ;;  %v2540_v39 = vadd.f32 %v6022_v57, %v6019_v54 }
 0x373   :  { %v1831_v27 = vpop.xlane.xlu0 %1830  ;;  %v6028_v34 = vpop.eup %3483  ;;  %3509 = vpow2.f32 %v2341_v41  ;;  %v2049_v9 = vsub.f32 %v5482_v51, %v1879_v13  ;;  %v2050_v44 = vsub.f32 %v5474_v62, %v1879_v13 }
 0x374   :  { %v2017_v28 = vsub.f32 %v5486_v35, %v1831_v27  ;;  %v6033_v53 = vpop.eup %3485  ;;  %3511 = vpow2.f32 %v2343_v56  ;;  %v2018_v1 = vsub.f32 %v5478_v40, %v1831_v27  ;;  %2541 = vadd.xlane.f32.xlu1 %v2540_v39  ;;  %v2537_v14 = vadd.f32 %v6028_v34, %v6024_v12 }
 0x375   :  { %v6038_v42 = vpop.eup %3487  ;;  %3513 = vpow2.f32 %v2277_v37  ;;  %v2217_v5 = vmul.f32 1.442695, %v2049_v9  ;;  %v2219_v41 = vmul.f32 1.442695, %v2050_v44 }
 0x376   :  { %v2153_v32 = vmul.f32 1.442695, %v2017_v28  ;;  %v6040_v51 = vpop.eup %3489  ;;  %3515 = vpow2.f32 %v2279_v29  ;;  %v2155_v13 = vmul.f32 1.442695, %v2018_v1  ;;  %2538 = vadd.xlane.f32.xlu0 %v2537_v14  ;;  %v1975_v35 = vpop.xlane.xlu1 %1974  ;;  %v2447_v56 = vadd.f32 %v6038_v42, %v6033_v53  ;;  %v8008_v29 = vld [vmem:[#allocation82_spill] sm:$0xff] }
 0x377   :  { %v1927_v62 = vpop.xlane.xlu0 %1926  ;;  %v6044_v27 = vpop.eup %3491  ;;  %3517 = vpow2.f32 %v2217_v5  ;;  %v2113_v39 = vsub.f32 %v5502_v22, %v1975_v35  ;;  %v2114_v37 = vsub.f32 %v5494_v59, %v1975_v35 }
 0x378   :  { %v2081_v9 = vsub.f32 %v5506_v58, %v1927_v62  ;;  %v6049_v44 = vpop.eup %3493  ;;  %3519 = vpow2.f32 %v2219_v41  ;;  %v2082_v28 = vsub.f32 %v8008_v29, %v1927_v62  ;;  %2448 = vadd.xlane.f32.xlu1 %v2447_v56  ;;  %v2399_v1 = vadd.f32 %v6044_v27, %v6040_v51  ;;  %v8009_v56 = vld [vmem:[#allocation86_spill] sm:$0xff] }
 0x379   :  { %v6054_v14 = vpop.eup %3495  ;;  %3521 = vpow2.f32 %v2153_v32  ;;  %v2345_v40 = vmul.f32 1.442695, %v2113_v39  ;;  %v2347_v5 = vmul.f32 1.442695, %v2114_v37  ;;  %v8011_v39 = vld [vmem:[#allocation104_spill] sm:$0xff] }
 0x37a   :  { %v2281_v6 = vmul.f32 1.442695, %v2081_v9  ;;  %v6056_v22 = vpop.eup %3497  ;;  %3523 = vpow2.f32 %v2155_v13  ;;  %v2283_v35 = vmul.f32 1.442695, %v2082_v28  ;;  %2400 = vadd.xlane.f32.xlu0 %v2399_v1  ;;  %v1882_v58 = vpop.xlane.xlu1 %1881  ;;  %v2543_v62 = vadd.f32 %v6054_v14, %v6049_v44  ;;  %v8013_v13 = vld [vmem:[#allocation97_spill] sm:$0xff] }
 0x37b   :  { %v1834_v59 = vpop.xlane.xlu0 %1833  ;;  %v6060_v41 = vpop.eup %3499  ;;  %3525 = vpow2.f32 %v2345_v40  ;;  %v2051_v29 = vsub.f32 %v8009_v56, %v1882_v58  ;;  %v2052_v32 = vsub.f32 %v8010_v0, %v1882_v58 }
 0x37c   :  { %v2019_v37 = vsub.f32 %v8011_v39, %v1834_v59  ;;  %v6065_v9 = vpop.eup %3501  ;;  %3527 = vpow2.f32 %v2347_v5  ;;  %v2020_v28 = vsub.f32 %v8013_v13, %v1834_v59  ;;  %2544 = vadd.xlane.f32.xlu1 %v2543_v62  ;;  %v2495_v1 = vadd.f32 %v6060_v41, %v6056_v22  ;;  %v8017_v62 = vld [vmem:[#allocation100_spill] sm:$0xff] }
 0x37d   :  { %8012 = vst [vmem:[#allocation119_spill] sm:$0xff] %v6065_v9  ;;  %v6070_v47 = vpop.eup %3503  ;;  %3529 = vpow2.f32 %v2281_v6  ;;  %v2221_v48 = vmul.f32 1.442695, %v2051_v29  ;;  %v2223_v40 = vmul.f32 1.442695, %v2052_v32  ;;  %v8019_v29 = vld [vmem:[#allocation118_spill] sm:$0xff] }
 0x37e   :  { %8014 = vst [vmem:[#allocation60_spill] sm:$0xff] %v6070_v47  ;;  %v2157_v50 = vmul.f32 1.442695, %v2019_v37  ;;  %v6072_v56 = vpop.eup %3505  ;;  %3531 = vpow2.f32 %v2283_v35  ;;  %v2159_v58 = vmul.f32 1.442695, %v2020_v28  ;;  %2496 = vadd.xlane.f32.xlu0 %v2495_v1  ;;  %v1978_v39 = vpop.xlane.xlu1 %1977  ;;  %v2450_v59 = vadd.f32 %v6070_v47, %v6065_v9  ;;  %v8021_v35 = vld [vmem:[#allocation111_spill] sm:$0xff] }
 0x37f   :  { %8015 = vst [vmem:[#allocation120_spill] sm:$0xff] %v6072_v56  ;;  %v1930_v0 = vpop.xlane.xlu0 %1929  ;;  %v6076_v5 = vpop.eup %3507  ;;  %3533 = vpow2.f32 %v2221_v48  ;;  %v2115_v13 = vsub.f32 %v8017_v62, %v1978_v39  ;;  %v2116_v6 = vsub.f32 %v8018_v43, %v1978_v39 }
 0x380   :  { %8016 = vst [vmem:[#allocation61_spill] sm:$0xff] %v6076_v5  ;;  %v2083_v32 = vsub.f32 %v8019_v29, %v1930_v0  ;;  %v6081_v37 = vpop.eup %3509  ;;  %3535 = vpow2.f32 %v2223_v40  ;;  %v2084_v28 = vsub.f32 %v8021_v35, %v1930_v0  ;;  %2451 = vadd.xlane.f32.xlu1 %v2450_v59  ;;  %v2402_v1 = vadd.f32 %v6076_v5, %v6072_v56  ;;  %v8025_v59 = vld [vmem:[#allocation114_spill] sm:$0xff]  ;;  %v8026_v5 = vld [vmem:[#allocation107_spill] sm:$0xff] }
 0x381   :  { %8020 = vst [vmem:[#allocation182_spill] sm:$0xff] %v6081_v37  ;;  %v6086_v11 = vpop.eup %3511  ;;  %3537 = vpow2.f32 %v2157_v50  ;;  %v2349_v47 = vmul.f32 1.442695, %v2115_v13  ;;  %v2351_v48 = vmul.f32 1.442695, %v2116_v6  ;;  %v8027_v13 = vld [vmem:[#allocation132_spill] sm:$0xff] }
 0x382   :  { %8022 = vst [vmem:[#allocation158_spill] sm:$0xff] %v6086_v11  ;;  %v2285_v9 = vmul.f32 1.442695, %v2083_v32  ;;  %v6088_v62 = vpop.eup %3513  ;;  %3539 = vpow2.f32 %v2159_v58  ;;  %v2287_v39 = vmul.f32 1.442695, %v2084_v28  ;;  %2403 = vadd.xlane.f32.xlu0 %v2402_v1  ;;  %v1885_v43 = vpop.xlane.xlu1 %1884  ;;  %v2546_v0 = vadd.f32 %v6086_v11, %v6081_v37  ;;  %v8029_v58 = vld [vmem:[#allocation125_spill] sm:$0xff] }
 0x383   :  { %8023 = vst [vmem:[#allocation11_spill] sm:$0xff] %v6088_v62  ;;  %v1837_v29 = vpop.xlane.xlu0 %1836  ;;  %v6092_v40 = vpop.eup %3515  ;;  %3541 = vpow2.f32 %v2349_v47  ;;  %v2053_v35 = vsub.f32 %v8025_v59, %v1885_v43  ;;  %v2054_v50 = vsub.f32 %v8026_v5, %v1885_v43 }
 0x384   :  { %8024 = vst [vmem:[#allocation161_spill] sm:$0xff] %v6092_v40  ;;  %v2021_v6 = vsub.f32 %v8027_v13, %v1837_v29  ;;  %v6097_v32 = vpop.eup %3517  ;;  %3543 = vpow2.f32 %v2351_v48  ;;  %v2022_v28 = vsub.f32 %v8029_v58, %v1837_v29  ;;  %2547 = vadd.xlane.f32.xlu1 %v2546_v0  ;;  %v2498_v1 = vadd.f32 %v6092_v40, %v6088_v62  ;;  %v8033_v0 = vld [vmem:[#allocation128_spill] sm:$0xff]  ;;  %v8034_v40 = vld [vmem:[#allocation121_spill] sm:$0xff] }
 0x385   :  { %8028 = vst [vmem:[#allocation122_spill] sm:$0xff] %v6097_v32  ;;  %v6102_v56 = vpop.eup %3519  ;;  %3545 = vpow2.f32 %v2285_v9  ;;  %v2225_v11 = vmul.f32 1.442695, %v2053_v35  ;;  %v2227_v47 = vmul.f32 1.442695, %v2054_v50  ;;  %v8035_v35 = vld [vmem:[#allocation89_spill] sm:$0xff] }
 0x386   :  { %8030 = vst [vmem:[#allocation64_spill] sm:$0xff] %v6102_v56  ;;  %v2161_v37 = vmul.f32 1.442695, %v2021_v6  ;;  %v6104_v59 = vpop.eup %3521  ;;  %3547 = vpow2.f32 %v2287_v39  ;;  %v2163_v43 = vmul.f32 1.442695, %v2022_v28  ;;  %2499 = vadd.xlane.f32.xlu0 %v2498_v1  ;;  %v1981_v13 = vpop.xlane.xlu1 %1980  ;;  %v2453_v29 = vadd.f32 %v6102_v56, %v6097_v32  ;;  %v8037_v39 = vld [vmem:[#allocation139_spill] sm:$0xff] }
 0x387   :  { %8031 = vst [vmem:[#allocation123_spill] sm:$0xff] %v6104_v59  ;;  %v1933_v5 = vpop.xlane.xlu0 %1932  ;;  %v6108_v48 = vpop.eup %3523  ;;  %3549 = vpow2.f32 %v2225_v11  ;;  %v2117_v58 = vsub.f32 %v8033_v0, %v1981_v13  ;;  %v2118_v9 = vsub.f32 %v8034_v40, %v1981_v13 }
 0x388   :  { %8032 = vst [vmem:[#allocation65_spill] sm:$0xff] %v6108_v48  ;;  %v2085_v50 = vsub.f32 %v8035_v35, %v1933_v5  ;;  %v6113_v6 = vpop.eup %3525  ;;  %3551 = vpow2.f32 %v2227_v47  ;;  %v2086_v28 = vsub.f32 %v8037_v39, %v1933_v5  ;;  %2454 = vadd.xlane.f32.xlu1 %v2453_v29  ;;  %v2405_v1 = vadd.f32 %v6108_v48, %v6104_v59  ;;  %v8041_v29 = vld [vmem:[#allocation103_spill] sm:$0xff] }
 0x389   :  { %8036 = vst [vmem:[#allocation8_spill] sm:$0xff] %v6113_v6  ;;  %v6118_v62 = vpop.eup %3527  ;;  %3553 = vpow2.f32 %v2161_v37  ;;  %v2353_v56 = vmul.f32 1.442695, %v2117_v58  ;;  %v2355_v11 = vmul.f32 1.442695, %v2118_v9  ;;  %v8042_v48 = vld [vmem:[#allocation135_spill] sm:$0xff] }
 0x38a   :  { %8038 = vst [vmem:[#allocation160_spill] sm:$0xff] %v6118_v62  ;;  %v2289_v32 = vmul.f32 1.442695, %v2085_v50  ;;  %v6120_v0 = vpop.eup %3529  ;;  %3555 = vpow2.f32 %v2163_v43  ;;  %v2291_v13 = vmul.f32 1.442695, %v2086_v28  ;;  %2406 = vadd.xlane.f32.xlu0 %v2405_v1  ;;  %v1888_v40 = vpop.xlane.xlu1 %1887  ;;  %v2549_v5 = vadd.f32 %v6118_v62, %v6113_v6  ;;  %v8043_v58 = vld [vmem:[#allocation110_spill] sm:$0xff] }
 0x38b   :  { %8039 = vst [vmem:[#allocation13_spill] sm:$0xff] %v6120_v0  ;;  %v1840_v35 = vpop.xlane.xlu0 %1839  ;;  %v6124_v47 = vpop.eup %3531  ;;  %3557 = vpow2.f32 %v2353_v56  ;;  %v2055_v39 = vsub.f32 %v8041_v29, %v1888_v40  ;;  %v2056_v37 = vsub.f32 %v8042_v48, %v1888_v40  ;;  %v8045_v43 = vld [vmem:[#allocation96_spill] sm:$0xff] }
 0x38c   :  { %8040 = vst [vmem:[#allocation163_spill] sm:$0xff] %v6124_v47  ;;  %v2023_v9 = vsub.f32 %v8043_v58, %v1840_v35  ;;  %v6129_v50 = vpop.eup %3533  ;;  %3559 = vpow2.f32 %v2355_v11  ;;  %v2024_v28 = vsub.f32 %v8045_v43, %v1840_v35  ;;  %2550 = vadd.xlane.f32.xlu1 %v2549_v5  ;;  %v2501_v1 = vadd.f32 %v6124_v47, %v6120_v0  ;;  %v8049_v5 = vld [vmem:[#allocation131_spill] sm:$0xff]  ;;  %v8050_v47 = vld [vmem:[#allocation117_spill] sm:$0xff] }
 0x38d   :  { %8044 = vst [vmem:[#allocation126_spill] sm:$0xff] %v6129_v50  ;;  %v6134_v59 = vpop.eup %3535  ;;  %3561 = vpow2.f32 %v2289_v32  ;;  %v2229_v62 = vmul.f32 1.442695, %v2055_v39  ;;  %v2231_v56 = vmul.f32 1.442695, %v2056_v37  ;;  %v8051_v39 = vld [vmem:[#allocation138_spill] sm:$0xff] }
 0x38e   :  { %8046 = vst [vmem:[#allocation68_spill] sm:$0xff] %v6134_v59  ;;  %v2165_v6 = vmul.f32 1.442695, %v2023_v9  ;;  %v6136_v29 = vpop.eup %3537  ;;  %3563 = vpow2.f32 %v2291_v13  ;;  %v2167_v40 = vmul.f32 1.442695, %v2024_v28  ;;  %2502 = vadd.xlane.f32.xlu0 %v2501_v1  ;;  %v1984_v58 = vpop.xlane.xlu1 %1983  ;;  %v2456_v35 = vadd.f32 %v6134_v59, %v6129_v50  ;;  %v8053_v13 = vld [vmem:[#allocation124_spill] sm:$0xff] }
 0x38f   :  { %8047 = vst [vmem:[#allocation127_spill] sm:$0xff] %v6136_v29  ;;  %v1936_v48 = vpop.xlane.xlu0 %1935  ;;  %v6140_v11 = vpop.eup %3539  ;;  %3565 = vpow2.f32 %v2229_v62  ;;  %v2119_v43 = vsub.f32 %v8049_v5, %v1984_v58  ;;  %v2120_v32 = vsub.f32 %v8050_v47, %v1984_v58 }
 0x390   :  { %8048 = vst [vmem:[#allocation69_spill] sm:$0xff] %v6140_v11  ;;  %v2087_v37 = vsub.f32 %v8051_v39, %v1936_v48  ;;  %v6145_v9 = vpop.eup %3541  ;;  %3567 = vpow2.f32 %v2231_v56  ;;  %v2088_v28 = vsub.f32 %v8053_v13, %v1936_v48  ;;  %2457 = vadd.xlane.f32.xlu1 %v2456_v35  ;;  %v2408_v1 = vadd.f32 %v6140_v11, %v6136_v29  ;;  %v8057_v35 = vld [vmem:[#allocation20_spill] sm:$0xff] }
 0x391   :  { %8052 = vst [vmem:[#allocation9_spill] sm:$0xff] %v6145_v9  ;;  %v6150_v0 = vpop.eup %3543  ;;  %3569 = vpow2.f32 %v2165_v6  ;;  %v2357_v59 = vmul.f32 1.442695, %v2119_v43  ;;  %v2359_v62 = vmul.f32 1.442695, %v2120_v32  ;;  %v8058_v11 = vld [vmem:[#allocation24_spill] sm:$0xff] }
 0x392   :  { %8054 = vst [vmem:[#allocation162_spill] sm:$0xff] %v6150_v0  ;;  %v2293_v50 = vmul.f32 1.442695, %v2087_v37  ;;  %v6152_v5 = vpop.eup %3545  ;;  %3571 = vpow2.f32 %v2167_v40  ;;  %v2295_v58 = vmul.f32 1.442695, %v2088_v28  ;;  %2409 = vadd.xlane.f32.xlu0 %v2408_v1  ;;  %v1891_v47 = vpop.xlane.xlu1 %1890  ;;  %v2552_v48 = vadd.f32 %v6150_v0, %v6145_v9  ;;  %v8059_v43 = vld [vmem:[#allocation21_spill] sm:$0xff] }
 0x393   :  { %8055 = vst [vmem:[#allocation15_spill] sm:$0xff] %v6152_v5  ;;  %v1843_v39 = vpop.xlane.xlu0 %1842  ;;  %v6156_v56 = vpop.eup %3547  ;;  %3573 = vpow2.f32 %v2357_v59  ;;  %v2057_v13 = vsub.f32 %v8057_v35, %v1891_v47  ;;  %v2058_v6 = vsub.f32 %v8058_v11, %v1891_v47  ;;  %v8061_v40 = vld [vmem:[#allocation25_spill] sm:$0xff] }
 0x394   :  { %8056 = vst [vmem:[#allocation165_spill] sm:$0xff] %v6156_v56  ;;  %v2025_v32 = vsub.f32 %v8059_v43, %v1843_v39  ;;  %v6161_v37 = vpop.eup %3549  ;;  %3575 = vpow2.f32 %v2359_v62  ;;  %v2026_v28 = vsub.f32 %v8061_v40, %v1843_v39  ;;  %2553 = vadd.xlane.f32.xlu1 %v2552_v48  ;;  %v2504_v1 = vadd.f32 %v6156_v56, %v6152_v5  ;;  %v8065_v48 = vld [vmem:[#allocation85_spill] sm:$0xff]  ;;  %v8066_v56 = vld [vmem:[#allocation88_spill] sm:$0xff] }
 0x395   :  { %8060 = vst [vmem:[#allocation72_spill] sm:$0xff] %v6161_v37  ;;  %v6166_v29 = vpop.eup %3551  ;;  %3577 = vpow2.f32 %v2293_v50  ;;  %v2233_v0 = vmul.f32 1.442695, %v2057_v13  ;;  %v2235_v59 = vmul.f32 1.442695, %v2058_v6  ;;  %v8067_v13 = vld [vmem:[#allocation84_spill] sm:$0xff] }
 0x396   :  { %8062 = vst [vmem:[#allocation129_spill] sm:$0xff] %v6166_v29  ;;  %v2169_v9 = vmul.f32 1.442695, %v2025_v32  ;;  %v6168_v35 = vpop.eup %3553  ;;  %3579 = vpow2.f32 %v2295_v58  ;;  %v2171_v47 = vmul.f32 1.442695, %v2026_v28  ;;  %2505 = vadd.xlane.f32.xlu0 %v2504_v1  ;;  %v1987_v43 = vpop.xlane.xlu1 %1986  ;;  %v2459_v39 = vadd.f32 %v6166_v29, %v6161_v37  ;;  %v8069_v58 = vld [vmem:[#allocation87_spill] sm:$0xff] }
 0x397   :  { %8063 = vst [vmem:[#allocation73_spill] sm:$0xff] %v6168_v35  ;;  %v1939_v11 = vpop.xlane.xlu0 %1938  ;;  %v6172_v62 = vpop.eup %3555  ;;  %3581 = vpow2.f32 %v2233_v0  ;;  %v2121_v40 = vsub.f32 %v8065_v48, %v1987_v43  ;;  %v2122_v50 = vsub.f32 %v8066_v56, %v1987_v43 }
 0x398   :  { %8064 = vst [vmem:[#allocation130_spill] sm:$0xff] %v6172_v62  ;;  %v2089_v6 = vsub.f32 %v8067_v13, %v1939_v11  ;;  %v6177_v32 = vpop.eup %3557  ;;  %3583 = vpow2.f32 %v2235_v59  ;;  %v2090_v28 = vsub.f32 %v8069_v58, %v1939_v11  ;;  %2460 = vadd.xlane.f32.xlu1 %v2459_v39  ;;  %v2411_v1 = vadd.f32 %v6172_v62, %v6168_v35  ;;  %v8073_v39 = vld [vmem:[#allocation141_spill] sm:$0xff]  ;;  %v8074_v62 = vld [vmem:[#allocation143_spill] sm:$0xff] }
 0x399   :  { %8068 = vst [vmem:[#allocation10_spill] sm:$0xff] %v6177_v32  ;;  %v6182_v5 = vpop.eup %3559  ;;  %3585 = vpow2.f32 %v2169_v9  ;;  %v2361_v29 = vmul.f32 1.442695, %v2121_v40  ;;  %v2363_v0 = vmul.f32 1.442695, %v2122_v50  ;;  %v8075_v40 = vld [vmem:[#allocation140_spill] sm:$0xff] }
 0x39a   :  { %8070 = vst [vmem:[#allocation164_spill] sm:$0xff] %v6182_v5  ;;  %v2297_v37 = vmul.f32 1.442695, %v2089_v6  ;;  %v6184_v48 = vpop.eup %3561  ;;  %3587 = vpow2.f32 %v2171_v47  ;;  %v2299_v43 = vmul.f32 1.442695, %v2090_v28  ;;  %2412 = vadd.xlane.f32.xlu0 %v2411_v1  ;;  %v1894_v13 = vpop.xlane.xlu1 %1893  ;;  %v2555_v11 = vadd.f32 %v6182_v5, %v6177_v32  ;;  %v8077_v47 = vld [vmem:[#allocation142_spill] sm:$0xff] }
 0x39b   :  { %8071 = vst [vmem:[#allocation133_spill] sm:$0xff] %v6184_v48  ;;  %v1846_v56 = vpop.xlane.xlu0 %1845  ;;  %v6188_v59 = vpop.eup %3563  ;;  %3589 = vpow2.f32 %v2361_v29  ;;  %v2059_v58 = vsub.f32 %v8073_v39, %v1894_v13  ;;  %v2060_v9 = vsub.f32 %v8074_v62, %v1894_v13 }
 0x39c   :  { %8072 = vst [vmem:[#allocation76_spill] sm:$0xff] %v6188_v59  ;;  %v2027_v50 = vsub.f32 %v8075_v40, %v1846_v56  ;;  %v6193_v6 = vpop.eup %3565  ;;  %3591 = vpow2.f32 %v2363_v0  ;;  %v2028_v28 = vsub.f32 %v8077_v47, %v1846_v56  ;;  %2556 = vadd.xlane.f32.xlu1 %v2555_v11  ;;  %v2507_v1 = vadd.f32 %v6188_v59, %v6184_v48  ;;  %v8081_v11 = vld [vmem:[#allocation92_spill] sm:$0xff]  ;;  %v8082_v59 = vld [vmem:[#allocation91_spill] sm:$0xff] }
 0x39d   :  { %8076 = vst [vmem:[#allocation17_spill] sm:$0xff] %v6193_v6  ;;  %v6198_v35 = vpop.eup %3567  ;;  %3593 = vpow2.f32 %v2297_v37  ;;  %v2237_v5 = vmul.f32 1.442695, %v2059_v58  ;;  %v2239_v29 = vmul.f32 1.442695, %v2060_v9  ;;  %v8083_v58 = vld [vmem:[#allocation29_spill] sm:$0xff] }
 0x39e   :  { %8078 = vst [vmem:[#allocation167_spill] sm:$0xff] %v6198_v35  ;;  %v2173_v32 = vmul.f32 1.442695, %v2027_v50  ;;  %v6200_v39 = vpop.eup %3569  ;;  %3595 = vpow2.f32 %v2299_v43  ;;  %v2175_v13 = vmul.f32 1.442695, %v2028_v28  ;;  %2508 = vadd.xlane.f32.xlu0 %v2507_v1  ;;  %v1990_v40 = vpop.xlane.xlu1 %1989  ;;  %v2462_v56 = vadd.f32 %v6198_v35, %v6193_v6  ;;  %v8085_v43 = vld [vmem:[#allocation28_spill] sm:$0xff] }
 0x39f   :  { %8079 = vst [vmem:[#allocation134_spill] sm:$0xff] %v6200_v39  ;;  %v1942_v62 = vpop.xlane.xlu0 %1941  ;;  %v6204_v0 = vpop.eup %3571  ;;  %3597 = vpow2.f32 %v2237_v5  ;;  %v2123_v47 = vsub.f32 %v8081_v11, %v1990_v40  ;;  %v2124_v37 = vsub.f32 %v8082_v59, %v1990_v40 }
 0x3a0   :  { %8080 = vst [vmem:[#allocation77_spill] sm:$0xff] %v6204_v0  ;;  %v2091_v9 = vsub.f32 %v8083_v58, %v1942_v62  ;;  %v6209_v50 = vpop.eup %3573  ;;  %3599 = vpow2.f32 %v2239_v29  ;;  %v2092_v28 = vsub.f32 %v8085_v43, %v1942_v62  ;;  %2463 = vadd.xlane.f32.xlu1 %v2462_v56  ;;  %v2414_v1 = vadd.f32 %v6204_v0, %v6200_v39  ;;  %v8089_v56 = vld [vmem:[#allocation94_spill] sm:$0xff]  ;;  %v8090_v0 = vld [vmem:[#allocation144_spill] sm:$0xff] }
 0x3a1   :  { %8084 = vst [vmem:[#allocation166_spill] sm:$0xff] %v6209_v50  ;;  %v6214_v48 = vpop.eup %3575  ;;  %3601 = vpow2.f32 %v2173_v32  ;;  %v2365_v35 = vmul.f32 1.442695, %v2123_v47  ;;  %v2367_v5 = vmul.f32 1.442695, %v2124_v37  ;;  %v8091_v47 = vld [vmem:[#allocation32_spill] sm:$0xff] }
 0x3a2   :  { %8086 = vst [vmem:[#allocation12_spill] sm:$0xff] %v6214_v48  ;;  %v2301_v6 = vmul.f32 1.442695, %v2091_v9  ;;  %v6216_v11 = vpop.eup %3577  ;;  %3603 = vpow2.f32 %v2175_v13  ;;  %v2303_v40 = vmul.f32 1.442695, %v2092_v28  ;;  %2415 = vadd.xlane.f32.xlu0 %v2414_v1  ;;  %v1897_v58 = vpop.xlane.xlu1 %1896  ;;  %v2558_v62 = vadd.f32 %v6214_v48, %v6209_v50  ;;  %v8093_v13 = vld [vmem:[#allocation145_spill] sm:$0xff] }
 0x3a3   :  { %8087 = vst [vmem:[#allocation19_spill] sm:$0xff] %v6216_v11  ;;  %v1849_v59 = vpop.xlane.xlu0 %1848  ;;  %v6220_v29 = vpop.eup %3579  ;;  %3605 = vpow2.f32 %v2365_v35  ;;  %v2061_v43 = vsub.f32 %v8089_v56, %v1897_v58  ;;  %v2062_v32 = vsub.f32 %v8090_v0, %v1897_v58 }
 0x3a4   :  { %8088 = vst [vmem:[#allocation169_spill] sm:$0xff] %v6220_v29  ;;  %v2029_v37 = vsub.f32 %v8091_v47, %v1849_v59  ;;  %v6225_v9 = vpop.eup %3581  ;;  %3607 = vpow2.f32 %v2367_v5  ;;  %v2030_v28 = vsub.f32 %v8093_v13, %v1849_v59  ;;  %2559 = vadd.xlane.f32.xlu1 %v2558_v62  ;;  %v2510_v1 = vadd.f32 %v6220_v29, %v6216_v11  ;;  %v8097_v62 = vld [vmem:[#allocation146_spill] sm:$0xff]  ;;  %v8098_v29 = vld [vmem:[#allocation95_spill] sm:$0xff] }
 0x3a5   :  { %8092 = vst [vmem:[#allocation136_spill] sm:$0xff] %v6225_v9  ;;  %v6230_v39 = vpop.eup %3583  ;;  %3609 = vpow2.f32 %v2301_v6  ;;  %v2241_v48 = vmul.f32 1.442695, %v2061_v43  ;;  %v2243_v35 = vmul.f32 1.442695, %v2062_v32  ;;  %v8099_v43 = vld [vmem:[#allocation98_spill] sm:$0xff] }
 0x3a6   :  { %8094 = vst [vmem:[#allocation80_spill] sm:$0xff] %v6230_v39  ;;  %v2177_v50 = vmul.f32 1.442695, %v2029_v37  ;;  %v6232_v56 = vpop.eup %3585  ;;  %3611 = vpow2.f32 %v2303_v40  ;;  %v2179_v58 = vmul.f32 1.442695, %v2030_v28  ;;  %2511 = vadd.xlane.f32.xlu0 %v2510_v1  ;;  %v1993_v47 = vpop.xlane.xlu1 %1992  ;;  %v2465_v59 = vadd.f32 %v6230_v39, %v6225_v9  ;;  %v8101_v40 = vld [vmem:[#allocation33_spill] sm:$0xff] }
 0x3a7   :  { %8095 = vst [vmem:[#allocation81_spill] sm:$0xff] %v6232_v56  ;;  %v1945_v0 = vpop.xlane.xlu0 %1944  ;;  %v6236_v5 = vpop.eup %3587  ;;  %3613 = vpow2.f32 %v2241_v48  ;;  %v2125_v13 = vsub.f32 %v8097_v62, %v1993_v47  ;;  %v2126_v6 = vsub.f32 %v8098_v29, %v1993_v47 }
 0x3a8   :  { %8096 = vst [vmem:[#allocation137_spill] sm:$0xff] %v6236_v5  ;;  %v2093_v32 = vsub.f32 %v8099_v43, %v1945_v0  ;;  %v6241_v37 = vpop.eup %3589  ;;  %3615 = vpow2.f32 %v2243_v35  ;;  %v2094_v28 = vsub.f32 %v8101_v40, %v1945_v0  ;;  %2466 = vadd.xlane.f32.xlu1 %v2465_v59  ;;  %v2417_v1 = vadd.f32 %v6236_v5, %v6232_v56  ;;  %v8105_v59 = vld [vmem:[#allocation37_spill] sm:$0xff]  ;;  %v8106_v5 = vld [vmem:[#allocation36_spill] sm:$0xff] }
 0x3a9   :  { %8100 = vst [vmem:[#allocation14_spill] sm:$0xff] %v6241_v37  ;;  %v6246_v11 = vpop.eup %3591  ;;  %3617 = vpow2.f32 %v2177_v50  ;;  %v2369_v39 = vmul.f32 1.442695, %v2125_v13  ;;  %v2371_v48 = vmul.f32 1.442695, %v2126_v6  ;;  %v8107_v13 = vld [vmem:[#allocation171_spill] sm:$0xff] }
 0x3aa   :  { %8102 = vst [vmem:[#allocation168_spill] sm:$0xff] %v6246_v11  ;;  %v2305_v9 = vmul.f32 1.442695, %v2093_v32  ;;  %v6248_v62 = vpop.eup %3593  ;;  %3619 = vpow2.f32 %v2179_v58  ;;  %v2307_v47 = vmul.f32 1.442695, %v2094_v28  ;;  %2418 = vadd.xlane.f32.xlu0 %v2417_v1  ;;  %v1900_v43 = vpop.xlane.xlu1 %1899  ;;  %v2561_v0 = vadd.f32 %v6246_v11, %v6241_v37  ;;  %v8109_v58 = vld [vmem:[#allocation99_spill] sm:$0xff] }
 0x3ab   :  { %8103 = vst [vmem:[#allocation16_spill] sm:$0xff] %v6248_v62  ;;  %v1852_v29 = vpop.xlane.xlu0 %1851  ;;  %v6252_v35 = vpop.eup %3595  ;;  %3621 = vpow2.f32 %v2369_v39  ;;  %v2063_v40 = vsub.f32 %v8105_v59, %v1900_v43  ;;  %v2064_v50 = vsub.f32 %v8106_v5, %v1900_v43 }
 0x3ac   :  { %8104 = vst [vmem:[#allocation170_spill] sm:$0xff] %v6252_v35  ;;  %v2031_v6 = vsub.f32 %v8107_v13, %v1852_v29  ;;  %v6257_v32 = vpop.eup %3597  ;;  %3623 = vpow2.f32 %v2371_v48  ;;  %v2032_v28 = vsub.f32 %v8109_v58, %v1852_v29  ;;  %2562 = vadd.xlane.f32.xlu1 %v2561_v0  ;;  %v2513_v1 = vadd.f32 %v6252_v35, %v6248_v62  ;;  %v8113_v0 = vld [vmem:[#allocation148_spill] sm:$0xff]  ;;  %v8114_v35 = vld [vmem:[#allocation147_spill] sm:$0xff] }
 0x3ad   :  { %8108 = vst [vmem:[#allocation184_spill] sm:$0xff] %v6257_v32  ;;  %v6262_v56 = vpop.eup %3599  ;;  %3625 = vpow2.f32 %v2305_v9  ;;  %v2245_v11 = vmul.f32 1.442695, %v2063_v40  ;;  %v2247_v39 = vmul.f32 1.442695, %v2064_v50  ;;  %v8115_v40 = vld [vmem:[#allocation101_spill] sm:$0xff] }
 0x3ae   :  { %8110 = vst [vmem:[#allocation185_spill] sm:$0xff] %v6262_v56  ;;  %v2181_v37 = vmul.f32 1.442695, %v2031_v6  ;;  %v6264_v59 = vpop.eup %3601  ;;  %3627 = vpow2.f32 %v2307_v47  ;;  %v2183_v43 = vmul.f32 1.442695, %v2032_v28  ;;  %2514 = vadd.xlane.f32.xlu0 %v2513_v1  ;;  %v1996_v13 = vpop.xlane.xlu1 %1995  ;;  %v2468_v29 = vadd.f32 %v6262_v56, %v6257_v32  ;;  %v8117_v47 = vld [vmem:[#allocation173_spill] sm:$0xff] }
 0x3af   :  { %8111 = vst [vmem:[#allocation186_spill] sm:$0xff] %v6264_v59  ;;  %v1948_v5 = vpop.xlane.xlu0 %1947  ;;  %v6268_v48 = vpop.eup %3603  ;;  %3629 = vpow2.f32 %v2245_v11  ;;  %v2127_v58 = vsub.f32 %v8113_v0, %v1996_v13  ;;  %v2128_v9 = vsub.f32 %v8114_v35, %v1996_v13 }
 0x3b0   :  { %8112 = vst [vmem:[#allocation187_spill] sm:$0xff] %v6268_v48  ;;  %v2095_v50 = vsub.f32 %v8115_v40, %v1948_v5  ;;  %v6273_v6 = vpop.eup %3605  ;;  %3631 = vpow2.f32 %v2247_v39  ;;  %v2096_v28 = vsub.f32 %v8117_v47, %v1948_v5  ;;  %2469 = vadd.xlane.f32.xlu1 %v2468_v29  ;;  %v2420_v1 = vadd.f32 %v6268_v48, %v6264_v59  ;;  %v8121_v29 = vld [vmem:[#allocation41_spill] sm:$0xff]  ;;  %v8122_v48 = vld [vmem:[#allocation40_spill] sm:$0xff] }
 0x3b1   :  { %8116 = vst [vmem:[#allocation188_spill] sm:$0xff] %v6273_v6  ;;  %v6278_v62 = vpop.eup %3607  ;;  %3633 = vpow2.f32 %v2181_v37  ;;  %v2373_v56 = vmul.f32 1.442695, %v2127_v58  ;;  %v2375_v11 = vmul.f32 1.442695, %v2128_v9  ;;  %v8123_v58 = vld [vmem:[#allocation172_spill] sm:$0xff] }
 0x3b2   :  { %8118 = vst [vmem:[#allocation189_spill] sm:$0xff] %v6278_v62  ;;  %v2309_v32 = vmul.f32 1.442695, %v2095_v50  ;;  %v6280_v0 = vpop.eup %3609  ;;  %3635 = vpow2.f32 %v2183_v43  ;;  %v2311_v13 = vmul.f32 1.442695, %v2096_v28  ;;  %2421 = vadd.xlane.f32.xlu0 %v2420_v1  ;;  %v1903_v40 = vpop.xlane.xlu1 %1902  ;;  %v2564_v5 = vadd.f32 %v6278_v62, %v6273_v6  ;;  %v8125_v43 = vld [vmem:[#allocation102_spill] sm:$0xff] }
 0x3b3   :  { %8119 = vst [vmem:[#allocation190_spill] sm:$0xff] %v6280_v0  ;;  %v1855_v35 = vpop.xlane.xlu0 %1854  ;;  %v6284_v39 = vpop.eup %3611  ;;  %3637 = vpow2.f32 %v2373_v56  ;;  %v2065_v47 = vsub.f32 %v8121_v29, %v1903_v40  ;;  %v2066_v37 = vsub.f32 %v8122_v48, %v1903_v40 }
 0x3b4   :  { %8120 = vst [vmem:[#allocation191_spill] sm:$0xff] %v6284_v39  ;;  %v2033_v9 = vsub.f32 %v8123_v58, %v1855_v35  ;;  %v6289_v50 = vpop.eup %3613  ;;  %3639 = vpow2.f32 %v2375_v11  ;;  %v2034_v28 = vsub.f32 %v8125_v43, %v1855_v35  ;;  %2565 = vadd.xlane.f32.xlu1 %v2564_v5  ;;  %v2516_v1 = vadd.f32 %v6284_v39, %v6280_v0  ;;  %v8129_v5 = vld [vmem:[#allocation150_spill] sm:$0xff]  ;;  %v8130_v39 = vld [vmem:[#allocation149_spill] sm:$0xff] }
 0x3b5   :  { %8124 = vst [vmem:[#allocation192_spill] sm:$0xff] %v6289_v50  ;;  %v6294_v59 = vpop.eup %3615  ;;  %3641 = vpow2.f32 %v2309_v32  ;;  %v2249_v62 = vmul.f32 1.442695, %v2065_v47  ;;  %v2251_v56 = vmul.f32 1.442695, %v2066_v37  ;;  %v8131_v47 = vld [vmem:[#allocation105_spill] sm:$0xff] }
 0x3b6   :  { %8126 = vst [vmem:[#allocation193_spill] sm:$0xff] %v6294_v59  ;;  %v2185_v6 = vmul.f32 1.442695, %v2033_v9  ;;  %v6296_v29 = vpop.eup %3617  ;;  %3643 = vpow2.f32 %v2311_v13  ;;  %v2187_v40 = vmul.f32 1.442695, %v2034_v28  ;;  %2517 = vadd.xlane.f32.xlu0 %v2516_v1  ;;  %v1999_v58 = vpop.xlane.xlu1 %1998  ;;  %v2471_v35 = vadd.f32 %v6294_v59, %v6289_v50  ;;  %v8133_v13 = vld [vmem:[#allocation175_spill] sm:$0xff] }
 0x3b7   :  { %8127 = vst [vmem:[#allocation194_spill] sm:$0xff] %v6296_v29  ;;  %v1951_v48 = vpop.xlane.xlu0 %1950  ;;  %v6300_v11 = vpop.eup %3619  ;;  %3645 = vpow2.f32 %v2249_v62  ;;  %v2129_v43 = vsub.f32 %v8129_v5, %v1999_v58  ;;  %v2130_v32 = vsub.f32 %v8130_v39, %v1999_v58 }
 0x3b8   :  { %8128 = vst [vmem:[#allocation195_spill] sm:$0xff] %v6300_v11  ;;  %v2097_v37 = vsub.f32 %v8131_v47, %v1951_v48  ;;  %v6305_v9 = vpop.eup %3621  ;;  %3647 = vpow2.f32 %v2251_v56  ;;  %v2098_v28 = vsub.f32 %v8133_v13, %v1951_v48  ;;  %2472 = vadd.xlane.f32.xlu1 %v2471_v35  ;;  %v2423_v1 = vadd.f32 %v6300_v11, %v6296_v29  ;;  %v8135_v35 = vld [vmem:[#allocation174_spill] sm:$0xff] }
 0x3b9   :  { %8132 = vst [vmem:[#allocation196_spill] sm:$0xff] %v6305_v9  ;;  %v6310_v0 = vpop.eup %3623  ;;  %3649 = vpow2.f32 %v2185_v6  ;;  %v2377_v59 = vmul.f32 1.442695, %v2129_v43  ;;  %v2379_v62 = vmul.f32 1.442695, %v2130_v32  ;;  %v8136_v11 = vld [vmem:[#allocation106_spill] sm:$0xff] }
 0x3ba   :  { %8134 = vst [vmem:[#allocation197_spill] sm:$0xff] %v6310_v0  ;;  %v2313_v50 = vmul.f32 1.442695, %v2097_v37  ;;  %v6312_v5 = vpop.eup %3625  ;;  %3651 = vpow2.f32 %v2187_v40  ;;  %v2315_v58 = vmul.f32 1.442695, %v2098_v28  ;;  %2424 = vadd.xlane.f32.xlu0 %v2423_v1  ;;  %v1906_v47 = vpop.xlane.xlu1 %1905  ;;  %v2567_v48 = vadd.f32 %v6310_v0, %v6305_v9  ;;  %v8137_v43 = vld [vmem:[#allocation45_spill] sm:$0xff] }
 0x3bb   :  { %v1858_v39 = vpop.xlane.xlu0 %1857  ;;  %v6316_v56 = vpop.eup %3627  ;;  %3653 = vpow2.f32 %v2377_v59  ;;  %v2067_v13 = vsub.f32 %v8135_v35, %v1906_v47  ;;  %v2068_v6 = vsub.f32 %v8136_v11, %v1906_v47  ;;  %v8139_v40 = vld [vmem:[#allocation44_spill] sm:$0xff] }
 0x3bc   :  { %v2035_v32 = vsub.f32 %v8137_v43, %v1858_v39  ;;  %v6321_v37 = vpop.eup %3629  ;;  %3655 = vpow2.f32 %v2379_v62  ;;  %v2036_v28 = vsub.f32 %v8139_v40, %v1858_v39  ;;  %2568 = vadd.xlane.f32.xlu1 %v2567_v48  ;;  %v2519_v1 = vadd.f32 %v6316_v56, %v6312_v5  ;;  %v8141_v40 = vld [vmem:[#allocation151_spill] sm:$0xff] }
 0x3bd   :  { %8138 = vst [vmem:[#allocation198_spill] sm:$0xff] %v6321_v37  ;;  %v6326_v29 = vpop.eup %3631  ;;  %3657 = vpow2.f32 %v2313_v50  ;;  %v2253_v0 = vmul.f32 1.442695, %v2067_v13  ;;  %v2255_v59 = vmul.f32 1.442695, %v2068_v6 }
 0x3be   :  { %8140 = vst [vmem:[#allocation199_spill] sm:$0xff] %v6326_v29  ;;  %v2189_v9 = vmul.f32 1.442695, %v2035_v32  ;;  %v6328_v35 = vpop.eup %3633  ;;  %3659 = vpow2.f32 %v2315_v58  ;;  %v2191_v47 = vmul.f32 1.442695, %v2036_v28  ;;  %2520 = vadd.xlane.f32.xlu0 %v2519_v1  ;;  %v2002_v43 = vpop.xlane.xlu1 %2001  ;;  %v2474_v39 = vadd.f32 %v6326_v29, %v6321_v37  ;;  %v8142_v58 = vld [vmem:[#allocation177_spill] sm:$0xff] }
 0x3bf   :  { %v1954_v11 = vpop.xlane.xlu0 %1953  ;;  %v6332_v62 = vpop.eup %3635  ;;  %3661 = vpow2.f32 %v2253_v0  ;;  %v2131_v48 = vsub.f32 %v5876_v8, %v2002_v43  ;;  %v2132_v50 = vsub.f32 %v8141_v40, %v2002_v43 }
 0x3c0   :  { %v2099_v13 = vsub.f32 %v5880_v52, %v1954_v11  ;;  %v6337_v6 = vpop.eup %3637  ;;  %3663 = vpow2.f32 %v2255_v59  ;;  %v2100_v32 = vsub.f32 %v8142_v58, %v1954_v11  ;;  %2475 = vadd.xlane.f32.xlu1 %v2474_v39  ;;  %v2426_v28 = vadd.f32 %v6332_v62, %v6328_v35 }
 0x3c1   :  { %v6342_v1 = vpop.eup %3639  ;;  %3665 = vpow2.f32 %v2189_v9  ;;  %v2381_v29 = vmul.f32 1.442695, %v2131_v48  ;;  %v2383_v0 = vmul.f32 1.442695, %v2132_v50 }
 0x3c2   :  { %8143 = vst [vmem:[#allocation200_spill] sm:$0xff] %v6342_v1  ;;  %v2317_v37 = vmul.f32 1.442695, %v2099_v13  ;;  %v6344_v8 = vpop.eup %3641  ;;  %3667 = vpow2.f32 %v2191_v47  ;;  %v2319_v43 = vmul.f32 1.442695, %v2100_v32  ;;  %2427 = vadd.xlane.f32.xlu0 %v2426_v28  ;;  %v1909_v52 = vpop.xlane.xlu1 %1908  ;;  %v2570_v11 = vadd.f32 %v6342_v1, %v6337_v6  ;;  %v8144_v47 = vld [vmem:[#allocation108_spill] sm:$0xff] }
 0x3c3   :  { %v1861_v40 = vpop.xlane.xlu0 %1860  ;;  %v6348_v59 = vpop.eup %3643  ;;  %3669 = vpow2.f32 %v2381_v29  ;;  %v2069_v39 = vsub.f32 %v5885_v30, %v1909_v52  ;;  %v2070_v9 = vsub.f32 %v5867_v46, %v1909_v52 }
 0x3c4   :  { %v2037_v48 = vsub.f32 %v5889_v15, %v1861_v40  ;;  %v6353_v50 = vpop.eup %3645  ;;  %3671 = vpow2.f32 %v2383_v0  ;;  %v2038_v13 = vsub.f32 %v8144_v47, %v1861_v40  ;;  %2571 = vadd.xlane.f32.xlu1 %v2570_v11  ;;  %v2522_v32 = vadd.f32 %v6348_v59, %v6344_v8 }
 0x3c5   :  { %v6358_v28 = vpop.eup %3647  ;;  %3673 = vpow2.f32 %v2317_v37  ;;  %v2257_v58 = vmul.f32 1.442695, %v2069_v39  ;;  %v2259_v29 = vmul.f32 1.442695, %v2070_v9 }
 0x3c6   :  { %v2193_v1 = vmul.f32 1.442695, %v2037_v48  ;;  %v6360_v30 = vpop.eup %3649  ;;  %3675 = vpow2.f32 %v2319_v43  ;;  %v2195_v52 = vmul.f32 1.442695, %v2038_v13  ;;  %2523 = vadd.xlane.f32.xlu0 %v2522_v32  ;;  %v2005_v15 = vpop.xlane.xlu1 %2004  ;;  %v2477_v40 = vadd.f32 %v6358_v28, %v6353_v50 }
 0x3c7   :  { %8145 = vst [vmem:[#allocation201_spill] sm:$0xff] %v6360_v30  ;;  %v1957_v46 = vpop.xlane.xlu0 %1956  ;;  %v6364_v0 = vpop.eup %3651  ;;  %3677 = vpow2.f32 %v2257_v58  ;;  %v2133_v11 = vsub.f32 %v5914_v21, %v2005_v15  ;;  %v2134_v37 = vsub.f32 %v5910_v63, %v2005_v15 }
 0x3c8   :  { %8146 = vst [vmem:[#allocation202_spill] sm:$0xff] %v6364_v0  ;;  %v2101_v39 = vsub.f32 %v5918_v36, %v1957_v46  ;;  %v6369_v9 = vpop.eup %3653  ;;  %3679 = vpow2.f32 %v2259_v29  ;;  %v2102_v43 = vsub.f32 %v5905_v60, %v1957_v46  ;;  %2478 = vadd.xlane.f32.xlu1 %v2477_v40  ;;  %v2429_v48 = vadd.f32 %v6364_v0, %v6360_v30  ;;  %v8273_v0 = vld [vmem:[#allocation12_spill] sm:$0xff]  ;;  %v8274_v30 = vld [vmem:[#allocation110_spill] sm:$0xff] }
 0x3c9   :  { %8147 = vst [vmem:[#allocation203_spill] sm:$0xff] %v6369_v9  ;;  %v6374_v13 = vpop.eup %3655  ;;  %3681 = vpow2.f32 %v2193_v1  ;;  %v2385_v32 = vmul.f32 1.442695, %v2133_v11  ;;  %v2387_v58 = vmul.f32 1.442695, %v2134_v37 }
 0x3ca   :  { %8148 = vst [vmem:[#allocation204_spill] sm:$0xff] %v6374_v13  ;;  %v2321_v47 = vmul.f32 1.442695, %v2101_v39  ;;  %v6376_v21 = vpop.eup %3657  ;;  %3683 = vpow2.f32 %v2195_v52  ;;  %v2323_v15 = vmul.f32 1.442695, %v2102_v43  ;;  %2430 = vadd.xlane.f32.xlu0 %v2429_v48  ;;  %v1912_v36 = vpop.xlane.xlu1 %1911  ;;  %v2573_v46 = vadd.f32 %v6374_v13, %v6369_v9  ;;  %v8270_v13 = vld [vmem:[#allocation103_spill] sm:$0xff] }
 0x3cb   :  { %8149 = vst [vmem:[#allocation205_spill] sm:$0xff] %v6376_v21  ;;  %v1864_v63 = vpop.xlane.xlu0 %1863  ;;  %v6380_v29 = vpop.eup %3659  ;;  %3685 = vpow2.f32 %v2385_v32  ;;  %v2071_v40 = vsub.f32 %v5938_v31, %v1912_v36  ;;  %v2072_v1 = vsub.f32 %v5922_v17, %v1912_v36  ;;  %v8271_v9 = vld [vmem:[#allocation135_spill] sm:$0xff] }
 0x3cc   :  { %8150 = vst [vmem:[#allocation206_spill] sm:$0xff] %v6380_v29  ;;  %v2039_v11 = vsub.f32 %v5934_v25, %v1864_v63  ;;  %v6385_v37 = vpop.eup %3661  ;;  %3687 = vpow2.f32 %v2387_v58  ;;  %v2040_v52 = vsub.f32 %v5926_v2, %v1864_v63  ;;  %2574 = vadd.xlane.f32.xlu1 %v2573_v46  ;;  %v2525_v39 = vadd.f32 %v6380_v29, %v6376_v21  ;;  %v8269_v21 = vld [vmem:[#allocation121_spill] sm:$0xff] }
 0x3cd   :  { %8151 = vst [vmem:[#allocation207_spill] sm:$0xff] %v6385_v37  ;;  %v6390_v43 = vpop.eup %3663  ;;  %3689 = vpow2.f32 %v2321_v47  ;;  %v2261_v48 = vmul.f32 1.442695, %v2071_v40  ;;  %v2263_v32 = vmul.f32 1.442695, %v2072_v1 }
 0x3ce   :  { %8152 = vst [vmem:[#allocation208_spill] sm:$0xff] %v6390_v43  ;;  %v2197_v60 = vmul.f32 1.442695, %v2039_v11  ;;  %v6392_v31 = vpop.eup %3665  ;;  %3691 = vpow2.f32 %v2323_v15  ;;  %v2199_v36 = vmul.f32 1.442695, %v2040_v52  ;;  %2526 = vadd.xlane.f32.xlu0 %v2525_v39  ;;  %v2008_v25 = vpop.xlane.xlu1 %2007  ;;  %v2480_v63 = vadd.f32 %v6390_v43, %v6385_v37  ;;  %v8186_v37 = vld [vmem:[#allocation59_spill] sm:$0xff] }
 0x3cf   :  { %8153 = vst [vmem:[#allocation209_spill] sm:$0xff] %v6392_v31  ;;  %v1960_v17 = vpop.xlane.xlu0 %1959  ;;  %v6396_v58 = vpop.eup %3667  ;;  %3693 = vpow2.f32 %v2261_v48  ;;  %v2135_v46 = vsub.f32 %v5956_v26, %v2008_v25  ;;  %v2136_v47 = vsub.f32 %v5946_v33, %v2008_v25 }
 0x3d0   :  { %8154 = vst [vmem:[#allocation210_spill] sm:$0xff] %v6396_v58  ;;  %v2103_v40 = vsub.f32 %v5960_v38, %v1960_v17  ;;  %v6401_v1 = vpop.eup %3669  ;;  %3695 = vpow2.f32 %v2263_v32  ;;  %v2104_v15 = vsub.f32 %v5950_v45, %v1960_v17  ;;  %2481 = vadd.xlane.f32.xlu1 %v2480_v63  ;;  %v2432_v11 = vadd.f32 %v6396_v58, %v6392_v31 }
 0x3d1   :  { %8155 = vst [vmem:[#allocation211_spill] sm:$0xff] %v6401_v1  ;;  %v6406_v52 = vpop.eup %3671  ;;  %3697 = vpow2.f32 %v2197_v60  ;;  %v2389_v39 = vmul.f32 1.442695, %v2135_v46  ;;  %v2391_v48 = vmul.f32 1.442695, %v2136_v47 }
 0x3d2   :  { %8156 = vst [vmem:[#allocation212_spill] sm:$0xff] %v6406_v52  ;;  %v2325_v2 = vmul.f32 1.442695, %v2103_v40  ;;  %v6408_v26 = vpop.eup %3673  ;;  %3699 = vpow2.f32 %v2199_v36  ;;  %v2327_v25 = vmul.f32 1.442695, %v2104_v15  ;;  %2433 = vadd.xlane.f32.xlu0 %v2432_v11  ;;  %v2398_v38 = vpop.xlane.xlu1 %2397  ;;  %v2576_v17 = vadd.f32 %v6406_v52, %v6401_v1  ;;  %v8179_v52 = vld [vmem:[#allocation43_spill] sm:$0xff] }
 0x3d3   :  { %8157 = vst [vmem:[#allocation213_spill] sm:$0xff] %v6408_v26  ;;  %v2395_v33 = vpop.xlane.xlu0 %2394  ;;  %v6412_v32 = vpop.eup %3675  ;;  %3701 = vpow2.f32 %v2389_v39  ;;  %v8180_v1 = vld [vmem:[#allocation23_spill] sm:$0xff] }
 0x3d4   :  { %8158 = vst [vmem:[#allocation214_spill] sm:$0xff] %v6412_v32  ;;  %v6414_v63 = vpop.eup %3677  ;;  %3703 = vpow2.f32 %v2391_v48  ;;  %2577 = vadd.xlane.f32.xlu1 %v2576_v17  ;;  %v2528_v60 = vadd.f32 %v6412_v32, %v6408_v26 }
 0x3d5   :  { %8159 = vst [vmem:[#allocation215_spill] sm:$0xff] %v6414_v63  ;;  %v6418_v46 = vpop.eup %3679  ;;  %3705 = vpow2.f32 %v2325_v2 }
 0x3d6   :  { %8160 = vst [vmem:[#allocation216_spill] sm:$0xff] %v6418_v46  ;;  %v6420_v36 = vpop.eup %3681  ;;  %3707 = vpow2.f32 %v2327_v25  ;;  %2529 = vadd.xlane.f32.xlu0 %v2528_v60  ;;  %v2446_v47 = vpop.xlane.xlu1 %2445  ;;  %v2483_v15 = vadd.f32 %v6418_v46, %v6414_v63  ;;  %v8178_v63 = vld [vmem:[#allocation116_spill] sm:$0xff] }
 0x3d7   :  { %8161 = vst [vmem:[#allocation217_spill] sm:$0xff] %v6420_v36  ;;  %v2443_v40 = vpop.xlane.xlu0 %2442  ;;  %v6424_v11 = vpop.eup %3683  ;;  %3709 = vrcp.f32 %v2398_v38 }
 0x3d8   :  { %8162 = vst [vmem:[#allocation218_spill] sm:$0xff] %v6424_v11  ;;  %v6426_v39 = vpop.eup %3685  ;;  %3711 = vrcp.f32 %v2395_v33  ;;  %2484 = vadd.xlane.f32.xlu1 %v2483_v15  ;;  %v2435_v48 = vadd.f32 %v6424_v11, %v6420_v36  ;;  %v8176_v11 = vld [vmem:[#allocation18_spill] sm:$0xff] }
 0x3d9   :  { %8163 = vst [vmem:[#allocation219_spill] sm:$0xff] %v6426_v39  ;;  %v6430_v2 = vpop.eup %3687  ;;  %3713 = vrcp.f32 %v2446_v47 }
 0x3da   :  { %8164 = vst [vmem:[#allocation220_spill] sm:$0xff] %v6430_v2  ;;  %v6432_v25 = vpop.eup %3689  ;;  %3715 = vrcp.f32 %v2443_v40  ;;  %2436 = vadd.xlane.f32.xlu0 %v2435_v48  ;;  %v2494_v17 = vpop.xlane.xlu1 %2493  ;;  %v2579_v60 = vadd.f32 %v6430_v2, %v6426_v39 }
 0x3db   :  { %8165 = vst [vmem:[#allocation221_spill] sm:$0xff] %v6432_v25  ;;  %v6436_v45 = vpop.eup %3691  ;;  %3717 = vrcp.f32 %v2494_v17  ;;  %v2491_v38 = vpop.xlane.xlu0 %2490 }
 0x3dc   :  { %8166 = vst [vmem:[#allocation222_spill] sm:$0xff] %v6436_v45  ;;  %v6438_v33 = vpop.eup %3693  ;;  %2580 = vadd.xlane.f32.xlu1 %v2579_v60  ;;  %v2531_v15 = vadd.f32 %v6436_v45, %v6432_v25  ;;  %3719 = vrcp.f32 %v2491_v38 }
 0x3dd   :  { %8167 = vst [vmem:[#allocation223_spill] sm:$0xff] %v6438_v33  ;;  %v6442_v32 = vpop.eup %3695 }
 0x3de   :  { %8168 = vst [vmem:[#allocation224_spill] sm:$0xff] %v6442_v32  ;;  %v6444_v47 = vpop.eup %3697  ;;  %2532 = vadd.xlane.f32.xlu0 %v2531_v15  ;;  %v2486_v40 = vadd.f32 %v6442_v32, %v6438_v33 }
 0x3df   :  { %8169 = vst [vmem:[#allocation225_spill] sm:$0xff] %v6444_v47  ;;  %v6448_v48 = vpop.eup %3699 }
 0x3e0   :  { %8170 = vst [vmem:[#allocation226_spill] sm:$0xff] %v6448_v48  ;;  %v6450_v26 = vpop.eup %3701  ;;  %2487 = vadd.xlane.f32.xlu1 %v2486_v40  ;;  %v2438_v17 = vadd.f32 %v6448_v48, %v6444_v47 }
 0x3e1   :  { %8171 = vst [vmem:[#allocation227_spill] sm:$0xff] %v6450_v26  ;;  %v6454_v60 = vpop.eup %3703 }
 0x3e2   :  { %8172 = vst [vmem:[#allocation228_spill] sm:$0xff] %v6454_v60  ;;  %v6456_v45 = vpop.eup %3705  ;;  %2439 = vadd.xlane.f32.xlu0 %v2438_v17  ;;  %v2582_v38 = vadd.f32 %v6454_v60, %v6450_v26  ;;  %v8175_v60 = vld [vmem:[#allocation35_spill] sm:$0xff] }
 0x3e3   :  { %8173 = vst [vmem:[#allocation229_spill] sm:$0xff] %v6456_v45  ;;  %v6460_v15 = vpop.eup %3707 }
 0x3e4   :  { %8174 = vst [vmem:[#allocation230_spill] sm:$0xff] %v6460_v15  ;;  %v3710_v25 = vpop.eup %3709  ;;  %2583 = vadd.xlane.f32.xlu1 %v2582_v38  ;;  %v2534_v32 = vadd.f32 %v6460_v15, %v6456_v45  ;;  %v8177_v38 = vld [vmem:[#allocation56_spill] sm:$0xff] }
 0x3e5   :  { %v3712_v33 = vpop.eup %3711  ;;  %v2651_v40 = vmul.f32 %v3710_v25, %v5952_v7  ;;  %v2652_v48 = vmul.f32 %v3710_v25, %v5962_v20  ;;  %v8181_v25 = vld [vmem:[#allocation57_spill] sm:$0xff] }
 0x3e6   :  { %v3714_v47 = vpop.eup %3713  ;;  %v2649_v2 = vmul.f32 %v3712_v33, %v5964_v10  ;;  %v2650_v17 = vmul.f32 %v3712_v33, %v5970_v4  ;;  %2535 = vadd.xlane.f32.xlu0 %v2534_v32  ;;  %v8182_v10 = vld [vmem:[#allocation180_spill] sm:$0xff]  ;;  %v8183_v33 = vld [vmem:[#allocation31_spill] sm:$0xff] }
 0x3e7   :  { %v3716_v39 = vpop.eup %3715  ;;  %v2779_v26 = vmul.f32 %v2651_v40, %v8175_v60  ;;  %v2780_v36 = vmul.f32 %v2652_v48, %v8176_v11  ;;  %v2683_v46 = vmul.f32 %v3714_v47, %v8177_v38  ;;  %v2684_v15 = vmul.f32 %v3714_v47, %v8178_v63  ;;  %v8184_v48 = vld [vmem:[#allocation51_spill] sm:$0xff] }
 0x3e8   :  { %v3718_v45 = vpop.eup %3717  ;;  %v2777_v7 = vmul.f32 %v2649_v2, %v8179_v52  ;;  %v2778_v20 = vmul.f32 %v2650_v17, %v8180_v1  ;;  %v2681_v58 = vmul.f32 %v3716_v39, %v8181_v25  ;;  %v2682_v31 = vmul.f32 %v3716_v39, %v8182_v10  ;;  %v8185_v47 = vld [vmem:[#allocation39_spill] sm:$0xff] }
 0x3e9   :  { %v2907_v4 = vadd.f32 %v2779_v26, %v8175_v60  ;;  %v2908_v32 = vadd.f32 %v2780_v36, %v8176_v11  ;;  %v2811_v40 = vmul.f32 %v2683_v46, %v8183_v33  ;;  %v2812_v43 = vmul.f32 %v2684_v15, %v8184_v48  ;;  %v3720_v29 = vpop.eup %3719  ;;  %v8187_v26 = vld [vmem:[#allocation156_spill] sm:$0xff]  ;;  %v8188_v36 = vld [vmem:[#allocation183_spill] sm:$0xff] }
 0x3ea   :  { %v2905_v38 = vadd.f32 %v2777_v7, %v8179_v52  ;;  %v2906_v63 = vadd.f32 %v2778_v20, %v8180_v1  ;;  %v2809_v2 = vmul.f32 %v2681_v58, %v8185_v47  ;;  %v2810_v17 = vmul.f32 %v2682_v31, %v8186_v37  ;;  %v8189_v31 = vld [vmem:[#allocation47_spill] sm:$0xff] }
 0x3eb   :  { %v2939_v25 = vadd.f32 %v2811_v40, %v8183_v33  ;;  %v2940_v39 = vadd.f32 %v2812_v43, %v8184_v48  ;;  %v2715_v60 = vmul.f32 %v3718_v45, %v8187_v26  ;;  %v2716_v11 = vmul.f32 %v3718_v45, %v8188_v36  ;;  %v8190_v10 = vld [vmem:[#allocation67_spill] sm:$0xff] }
 0x3ec   :  { %v6488_v46 = vadd.f32 %v2907_v4, %v2905_v38  ;;  %v6490_v15 = vadd.f32 %v2908_v32, %v2906_v63  ;;  %v3345_v52 = vsub.f32 0.0, %v2905_v38  ;;  %v3346_v7 = vsub.f32 0.0, %v2906_v63  ;;  %v8191_v26 = vld [vmem:[#allocation159_spill] sm:$0xff] }
 0x3ed   :  { %v2937_v1 = vadd.f32 %v2809_v2, %v8185_v47  ;;  %v2938_v58 = vadd.f32 %v2810_v17, %v8186_v37  ;;  %v2843_v20 = vmul.f32 %v2715_v60, %v8189_v31  ;;  %v2844_v33 = vmul.f32 %v2716_v11, %v8190_v10  ;;  %v8192_v2 = vld [vmem:[#allocation55_spill] sm:$0xff] }
 0x3ee   :  { %v3353_v40 = vmul.f32 1.442695, %v3345_v52  ;;  %v3355_v43 = vmul.f32 1.442695, %v3346_v7  ;;  %v2713_v48 = vmul.f32 %v3720_v29, %v5988_v16  ;;  %v2714_v45 = vmul.f32 %v3720_v29, %v8191_v26  ;;  %v8193_v11 = vld [vmem:[#allocation75_spill] sm:$0xff] }
 0x3ef   :  { %v6498_v4 = vadd.f32 %v2939_v25, %v2937_v1  ;;  %v6500_v32 = vadd.f32 %v2940_v39, %v2938_v58  ;;  %v3347_v38 = vsub.f32 0.0, %v2937_v1  ;;  %v3348_v63 = vsub.f32 0.0, %v2938_v58 }
 0x3f0   :  { %3721 = vpow2.f32 %v3353_v40  ;;  %v2971_v47 = vadd.f32 %v2843_v20, %v8189_v31  ;;  %v2972_v37 = vadd.f32 %v2844_v33, %v8190_v10  ;;  %v2841_v17 = vmul.f32 %v2713_v48, %v8192_v2 }
 0x3f1   :  { %3723 = vpow2.f32 %v3355_v43  ;;  %v3357_v60 = vmul.f32 1.442695, %v3347_v38  ;;  %v3359_v36 = vmul.f32 1.442695, %v3348_v63  ;;  %v2842_v16 = vmul.f32 %v2714_v45, %v8193_v11 }
 0x3f2   :  { %v2969_v29 = vadd.f32 %v2841_v17, %v8192_v2 }
 0x3f3   :  { %3725 = vpow2.f32 %v3357_v60  ;;  %v2970_v25 = vadd.f32 %v2842_v16, %v8193_v11 }
 0x3f4   :  { %3727 = vpow2.f32 %v3359_v36  ;;  %v6508_v39 = vadd.f32 %v2971_v47, %v2969_v29  ;;  %v3349_v52 = vsub.f32 0.0, %v2969_v29 }
 0x3f5   :  { %v6510_v7 = vadd.f32 %v2972_v37, %v2970_v25  ;;  %v3350_v1 = vsub.f32 0.0, %v2970_v25 }
 0x3f6   :  { %v3361_v58 = vmul.f32 1.442695, %v3349_v52 }
 0x3f7   :  { %v3363_v31 = vmul.f32 1.442695, %v3350_v1 }
 0x3f8   :  { %3729 = vpow2.f32 %v3361_v58 }
 0x3f9   :  { %3731 = vpow2.f32 %v3363_v31 }
 0x3fd   :  { %v3722_v20 = vpop.eup %3721  ;;  %v2542_v10 = vpop.xlane.xlu1 %2541 }
 0x3fe   :  { %v3724_v33 = vpop.eup %3723  ;;  %v3369_v40 = vadd.f32 1.0, %v3722_v20  ;;  %3733 = vrcp.f32 %v2542_v10 }
 0x3ff   :  { %v3370_v43 = vadd.f32 1.0, %v3724_v33  ;;  %v2539_v48 = vpop.xlane.xlu0 %2538 }
 0x400   :  { %v3726_v26 = vpop.eup %3725  ;;  %3735 = vrcp.f32 %v3369_v40 }
 0x401   :  { %v3728_v45 = vpop.eup %3727  ;;  %3737 = vrcp.f32 %v3370_v43  ;;  %v3371_v38 = vadd.f32 1.0, %v3726_v26  ;;  %v2449_v63 = vpop.xlane.xlu1 %2448  ;;  %v8194_v43 = vld [vmem:[#allocation63_spill] sm:$0xff] }
 0x402   :  { %v3372_v47 = vadd.f32 1.0, %v3728_v45  ;;  %3739 = vrcp.f32 %v2539_v48 }
 0x403   :  { %3741 = vrcp.f32 %v3371_v38  ;;  %v2401_v37 = vpop.xlane.xlu0 %2400 }
 0x404   :  { %3743 = vrcp.f32 %v3372_v47 }
 0x405   :  { %v3730_v2 = vpop.eup %3729  ;;  %3745 = vrcp.f32 %v2449_v63  ;;  %v2545_v17 = vpop.xlane.xlu1 %2544 }
 0x406   :  { %v3732_v60 = vpop.eup %3731  ;;  %v3373_v36 = vadd.f32 1.0, %v3730_v2  ;;  %3747 = vrcp.f32 %v2401_v37 }
 0x407   :  { %v3374_v11 = vadd.f32 1.0, %v3732_v60  ;;  %3749 = vrcp.f32 %v2545_v17  ;;  %v2497_v16 = vpop.xlane.xlu0 %2496 }
 0x408   :  { %3751 = vrcp.f32 %v3373_v36 }
 0x409   :  { %3753 = vrcp.f32 %v3374_v11  ;;  %v2452_v29 = vpop.xlane.xlu1 %2451 }
 0x40a   :  { %3755 = vrcp.f32 %v2497_v16  ;;  %v8195_v16 = vld [vmem:[#allocation83_spill] sm:$0xff] }
 0x40b   :  { %v3734_v25 = vpop.eup %3733  ;;  %v2404_v52 = vpop.xlane.xlu0 %2403  ;;  %3757 = vrcp.f32 %v2452_v29 }
 0x40c   :  { %v2747_v1 = vmul.f32 %v3734_v25, %v6019_v54  ;;  %v2748_v58 = vmul.f32 %v3734_v25, %v6022_v57  ;;  %3759 = vrcp.f32 %v2404_v52 }
 0x40d   :  { %v3736_v31 = vpop.eup %3735  ;;  %v2548_v20 = vpop.xlane.xlu1 %2547 }
 0x40e   :  { %v3738_v10 = vpop.eup %3737  ;;  %v3401_v33 = vrot.slane %v3736_v31, 7  ;;  %v2875_v40 = vmul.f32 %v2747_v1, %v5374_v3  ;;  %v2876_v48 = vmul.f32 %v2748_v58, %v8194_v43  ;;  %3761 = vrcp.f32 %v2548_v20 }
 0x40f   :  { %v3740_v26 = vpop.eup %3739  ;;  %v3402_v45 = vrot.slane %v3738_v10, 7  ;;  %v2500_v38 = vpop.xlane.xlu0 %2499 }
 0x410   :  { %v3742_v63 = vpop.eup %3741  ;;  %3417 = vst [vmem:[%s7084_s2] sm:$0x1e] %v3401_v33   ;;  %v2745_v54 = vmul.f32 %v3740_v26, %v6024_v12  ;;  %v2746_v57 = vmul.f32 %v3740_v26, %v6028_v34  ;;  %v3003_v2 = vadd.f32 %v2875_v40, %v5374_v3  ;;  %v3004_v17 = vadd.f32 %v2876_v48, %v8194_v43 }
 0x411   :  { %v3744_v47 = vpop.eup %3743  ;;  %3418 = vst [vmem:[%s7084_s2 + $0x8] sm:$0x1e] %v3402_v45   ;;  %v3403_v37 = vrot.slane %v3742_v63, 7  ;;  %v2455_v60 = vpop.xlane.xlu1 %2454  ;;  %3763 = vrcp.f32 %v2500_v38 }
 0x412   :  { %v3746_v36 = vpop.eup %3745  ;;  %v3404_v11 = vrot.slane %v3744_v47, 7  ;;  %v2873_v29 = vmul.f32 %v2745_v54, %v8195_v16  ;;  %v2874_v25 = vmul.f32 %v2746_v57, %v5386_v55  ;;  %3765 = vrcp.f32 %v2455_v60 }
 0x413   :  { %v3748_v12 = vpop.eup %3747  ;;  %3419 = vst [vmem:[%s7084_s2 + $0x10] sm:$0x1e] %v3403_v37   ;;  %v2685_v34 = vmul.f32 %v3746_v36, %v6033_v53  ;;  %v2686_v52 = vmul.f32 %v3746_v36, %v6038_v42  ;;  %v6533_v3 = vpop.xlane.xlu0 %2406 }
 0x414   :  { %v3750_v1 = vpop.eup %3749  ;;  %3420 = vst [vmem:[%s7084_s2 + $0x18] sm:$0x1e] %v3404_v11   ;;  %v3001_v58 = vadd.f32 %v2873_v29, %v8195_v16  ;;  %v3002_v31 = vadd.f32 %v2874_v25, %v5386_v55  ;;  %v2653_v20 = vmul.f32 %v3748_v12, %v6040_v51  ;;  %v2654_v10 = vmul.f32 %v3748_v12, %v6044_v27 }
 0x415   :  { %v3752_v33 = vpop.eup %3751  ;;  %v2813_v53 = vmul.f32 %v2685_v34, %v5402_v18  ;;  %v2814_v42 = vmul.f32 %v2686_v52, %v5394_v24  ;;  %v2749_v40 = vmul.f32 %v3750_v1, %v6049_v44  ;;  %v2750_v43 = vmul.f32 %v3750_v1, %v6054_v14  ;;  %v6546_v48 = vpop.xlane.xlu1 %2550 }
 0x416   :  { %v3754_v26 = vpop.eup %3753  ;;  %v3405_v45 = vrot.slane %v3752_v33, 7  ;;  %v3159_v38 = vadd.f32 %v3003_v2, %v3001_v58  ;;  %v3180_v63 = vadd.f32 %v3004_v17, %v3002_v31  ;;  %v3351_v55 = vsub.f32 0.0, %v3001_v58 }
 0x417   :  { %v3406_v54 = vrot.slane %v3754_v26, 7  ;;  %v3352_v51 = vsub.f32 0.0, %v3002_v31  ;;  %v2941_v27 = vadd.f32 %v2813_v53, %v5402_v18  ;;  %v2942_v57 = vadd.f32 %v2814_v42, %v5394_v24  ;;  %v6550_v47 = vpop.xlane.xlu0 %2502  ;;  %v3756_v37 = vpop.eup %3755  ;;  %v8197_v53 = vld [vmem:[#allocation71_spill] sm:$0xff]  ;;  %v8198_v42 = vld [vmem:[#allocation26_spill] sm:$0xff] }
 0x418   :  { %3421 = vst [vmem:[%s7084_s2 + $0x20] sm:$0x1e] %v3405_v45   ;;  %v3365_v44 = vmul.f32 1.442695, %v3351_v55  ;;  %v2781_v14 = vmul.f32 %v2653_v20, %v5406_v23  ;;  %v2782_v2 = vmul.f32 %v2654_v10, %v5398_v19  ;;  %v2877_v17 = vmul.f32 %v2749_v40, %v5422_v49  ;;  %v3758_v60 = vpop.eup %3757  ;;  %v8201_v45 = vld [vmem:[#allocation120_spill] sm:$0xff] }
 0x419   :  { %3422 = vst [vmem:[%s7084_s2 + $0x28] sm:$0x1e] %v3406_v54   ;;  %v3367_v24 = vmul.f32 1.442695, %v3352_v51  ;;  %v3076_v18 = vadd.f32 %v6498_v4, %v2941_v27  ;;  %v3097_v36 = vadd.f32 %v6500_v32, %v2942_v57  ;;  %v2878_v11 = vmul.f32 %v2750_v43, %v5414_v61  ;;  %v6564_v16 = vpop.xlane.xlu1 %2457  ;;  %v3760_v29 = vpop.eup %3759  ;;  %v8199_v43 = vld [vmem:[#allocation60_spill] sm:$0xff]  ;;  %v8202_v54 = vld [vmem:[#allocation61_spill] sm:$0xff] }
 0x41a   :  { %3767 = vpow2.f32 %v3365_v44  ;;  %v2909_v25 = vadd.f32 %v2781_v14, %v5406_v23  ;;  %v2910_v12 = vadd.f32 %v2782_v2, %v5398_v19  ;;  %v3005_v34 = vadd.f32 %v2877_v17, %v5422_v49  ;;  %v8196_v23 = vld [vmem:[#allocation119_spill] sm:$0xff]  ;;  %v8203_v51 = vld [vmem:[#allocation182_spill] sm:$0xff] }
 0x41b   :  { %v3762_v52 = vpop.eup %3761  ;;  %3769 = vpow2.f32 %v3367_v24  ;;  %v3006_v1 = vadd.f32 %v2878_v11, %v5414_v61  ;;  %v2717_v4 = vmul.f32 %v3756_v37, %v6056_v22  ;;  %v2718_v32 = vmul.f32 %v3756_v37, %v6060_v41  ;;  %v6572_v58 = vpop.xlane.xlu0 %2409  ;;  %v8200_v22 = vld [vmem:[#allocation22_spill] sm:$0xff] }
 0x41c   :  { %v3034_v31 = vadd.f32 %v6488_v46, %v2909_v25  ;;  %v3055_v20 = vadd.f32 %v6490_v15, %v2910_v12  ;;  %v3160_v10 = vadd.f32 %v3159_v38, %v3005_v34  ;;  %v2687_v33 = vmul.f32 %v3758_v60, %v8196_v23  ;;  %v8204_v57 = vld [vmem:[#allocation34_spill] sm:$0xff]  ;;  %v8207_v25 = vld [vmem:[#allocation79_spill] sm:$0xff] }
 0x41d   :  { %v3181_v19 = vadd.f32 %v3180_v63, %v3006_v1  ;;  %v2845_v49 = vmul.f32 %v2717_v4, %v8197_v53  ;;  %v2846_v40 = vmul.f32 %v2718_v32, %v8198_v42  ;;  %v2688_v61 = vmul.f32 %v3758_v60, %v8199_v43  ;;  %v6580_v26 = vpop.xlane.xlu1 %2553  ;;  %v8205_v44 = vld [vmem:[#allocation158_spill] sm:$0xff] }
 0x41e   :  { %v2815_v41 = vmul.f32 %v2687_v33, %v8200_v22  ;;  %v2655_v55 = vmul.f32 %v3760_v29, %v8201_v45  ;;  %v2656_v46 = vmul.f32 %v3760_v29, %v8202_v54  ;;  %v2751_v15 = vmul.f32 %v3762_v52, %v8203_v51  ;;  %v3764_v38 = vpop.eup %3763  ;;  %v8206_v24 = vld [vmem:[#allocation42_spill] sm:$0xff] }
 0x41f   :  { %v2973_v27 = vadd.f32 %v2845_v49, %v8197_v53  ;;  %v2974_v63 = vadd.f32 %v2846_v40, %v8198_v42  ;;  %v2816_v37 = vmul.f32 %v2688_v61, %v8204_v57  ;;  %v2752_v14 = vmul.f32 %v3762_v52, %v8205_v44  ;;  %v2506_v2 = vpop.xlane.xlu0 %2505  ;;  %v3766_v17 = vpop.eup %3765  ;;  %v8208_v29 = vld [vmem:[#allocation38_spill] sm:$0xff] }
 0x420   :  { %v2943_v60 = vadd.f32 %v2815_v41, %v8200_v22  ;;  %v2783_v11 = vmul.f32 %v2655_v55, %v8206_v24  ;;  %v2784_v12 = vmul.f32 %v2656_v46, %v8207_v25  ;;  %v2879_v34 = vmul.f32 %v2751_v15, %v8208_v29  ;;  %v8209_v23 = vld [vmem:[#allocation30_spill] sm:$0xff]  ;;  %v8210_v22 = vld [vmem:[#allocation11_spill] sm:$0xff]  ;;  %v8211_v41 = vld [vmem:[#allocation161_spill] sm:$0xff] }
 0x421   :  { %v3118_v1 = vadd.f32 %v6508_v39, %v2973_v27  ;;  %v3139_v4 = vadd.f32 %v6510_v7, %v2974_v63  ;;  %v2944_v32 = vadd.f32 %v2816_v37, %v8204_v57  ;;  %v2880_v33 = vmul.f32 %v2752_v14, %v8209_v23  ;;  %v6598_v53 = vpop.xlane.xlu1 %2460  ;;  %v8213_v27 = vld [vmem:[#allocation58_spill] sm:$0xff] }
 0x422   :  { %v3077_v52 = vadd.f32 %v3076_v18, %v2943_v60  ;;  %v2911_v49 = vadd.f32 %v2783_v11, %v8206_v24  ;;  %v2912_v42 = vadd.f32 %v2784_v12, %v8207_v25  ;;  %v3007_v40 = vadd.f32 %v2879_v34, %v8208_v29  ;;  %v8212_v18 = vld [vmem:[#allocation122_spill] sm:$0xff] }
 0x423   :  { %v3098_v43 = vadd.f32 %v3097_v36, %v2944_v32  ;;  %v3008_v61 = vadd.f32 %v2880_v33, %v8209_v23  ;;  %v2719_v39 = vmul.f32 %v3764_v38, %v8210_v22  ;;  %v2720_v7 = vmul.f32 %v3764_v38, %v8211_v41  ;;  %v6606_v45 = vpop.xlane.xlu0 %2412  ;;  %v8214_v57 = vld [vmem:[#allocation50_spill] sm:$0xff]  ;;  %v8215_v36 = vld [vmem:[#allocation64_spill] sm:$0xff]  ;;  %v8219_v22 = vld [vmem:[#allocation65_spill] sm:$0xff] }
 0x424   :  { %v3035_v55 = vadd.f32 %v3034_v31, %v2911_v49  ;;  %v3056_v54 = vadd.f32 %v3055_v20, %v2912_v42  ;;  %v6608_v46 = vadd.f32 %v3160_v10, %v3007_v40  ;;  %v2689_v51 = vmul.f32 %v3766_v17, %v8212_v18  ;;  %v8216_v60 = vld [vmem:[#allocation54_spill] sm:$0xff]  ;;  %v8221_v18 = vld [vmem:[#allocation160_spill] sm:$0xff] }
 0x425   :  { %v3182_v15 = vadd.f32 %v3181_v19, %v3008_v61  ;;  %v2847_v63 = vmul.f32 %v2719_v39, %v8213_v27  ;;  %v2848_v37 = vmul.f32 %v2720_v7, %v8214_v57  ;;  %v2690_v44 = vmul.f32 %v3766_v17, %v8215_v36  ;;  %v6614_v14 = vpop.xlane.xlu1 %2556  ;;  %v8217_v10 = vld [vmem:[#allocation46_spill] sm:$0xff]  ;;  %v8220_v7 = vld [vmem:[#allocation8_spill] sm:$0xff] }
 0x426   :  { %v2817_v24 = vmul.f32 %v2689_v51, %v8216_v60  ;;  %3771 = vrcp.f32 %v6533_v3 }
 0x427   :  { %v3768_v38 = vpop.eup %3767  ;;  %v2975_v31 = vadd.f32 %v2847_v63, %v8213_v27  ;;  %v2976_v20 = vadd.f32 %v2848_v37, %v8214_v57  ;;  %v2818_v11 = vmul.f32 %v2690_v44, %v8217_v10  ;;  %3773 = vrcp.f32 %v6546_v48  ;;  %v2509_v19 = vpop.xlane.xlu0 %2508  ;;  %v8222_v27 = vld [vmem:[#allocation74_spill] sm:$0xff]  ;;  %v8224_v37 = vld [vmem:[#allocation13_spill] sm:$0xff]  ;;  %v8225_v44 = vld [vmem:[#allocation163_spill] sm:$0xff] }
 0x428   :  { %v3770_v25 = vpop.eup %3769  ;;  %v3375_v12 = vadd.f32 1.0, %v3768_v38  ;;  %v2945_v17 = vadd.f32 %v2817_v24, %v8216_v60  ;;  %3775 = vrcp.f32 %v6550_v47  ;;  %v8223_v63 = vld [vmem:[#allocation66_spill] sm:$0xff] }
 0x429   :  { %v3376_v29 = vadd.f32 1.0, %v3770_v25  ;;  %v3119_v34 = vadd.f32 %v3118_v1, %v2975_v31  ;;  %v3140_v32 = vadd.f32 %v3139_v4, %v2976_v20  ;;  %v2946_v3 = vadd.f32 %v2818_v11, %v8217_v10  ;;  %v6625_v23 = vpop.xlane.xlu1 %2463  ;;  %v8218_v4 = vld [vmem:[#allocation123_spill] sm:$0xff]  ;;  %v8226_v38 = vld [vmem:[#allocation70_spill] sm:$0xff] }
 0x42a   :  { %3777 = vrcp.f32 %v3375_v12  ;;  %v6627_v33 = vadd.f32 %v3077_v52, %v2945_v17  ;;  %v8227_v20 = vld [vmem:[#allocation62_spill] sm:$0xff] }
 0x42b   :  { %3779 = vrcp.f32 %v3376_v29  ;;  %v6629_v49 = vadd.f32 %v3098_v43, %v2946_v3  ;;  %v6631_v48 = vpop.xlane.xlu0 %2415  ;;  %v8228_v17 = vld [vmem:[#allocation90_spill] sm:$0xff] }
 0x42c   :  { %3781 = vrcp.f32 %v2506_v2 }
 0x42d   :  { %v6633_v42 = vpop.xlane.xlu1 %2559  ;;  %3783 = vrcp.f32 %v2509_v19 }
 0x42e   :  { %3785 = vrcp.f32 %v6564_v16 }
 0x42f   :  { %v6635_v47 = vpop.xlane.xlu0 %2511  ;;  %3787 = vrcp.f32 %v6572_v58 }
 0x430   :  { %3789 = vrcp.f32 %v6580_v26 }
 0x431   :  { %v6641_v43 = vpop.xlane.xlu1 %2466  ;;  %3791 = vrcp.f32 %v6598_v53 }
 0x432   :  { %3793 = vrcp.f32 %v6606_v45 }
 0x433   :  { %v3772_v40 = vpop.eup %3771  ;;  %3795 = vrcp.f32 %v6614_v14  ;;  %v8240_v14 = vld [vmem:[#allocation127_spill] sm:$0xff] }
 0x434   :  { %v3774_v1 = vpop.eup %3773  ;;  %v2657_v61 = vmul.f32 %v3772_v40, %v8218_v4  ;;  %v2658_v39 = vmul.f32 %v3772_v40, %v8219_v22  ;;  %v8229_v4 = vld [vmem:[#allocation82_spill] sm:$0xff]  ;;  %v6655_v22 = vpop.xlane.xlu0 %2418  ;;  %3797 = vrcp.f32 %v6625_v23  ;;  %v8244_v23 = vld [vmem:[#allocation9_spill] sm:$0xff] }
 0x435   :  { %v3776_v41 = vpop.eup %3775  ;;  %v2753_v52 = vmul.f32 %v3774_v1, %v8220_v7  ;;  %v2754_v51 = vmul.f32 %v3774_v1, %v8221_v18  ;;  %3799 = vrcp.f32 %v6631_v48  ;;  %v8245_v48 = vld [vmem:[#allocation104_spill] sm:$0xff] }
 0x436   :  { %v2785_v2 = vmul.f32 %v2657_v61, %v8222_v27  ;;  %v2786_v57 = vmul.f32 %v2658_v39, %v8223_v63  ;;  %v2721_v36 = vmul.f32 %v3776_v41, %v8224_v37  ;;  %v2722_v60 = vmul.f32 %v3776_v41, %v8225_v44  ;;  %v8231_v37 = vld [vmem:[#allocation165_spill] sm:$0xff] }
 0x437   :  { %v3778_v24 = vpop.eup %3777  ;;  %v2881_v31 = vmul.f32 %v2753_v52, %v8226_v38  ;;  %v2882_v10 = vmul.f32 %v2754_v51, %v8227_v20  ;;  %3801 = vrcp.f32 %v6635_v47 }
 0x438   :  { %v3780_v11 = vpop.eup %3779  ;;  %v3407_v25 = vrot.slane %v3778_v24, 7  ;;  %v2913_v12 = vadd.f32 %v2785_v2, %v8222_v27  ;;  %v2914_v19 = vadd.f32 %v2786_v57, %v8223_v63  ;;  %v2849_v29 = vmul.f32 %v2721_v36, %v8228_v17  ;;  %v6674_v27 = vpop.xlane.xlu1 %2562  ;;  %v8230_v63 = vld [vmem:[#allocation15_spill] sm:$0xff] }
 0x439   :  { %v3408_v3 = vrot.slane %v3780_v11, 7  ;;  %v3009_v40 = vadd.f32 %v2881_v31, %v8226_v38  ;;  %v3010_v1 = vadd.f32 %v2882_v10, %v8227_v20  ;;  %v2850_v61 = vmul.f32 %v2722_v60, %v8229_v4  ;;  %v3782_v2 = vpop.eup %3781  ;;  %v6680_v44 = vpop.xlane.xlu0 %2514  ;;  %v8233_v60 = vld [vmem:[#allocation111_spill] sm:$0xff]  ;;  %v8234_v10 = vld [vmem:[#allocation133_spill] sm:$0xff] }
 0x43a   :  { %3423 = vst [vmem:[%s7084_s2 + $0x30] sm:$0x1e] %v3407_v25   ;;  %v6660_v39 = vadd.f32 %v3035_v55, %v2913_v12  ;;  %v6662_v41 = vadd.f32 %v3056_v54, %v2914_v19  ;;  %v2977_v7 = vadd.f32 %v2849_v29, %v8228_v17  ;;  %v2723_v57 = vmul.f32 %v3782_v2, %v8230_v63  ;;  %v8235_v25 = vld [vmem:[#allocation76_spill] sm:$0xff]  ;;  %v8236_v19 = vld [vmem:[#allocation89_spill] sm:$0xff] }
 0x43b   :  { %3424 = vst [vmem:[%s7084_s2 + $0x38] sm:$0x1e] %v3408_v3   ;;  %v6669_v52 = vadd.f32 %v6608_v46, %v3009_v40  ;;  %v6671_v18 = vadd.f32 %v3182_v15, %v3010_v1  ;;  %v2978_v51 = vadd.f32 %v2850_v61, %v8229_v4  ;;  %v2724_v36 = vmul.f32 %v3782_v2, %v8231_v37  ;;  %v8232_v46 = vld [vmem:[#allocation118_spill] sm:$0xff]  ;;  %v8237_v3 = vld [vmem:[#allocation139_spill] sm:$0xff] }
 0x43c   :  { %v3120_v55 = vadd.f32 %v3119_v34, %v2977_v7  ;;  %v2851_v15 = vmul.f32 %v2723_v57, %v8232_v46  ;;  %v6685_v38 = vpop.xlane.xlu1 %2469  ;;  %v3784_v34 = vpop.eup %3783  ;;  %v8238_v7 = vld [vmem:[#allocation126_spill] sm:$0xff]  ;;  %3803 = vrcp.f32 %v6633_v42  ;;  %v8249_v42 = vld [vmem:[#allocation93_spill] sm:$0xff] }
 0x43d   :  { %v3141_v54 = vadd.f32 %v3140_v32, %v2978_v51  ;;  %v2852_v24 = vmul.f32 %v2724_v36, %v8233_v60  ;;  %v6689_v20 = vpop.xlane.xlu0 %2421  ;;  %v2725_v11 = vmul.f32 %v3784_v34, %v8234_v10  ;;  %v2726_v12 = vmul.f32 %v3784_v34, %v8235_v25  ;;  %v3786_v29 = vpop.eup %3785  ;;  %v8241_v36 = vld [vmem:[#allocation86_spill] sm:$0xff] }
 0x43e   :  { %v2979_v16 = vadd.f32 %v2851_v15, %v8232_v46  ;;  %v3788_v4 = vpop.eup %3787  ;;  %v2691_v51 = vmul.f32 %v3786_v29, %v8238_v7  ;;  %v8242_v15 = vld [vmem:[#allocation78_spill] sm:$0xff]  ;;  %3805 = vrcp.f32 %v6641_v43 }
 0x43f   :  { %v2980_v32 = vadd.f32 %v2852_v24, %v8233_v60  ;;  %v2853_v17 = vmul.f32 %v2725_v11, %v8236_v19  ;;  %v2854_v40 = vmul.f32 %v2726_v12, %v8237_v3  ;;  %v3790_v57 = vpop.eup %3789  ;;  %v2659_v37 = vmul.f32 %v3788_v4, %v8240_v14  ;;  %v8243_v24 = vld [vmem:[#allocation69_spill] sm:$0xff] }
 0x440   :  { %v3121_v58 = vadd.f32 %v3120_v55, %v2979_v16  ;;  %v6694_v26 = vpop.xlane.xlu1 %2565  ;;  %v8239_v55 = vld [vmem:[#allocation68_spill] sm:$0xff]  ;;  %v2819_v46 = vmul.f32 %v2691_v51, %v8241_v36  ;;  %v2660_v34 = vmul.f32 %v3788_v4, %v8243_v24  ;;  %v2755_v16 = vmul.f32 %v3790_v57, %v8244_v23  ;;  %v3792_v11 = vpop.eup %3791  ;;  %v8252_v23 = vld [vmem:[#allocation114_spill] sm:$0xff] }
 0x441   :  { %v3142_v31 = vadd.f32 %v3141_v54, %v2980_v32  ;;  %v2981_v1 = vadd.f32 %v2853_v17, %v8236_v19  ;;  %v2982_v53 = vadd.f32 %v2854_v40, %v8237_v3  ;;  %v6702_v61 = vpop.xlane.xlu0 %2517  ;;  %v2692_v54 = vmul.f32 %v3786_v29, %v8239_v55  ;;  %v8247_v19 = vld [vmem:[#allocation97_spill] sm:$0xff]  ;;  %v8248_v29 = vld [vmem:[#allocation100_spill] sm:$0xff]  ;;  %v3794_v7 = vpop.eup %3793 }
 0x442   :  { %v2947_v47 = vadd.f32 %v2819_v46, %v8241_v36  ;;  %v2788_v17 = vmul.f32 %v2660_v34, %v8247_v19  ;;  %v2883_v3 = vmul.f32 %v2755_v16, %v8248_v29  ;;  %v8250_v4 = vld [vmem:[#allocation72_spill] sm:$0xff]  ;;  %v3796_v55 = vpop.eup %3795  ;;  %v8251_v46 = vld [vmem:[#allocation129_spill] sm:$0xff]  ;;  %3807 = vrcp.f32 %v6655_v22 }
 0x443   :  { %v6705_v2 = vadd.f32 %v3121_v58, %v2981_v1  ;;  %v6709_v63 = vadd.f32 %v3142_v31, %v2982_v53  ;;  %v2820_v60 = vmul.f32 %v2692_v54, %v8242_v15  ;;  %v2787_v58 = vmul.f32 %v2659_v37, %v8245_v48  ;;  %v8246_v31 = vld [vmem:[#allocation162_spill] sm:$0xff]  ;;  %v8260_v22 = vld [vmem:[#allocation17_spill] sm:$0xff] }
 0x444   :  { %v6712_v45 = vpop.xlane.xlu1 %2472  ;;  %v2756_v10 = vmul.f32 %v3790_v57, %v8246_v31  ;;  %v2693_v53 = vmul.f32 %v3792_v11, %v8250_v4  ;;  %v6737_v54 = vadd.f32 %v6627_v33, %v2947_v47  ;;  %v3798_v57 = vpop.eup %3797  ;;  %v2916_v37 = vadd.f32 %v2788_v17, %v8247_v19  ;;  %v8257_v19 = vld [vmem:[#allocation19_spill] sm:$0xff] }
 0x445   :  { %v6721_v32 = vpop.xlane.xlu0 %2424  ;;  %v2948_v12 = vadd.f32 %v2820_v60, %v8242_v15  ;;  %v2915_v40 = vadd.f32 %v2787_v58, %v8245_v48  ;;  %v3011_v36 = vadd.f32 %v2883_v3, %v8248_v29  ;;  %v2694_v15 = vmul.f32 %v3792_v11, %v8251_v46  ;;  %v3800_v24 = vpop.eup %3799  ;;  %v8254_v58 = vld [vmem:[#allocation130_spill] sm:$0xff]  ;;  %v8256_v11 = vld [vmem:[#allocation164_spill] sm:$0xff]  ;;  %v8259_v3 = vld [vmem:[#allocation107_spill] sm:$0xff] }
 0x446   :  { %v2884_v1 = vmul.f32 %v2756_v10, %v8249_v42  ;;  %v2821_v16 = vmul.f32 %v2693_v53, %v8252_v23  ;;  %v3802_v43 = vpop.eup %3801  ;;  %v2662_v31 = vmul.f32 %v3794_v7, %v8254_v58  ;;  %v8255_v10 = vld [vmem:[#allocation10_spill] sm:$0xff]  ;;  %3809 = vrcp.f32 %v6674_v27  ;;  %v8264_v58 = vld [vmem:[#allocation124_spill] sm:$0xff] }
 0x447   :  { %v6741_v14 = vadd.f32 %v6629_v49, %v2948_v12  ;;  %v3037_v34 = vadd.f32 %v6660_v39, %v2915_v40  ;;  %v8253_v49 = vld [vmem:[#allocation73_spill] sm:$0xff]  ;;  %v2757_v47 = vmul.f32 %v3796_v55, %v8255_v10  ;;  %v2758_v12 = vmul.f32 %v3796_v55, %v8256_v11  ;;  %v8262_v27 = vld [vmem:[#allocation134_spill] sm:$0xff] }
 0x448   :  { %v6725_v25 = vpop.xlane.xlu1 %2568  ;;  %v3012_v33 = vadd.f32 %v2884_v1, %v8249_v42  ;;  %v2661_v48 = vmul.f32 %v3794_v7, %v8253_v49  ;;  %v2727_v17 = vmul.f32 %v3802_v43, %v8257_v19  ;;  %v8258_v39 = vld [vmem:[#allocation169_spill] sm:$0xff]  ;;  %3811 = vrcp.f32 %v6680_v44  ;;  %v8261_v1 = vld [vmem:[#allocation167_spill] sm:$0xff]  ;;  %v8263_v55 = vld [vmem:[#allocation138_spill] sm:$0xff] }
 0x449   :  { %v6734_v51 = vpop.xlane.xlu0 %2520  ;;  %v2728_v29 = vmul.f32 %v3802_v43, %v8258_v39  ;;  %v2822_v40 = vmul.f32 %v2694_v15, %v8259_v3  ;;  %v2695_v42 = vmul.f32 %v3798_v57, %v8260_v22  ;;  %v2696_v4 = vmul.f32 %v3798_v57, %v8261_v1  ;;  %v3804_v7 = vpop.eup %3803  ;;  %v8265_v15 = vld [vmem:[#allocation132_spill] sm:$0xff]  ;;  %v8266_v11 = vld [vmem:[#allocation125_spill] sm:$0xff] }
 0x44a   :  { %3813 = vrcp.f32 %v6685_v38  ;;  %v2663_v46 = vmul.f32 %v3800_v24, %v8262_v27  ;;  %v2855_v49 = vmul.f32 %v2727_v17, %v8263_v55  ;;  %v2949_v44 = vadd.f32 %v2821_v16, %v8252_v23  ;;  %v8267_v57 = vld [vmem:[#allocation77_spill] sm:$0xff]  ;;  %v8268_v22 = vld [vmem:[#allocation128_spill] sm:$0xff]  ;;  %v8272_v16 = vld [vmem:[#allocation166_spill] sm:$0xff] }
 0x44b   :  { %v2856_v10 = vmul.f32 %v2728_v29, %v8264_v58  ;;  %3815 = vrcp.f32 %v6689_v20  ;;  %v2789_v43 = vmul.f32 %v2661_v48, %v8265_v15  ;;  %v2790_v19 = vmul.f32 %v2662_v31, %v8266_v11 }
 0x44c   :  { %v6746_v60 = vpop.xlane.xlu1 %2475  ;;  %v2664_v39 = vmul.f32 %v3800_v24, %v8267_v57  ;;  %v2885_v1 = vmul.f32 %v2757_v47, %v8268_v22  ;;  %v2886_v27 = vmul.f32 %v2758_v12, %v8269_v21  ;;  %v2983_v17 = vadd.f32 %v2855_v49, %v8263_v55  ;;  %v8275_v55 = vld [vmem:[#allocation96_spill] sm:$0xff] }
 0x44d   :  { %v6764_v53 = vpop.xlane.xlu0 %2427  ;;  %v2984_v29 = vadd.f32 %v2856_v10, %v8264_v58  ;;  %v2823_v20 = vmul.f32 %v2695_v42, %v8270_v13  ;;  %v2824_v23 = vmul.f32 %v2696_v4, %v8271_v9  ;;  %v2759_v48 = vmul.f32 %v3804_v7, %v8272_v16 }
 0x44e   :  { %v2760_v31 = vmul.f32 %v3804_v7, %v8273_v0  ;;  %v2791_v24 = vmul.f32 %v2663_v46, %v8274_v30  ;;  %v6786_v57 = vadd.f32 %v6705_v2, %v2983_v17  ;;  %3817 = vrcp.f32 %v6694_v26  ;;  %v3806_v46 = vpop.eup %3805 }
 0x44f   :  { %v6789_v47 = vadd.f32 %v6709_v63, %v2984_v29  ;;  %v2950_v12 = vadd.f32 %v2822_v40, %v8259_v3  ;;  %v2917_v42 = vadd.f32 %v2789_v43, %v8265_v15  ;;  %v2918_v4 = vadd.f32 %v2790_v19, %v8266_v11  ;;  %v8276_v40 = vld [vmem:[#allocation131_spill] sm:$0xff] }
 0x450   :  { %v6774_v38 = vpop.xlane.xlu1 %2571  ;;  %v2792_v49 = vmul.f32 %v2664_v39, %v8275_v55  ;;  %v3058_v0 = vadd.f32 %v6662_v41, %v2916_v37  ;;  %v3163_v2 = vadd.f32 %v6669_v52, %v3011_v36  ;;  %v3013_v7 = vadd.f32 %v2885_v1, %v8268_v22  ;;  %v8277_v37 = vld [vmem:[#allocation117_spill] sm:$0xff] }
 0x451   :  { %v6796_v58 = vpop.xlane.xlu0 %2523  ;;  %v3014_v63 = vadd.f32 %v2886_v27, %v8269_v21  ;;  %v2951_v26 = vadd.f32 %v2823_v20, %v8270_v13  ;;  %v2952_v3 = vadd.f32 %v2824_v23, %v8271_v9  ;;  %v2887_v10 = vmul.f32 %v2759_v48, %v8276_v40  ;;  %v3808_v21 = vpop.eup %3807  ;;  %v8279_v27 = vld [vmem:[#allocation80_spill] sm:$0xff]  ;;  %v8280_v23 = vld [vmem:[#allocation81_spill] sm:$0xff] }
 0x452   :  { %3819 = vrcp.f32 %v6702_v61  ;;  %v3184_v43 = vadd.f32 %v6671_v18, %v3012_v33  ;;  %v3080_v41 = vadd.f32 %v6737_v54, %v2949_v44  ;;  %v2919_v52 = vadd.f32 %v2791_v24, %v8274_v30  ;;  %v8278_v61 = vld [vmem:[#allocation136_spill] sm:$0xff]  ;;  %v8281_v24 = vld [vmem:[#allocation137_spill] sm:$0xff] }
 0x453   :  { %v2888_v36 = vmul.f32 %v2760_v31, %v8277_v37  ;;  %v3101_v11 = vadd.f32 %v6741_v14, %v2950_v12  ;;  %v3038_v13 = vadd.f32 %v3037_v34, %v2917_v42  ;;  %v3059_v19 = vadd.f32 %v3058_v0, %v2918_v4  ;;  %v3810_v39 = vpop.eup %3809  ;;  %v8282_v12 = vld [vmem:[#allocation14_spill] sm:$0xff]  ;;  %v8284_v0 = vld [vmem:[#allocation24_spill] sm:$0xff] }
 0x454   :  { %v6806_v15 = vpop.xlane.xlu1 %2478  ;;  %v2920_v9 = vadd.f32 %v2792_v49, %v8275_v55  ;;  %v3164_v22 = vadd.f32 %v3163_v2, %v3013_v7  ;;  %v2697_v1 = vmul.f32 %v3806_v46, %v8278_v61  ;;  %v2698_v17 = vmul.f32 %v3806_v46, %v8279_v27  ;;  %v8283_v55 = vld [vmem:[#allocation20_spill] sm:$0xff] }
 0x455   :  { %3821 = vrcp.f32 %v6712_v45  ;;  %v3812_v18 = vpop.eup %3811  ;;  %v3185_v54 = vadd.f32 %v3184_v43, %v3014_v63  ;;  %v3081_v30 = vadd.f32 %v3080_v41, %v2951_v26  ;;  %v3102_v33 = vadd.f32 %v3101_v11, %v2952_v3  ;;  %v6818_v29 = vpop.xlane.xlu0 %2430  ;;  %v8285_v7 = vld [vmem:[#allocation168_spill] sm:$0xff]  ;;  %v8287_v3 = vld [vmem:[#allocation170_spill] sm:$0xff]  ;;  %v8289_v43 = vld [vmem:[#allocation185_spill] sm:$0xff] }
 0x456   :  { %v3015_v44 = vadd.f32 %v2887_v10, %v8276_v40  ;;  %v3039_v34 = vadd.f32 %v3038_v13, %v2919_v52  ;;  %v3016_v20 = vadd.f32 %v2888_v36, %v8277_v37  ;;  %v2665_v16 = vmul.f32 %v3808_v21, %v8280_v23  ;;  %v8286_v46 = vld [vmem:[#allocation16_spill] sm:$0xff]  ;;  %v8290_v37 = vld [vmem:[#allocation21_spill] sm:$0xff] }
 0x457   :  { %v3814_v14 = vpop.eup %3813  ;;  %3823 = vrcp.f32 %v6721_v32  ;;  %v3060_v31 = vadd.f32 %v3059_v19, %v2920_v9  ;;  %v2666_v45 = vmul.f32 %v3808_v21, %v8281_v24  ;;  %v2761_v42 = vmul.f32 %v3810_v39, %v8282_v12  ;;  %v8288_v40 = vld [vmem:[#allocation184_spill] sm:$0xff]  ;;  %v8291_v21 = vld [vmem:[#allocation186_spill] sm:$0xff]  ;;  %v8292_v19 = vld [vmem:[#allocation25_spill] sm:$0xff] }
 0x458   :  { %v3816_v48 = vpop.eup %3815  ;;  %3825 = vrcp.f32 %v6725_v25  ;;  %v6826_v4 = vpop.xlane.xlu1 %2574  ;;  %v2825_v49 = vmul.f32 %v2697_v1, %v8283_v55  ;;  %v2826_v2 = vmul.f32 %v2698_v17, %v8284_v0  ;;  %v2762_v63 = vmul.f32 %v3810_v39, %v8285_v7  ;;  %v8293_v39 = vld [vmem:[#allocation85_spill] sm:$0xff]  ;;  %v8294_v1 = vld [vmem:[#allocation187_spill] sm:$0xff] }
 0x459   :  { %v2729_v26 = vmul.f32 %v3812_v18, %v8286_v46  ;;  %v2730_v32 = vmul.f32 %v3812_v18, %v8287_v3  ;;  %v2699_v10 = vmul.f32 %v3814_v14, %v8288_v40  ;;  %v2700_v41 = vmul.f32 %v3814_v14, %v8289_v43  ;;  %v6842_v17 = vpop.xlane.xlu0 %2526  ;;  %v8302_v7 = vld [vmem:[#allocation189_spill] sm:$0xff]  ;;  %v8303_v3 = vld [vmem:[#allocation142_spill] sm:$0xff] }
 0x45a   :  { %3827 = vrcp.f32 %v6734_v51  ;;  %v3165_v52 = vadd.f32 %v3164_v22, %v3015_v44  ;;  %v3186_v25 = vadd.f32 %v3185_v54, %v3016_v20  ;;  %v2793_v36 = vmul.f32 %v2665_v16, %v8290_v37  ;;  %v8295_v22 = vld [vmem:[#allocation88_spill] sm:$0xff]  ;;  %v8297_v20 = vld [vmem:[#allocation87_spill] sm:$0xff]  ;;  %v8298_v16 = vld [vmem:[#allocation141_spill] sm:$0xff] }
 0x45b   :  { %v2667_v11 = vmul.f32 %v3816_v48, %v8291_v21  ;;  %v3818_v13 = vpop.eup %3817  ;;  %v2794_v9 = vmul.f32 %v2666_v45, %v8292_v19  ;;  %v2889_v61 = vmul.f32 %v2761_v42, %v8293_v39  ;;  %v2668_v27 = vmul.f32 %v3816_v48, %v8294_v1  ;;  %v8296_v44 = vld [vmem:[#allocation84_spill] sm:$0xff]  ;;  %v8299_v45 = vld [vmem:[#allocation143_spill] sm:$0xff] }
 0x45c   :  { %3829 = vrcp.f32 %v6746_v60  ;;  %v2953_v18 = vadd.f32 %v2825_v49, %v8283_v55  ;;  %v2954_v51 = vadd.f32 %v2826_v2, %v8284_v0  ;;  %v2890_v54 = vmul.f32 %v2762_v63, %v8295_v22  ;;  %v6852_v48 = vpop.xlane.xlu1 %2481  ;;  %v8300_v55 = vld [vmem:[#allocation140_spill] sm:$0xff] }
 0x45d   :  { %v2857_v14 = vmul.f32 %v2729_v26, %v8296_v44  ;;  %v2858_v23 = vmul.f32 %v2730_v32, %v8297_v20  ;;  %v2827_v24 = vmul.f32 %v2699_v10, %v8298_v16  ;;  %v2828_v12 = vmul.f32 %v2700_v41, %v8299_v45  ;;  %v8301_v0 = vld [vmem:[#allocation188_spill] sm:$0xff] }
 0x45e   :  { %3831 = vrcp.f32 %v6764_v53  ;;  %v2921_v42 = vadd.f32 %v2793_v36, %v8290_v37  ;;  %v2795_v49 = vmul.f32 %v2667_v11, %v8300_v55  ;;  %v2763_v2 = vmul.f32 %v3818_v13, %v8301_v0  ;;  %v8304_v11 = vld [vmem:[#allocation190_spill] sm:$0xff] }
 0x45f   :  { %v3820_v60 = vpop.eup %3819  ;;  %v2764_v63 = vmul.f32 %v3818_v13, %v8302_v7  ;;  %v2922_v46 = vadd.f32 %v2794_v9, %v8292_v19  ;;  %v3017_v26 = vadd.f32 %v2889_v61, %v8293_v39  ;;  %v2796_v32 = vmul.f32 %v2668_v27, %v8303_v3  ;;  %v6868_v19 = vpop.xlane.xlu0 %2433  ;;  %v8306_v39 = vld [vmem:[#allocation91_spill] sm:$0xff]  ;;  %v8311_v7 = vld [vmem:[#allocation194_spill] sm:$0xff] }
 0x460   :  { %3833 = vrcp.f32 %v6774_v38  ;;  %v3082_v53 = vadd.f32 %v3081_v30, %v2953_v18  ;;  %v3103_v40 = vadd.f32 %v3102_v33, %v2954_v51  ;;  %v3018_v10 = vadd.f32 %v2890_v54, %v8295_v22  ;;  %v8305_v30 = vld [vmem:[#allocation92_spill] sm:$0xff]  ;;  %v8307_v22 = vld [vmem:[#allocation191_spill] sm:$0xff] }
 0x461   :  { %v2985_v43 = vadd.f32 %v2857_v14, %v8296_v44  ;;  %v2986_v37 = vadd.f32 %v2858_v23, %v8297_v20  ;;  %v2955_v36 = vadd.f32 %v2827_v24, %v8298_v16  ;;  %v2956_v21 = vadd.f32 %v2828_v12, %v8299_v45  ;;  %v6875_v44 = vpop.xlane.xlu1 %2577  ;;  %v8309_v24 = vld [vmem:[#allocation193_spill] sm:$0xff] }
 0x462   :  { %v3822_v41 = vpop.eup %3821  ;;  %v2731_v13 = vmul.f32 %v3820_v60, %v8304_v11  ;;  %v3040_v9 = vadd.f32 %v3039_v34, %v2921_v42  ;;  %v2923_v38 = vadd.f32 %v2795_v49, %v8300_v55  ;;  %v2891_v33 = vmul.f32 %v2763_v2, %v8305_v30  ;;  %v8308_v34 = vld [vmem:[#allocation192_spill] sm:$0xff] }
 0x463   :  { %v2892_v61 = vmul.f32 %v2764_v63, %v8306_v39  ;;  %v3061_v27 = vadd.f32 %v3060_v31, %v2922_v46  ;;  %v3166_v18 = vadd.f32 %v3165_v52, %v3017_v26  ;;  %v2924_v51 = vadd.f32 %v2796_v32, %v8303_v3  ;;  %v8310_v31 = vld [vmem:[#allocation29_spill] sm:$0xff]  ;;  %v8313_v26 = vld [vmem:[#allocation195_spill] sm:$0xff]  ;;  %v8314_v32 = vld [vmem:[#allocation196_spill] sm:$0xff] }
 0x464   :  { %v3824_v1 = vpop.eup %3823  ;;  %v2732_v54 = vmul.f32 %v3820_v60, %v8307_v22  ;;  %v3187_v20 = vadd.f32 %v3186_v25, %v3018_v10  ;;  %v3124_v23 = vadd.f32 %v6786_v57, %v2985_v43  ;;  %v2701_v16 = vmul.f32 %v3822_v41, %v8308_v34  ;;  %v8312_v57 = vld [vmem:[#allocation28_spill] sm:$0xff]  ;;  %v8320_v22 = vld [vmem:[#allocation146_spill] sm:$0xff] }
 0x465   :  { %v3826_v14 = vpop.eup %3825  ;;  %v2702_v45 = vmul.f32 %v3822_v41, %v8309_v24  ;;  %v3145_v12 = vadd.f32 %v6789_v47, %v2986_v37  ;;  %v3083_v42 = vadd.f32 %v3082_v53, %v2955_v36  ;;  %v3104_v55 = vadd.f32 %v3103_v40, %v2956_v21  ;;  %v6888_v47 = vpop.xlane.xlu0 %2529  ;;  %v8315_v40 = vld [vmem:[#allocation94_spill] sm:$0xff]  ;;  %v8316_v41 = vld [vmem:[#allocation144_spill] sm:$0xff]  ;;  %v8317_v36 = vld [vmem:[#allocation197_spill] sm:$0xff] }
 0x466   :  { %v2859_v52 = vmul.f32 %v2731_v13, %v8310_v31  ;;  %v3041_v0 = vadd.f32 %v3040_v9, %v2923_v38  ;;  %v3019_v60 = vadd.f32 %v2891_v33, %v8305_v30  ;;  %v3020_v2 = vadd.f32 %v2892_v61, %v8306_v39  ;;  %v2485_v38 = vpop.xlane.xlu1 %2484  ;;  %v8318_v61 = vld [vmem:[#allocation32_spill] sm:$0xff]  ;;  %v8323_v24 = vld [vmem:[#allocation98_spill] sm:$0xff] }
 0x467   :  { %v3828_v49 = vpop.eup %3827  ;;  %v2669_v25 = vmul.f32 %v3824_v1, %v8311_v7  ;;  %v3062_v63 = vadd.f32 %v3061_v27, %v2924_v51  ;;  %v2860_v46 = vmul.f32 %v2732_v54, %v8312_v57  ;;  %v2670_v3 = vmul.f32 %v3824_v1, %v8313_v26  ;;  %v8319_v27 = vld [vmem:[#allocation145_spill] sm:$0xff]  ;;  %v8321_v54 = vld [vmem:[#allocation198_spill] sm:$0xff] }
 0x468   :  { %v2765_v10 = vmul.f32 %v3826_v14, %v8314_v32  ;;  %v2829_v43 = vmul.f32 %v2701_v16, %v8315_v40  ;;  %v2830_v37 = vmul.f32 %v2702_v45, %v8316_v41  ;;  %v2766_v21 = vmul.f32 %v3826_v14, %v8317_v36  ;;  %v8324_v45 = vld [vmem:[#allocation33_spill] sm:$0xff] }
 0x469   :  { %v3830_v53 = vpop.eup %3829  ;;  %3835 = vrcp.f32 %v6796_v58  ;;  %v2987_v11 = vadd.f32 %v2859_v52, %v8310_v31  ;;  %v2733_v13 = vmul.f32 %v3828_v49, %v6312_v5  ;;  %v2734_v9 = vmul.f32 %v3828_v49, %v6316_v56  ;;  %v8325_v52 = vld [vmem:[#allocation199_spill] sm:$0xff] }
 0x46a   :  { %3837 = vrcp.f32 %v6806_v15  ;;  %v3167_v33 = vadd.f32 %v3166_v18, %v3019_v60  ;;  %v3188_v39 = vadd.f32 %v3187_v20, %v3020_v2  ;;  %v2797_v1 = vmul.f32 %v2669_v25, %v8318_v61  ;;  %v8322_v20 = vld [vmem:[#allocation95_spill] sm:$0xff]  ;;  %v2437_v60 = vpop.xlane.xlu0 %2436  ;;  %v2581_v26 = vpop.xlane.xlu1 %2580 }
 0x46b   :  { %v3832_v30 = vpop.eup %3831  ;;  %3839 = vrcp.f32 %v6818_v29  ;;  %v2798_v51 = vmul.f32 %v2670_v3, %v8319_v27  ;;  %v2893_v58 = vmul.f32 %v2765_v10, %v8320_v22  ;;  %v2703_v14 = vmul.f32 %v3830_v53, %v8321_v54  ;;  %v8327_v10 = vld [vmem:[#allocation200_spill] sm:$0xff] }
 0x46c   :  { %3841 = vrcp.f32 %v6826_v4  ;;  %v2988_v56 = vadd.f32 %v2860_v46, %v8312_v57  ;;  %v2957_v15 = vadd.f32 %v2829_v43, %v8315_v40  ;;  %v2958_v18 = vadd.f32 %v2830_v37, %v8316_v41  ;;  %v8328_v40 = vld [vmem:[#allocation36_spill] sm:$0xff]  ;;  %v8329_v37 = vld [vmem:[#allocation171_spill] sm:$0xff] }
 0x46d   :  { %v3834_v5 = vpop.eup %3833  ;;  %v2894_v34 = vmul.f32 %v2766_v21, %v8322_v20  ;;  %v3125_v16 = vadd.f32 %v3124_v23, %v2987_v11  ;;  %v2861_v29 = vmul.f32 %v2733_v13, %v8323_v24  ;;  %v2862_v31 = vmul.f32 %v2734_v9, %v8324_v45  ;;  %v8326_v23 = vld [vmem:[#allocation37_spill] sm:$0xff] }
 0x46e   :  { %v2704_v49 = vmul.f32 %v3830_v53, %v8325_v52  ;;  %v2925_v2 = vadd.f32 %v2797_v1, %v8318_v61  ;;  %v2671_v4 = vmul.f32 %v3832_v30, %v6328_v35  ;;  %v2672_v7 = vmul.f32 %v3832_v30, %v6332_v62  ;;  %v8331_v61 = vld [vmem:[#allocation148_spill] sm:$0xff] }
 0x46f   :  { %3843 = vrcp.f32 %v6842_v17  ;;  %v2926_v25 = vadd.f32 %v2798_v51, %v8319_v27  ;;  %v3021_v57 = vadd.f32 %v2893_v58, %v8320_v22  ;;  %v2831_v46 = vmul.f32 %v2703_v14, %v8326_v23  ;;  %v8332_v27 = vld [vmem:[#allocation147_spill] sm:$0xff] }
 0x470   :  { %3845 = vrcp.f32 %v6852_v48  ;;  %v3022_v3 = vadd.f32 %v2894_v34, %v8322_v20  ;;  %v2767_v32 = vmul.f32 %v3834_v5, %v6337_v6  ;;  %v2768_v53 = vmul.f32 %v3834_v5, %v8327_v10  ;;  %v8330_v48 = vld [vmem:[#allocation99_spill] sm:$0xff]  ;;  %v8333_v34 = vld [vmem:[#allocation201_spill] sm:$0xff] }
 0x471   :  { %3847 = vrcp.f32 %v6868_v19  ;;  %v3146_v35 = vadd.f32 %v3145_v12, %v2988_v56  ;;  %v2989_v62 = vadd.f32 %v2861_v29, %v8323_v24  ;;  %v2990_v17 = vadd.f32 %v2862_v31, %v8324_v45  ;;  %v2533_v19 = vpop.xlane.xlu0 %2532  ;;  %v8334_v24 = vld [vmem:[#allocation202_spill] sm:$0xff]  ;;  %v8336_v45 = vld [vmem:[#allocation204_spill] sm:$0xff] }
 0x472   :  { %v2832_v43 = vmul.f32 %v2704_v49, %v8328_v40  ;;  %v3084_v41 = vadd.f32 %v3083_v42, %v2957_v15  ;;  %v2799_v36 = vmul.f32 %v2671_v4, %v8329_v37  ;;  %v2800_v21 = vmul.f32 %v2672_v7, %v8330_v48  ;;  %v8337_v49 = vld [vmem:[#allocation101_spill] sm:$0xff] }
 0x473   :  { %3849 = vrcp.f32 %v6875_v44  ;;  %v3105_v11 = vadd.f32 %v3104_v55, %v2958_v18  ;;  %v3042_v6 = vadd.f32 %v3041_v0, %v2925_v2  ;;  %v3063_v13 = vadd.f32 %v3062_v63, %v2926_v25  ;;  %v2488_v44 = vpop.xlane.xlu1 %2487  ;;  %v8338_v7 = vld [vmem:[#allocation173_spill] sm:$0xff] }
 0x474   :  { %v2959_v9 = vadd.f32 %v2831_v46, %v8326_v23  ;;  %v3168_v12 = vadd.f32 %v3167_v33, %v3021_v57  ;;  %v3189_v30 = vadd.f32 %v3188_v39, %v3022_v3  ;;  %v2895_v1 = vmul.f32 %v2767_v32, %v8331_v61  ;;  %v8340_v32 = vld [vmem:[#allocation40_spill] sm:$0xff] }
 0x475   :  { %v2896_v51 = vmul.f32 %v2768_v53, %v8332_v27  ;;  %v6932_v42 = vadd.f32 %v3125_v16, %v2989_v62  ;;  %v6934_v58 = vadd.f32 %v3146_v35, %v2990_v17  ;;  %v2960_v54 = vadd.f32 %v2832_v43, %v8328_v40  ;;  %v8341_v35 = vld [vmem:[#allocation172_spill] sm:$0xff]  ;;  %v8342_v17 = vld [vmem:[#allocation102_spill] sm:$0xff] }
 0x476   :  { %v3836_v22 = vpop.eup %3835  ;;  %3851 = vrcp.f32 %v6888_v47  ;;  %v2927_v0 = vadd.f32 %v2799_v36, %v8329_v37  ;;  %v2928_v63 = vadd.f32 %v2800_v21, %v8330_v48  ;;  %v3085_v14 = vadd.f32 %v3084_v41, %v2959_v9  ;;  %v8343_v43 = vld [vmem:[#allocation150_spill] sm:$0xff]  ;;  %v8344_v37 = vld [vmem:[#allocation149_spill] sm:$0xff] }
 0x477   :  { %v3838_v55 = vpop.eup %3837  ;;  %v2735_v33 = vmul.f32 %v3836_v22, %v6344_v8  ;;  %3853 = vrcp.f32 %v2485_v38  ;;  %v2736_v5 = vmul.f32 %v3836_v22, %v6348_v59  ;;  %v3023_v18 = vadd.f32 %v2895_v1, %v8331_v61  ;;  %v8335_v38 = vld [vmem:[#allocation203_spill] sm:$0xff]  ;;  %v2440_v59 = vpop.xlane.xlu0 %2439  ;;  %v8345_v21 = vld [vmem:[#allocation205_spill] sm:$0xff]  ;;  %v8348_v1 = vld [vmem:[#allocation208_spill] sm:$0xff] }
 0x478   :  { %v3840_v39 = vpop.eup %3839  ;;  %v2705_v56 = vmul.f32 %v3838_v55, %v6353_v50  ;;  %3855 = vrcp.f32 %v2437_v60  ;;  %v3024_v47 = vadd.f32 %v2896_v51, %v8332_v27  ;;  %v2706_v20 = vmul.f32 %v3838_v55, %v6358_v28  ;;  %v8339_v28 = vld [vmem:[#allocation41_spill] sm:$0xff]  ;;  %v2584_v23 = vpop.xlane.xlu1 %2583 }
 0x479   :  { %v3842_v15 = vpop.eup %3841  ;;  %3857 = vrcp.f32 %v2581_v26  ;;  %v2673_v16 = vmul.f32 %v3840_v39, %v8333_v34  ;;  %v2674_v8 = vmul.f32 %v3840_v39, %v8334_v24  ;;  %v3106_v52 = vadd.f32 %v3105_v11, %v2960_v54  ;;  %v8349_v22 = vld [vmem:[#allocation105_spill] sm:$0xff] }
 0x47a   :  { %v2769_v29 = vmul.f32 %v3842_v15, %v8335_v38  ;;  %v2770_v31 = vmul.f32 %v3842_v15, %v8336_v45  ;;  %v3043_v50 = vadd.f32 %v3042_v6, %v2927_v0  ;;  %v2863_v60 = vmul.f32 %v2735_v33, %v8337_v49  ;;  %v8346_v6 = vld [vmem:[#allocation206_spill] sm:$0xff] }
 0x47b   :  { %3859 = vrcp.f32 %v2533_v19  ;;  %v3064_v4 = vadd.f32 %v3063_v13, %v2928_v63  ;;  %v2864_v25 = vmul.f32 %v2736_v5, %v8338_v7  ;;  %v2833_v57 = vmul.f32 %v2705_v56, %v8339_v28  ;;  %v8351_v0 = vld [vmem:[#allocation210_spill] sm:$0xff] }
 0x47c   :  { %v3844_v2 = vpop.eup %3843  ;;  %3861 = vrcp.f32 %v2488_v44  ;;  %v3169_v26 = vadd.f32 %v3168_v12, %v3023_v18  ;;  %v3190_v3 = vadd.f32 %v3189_v30, %v3024_v47  ;;  %v2834_v10 = vmul.f32 %v2706_v20, %v8340_v32  ;;  %v8347_v30 = vld [vmem:[#allocation207_spill] sm:$0xff]  ;;  %v8350_v44 = vld [vmem:[#allocation209_spill] sm:$0xff]  ;;  %v8353_v20 = vld [vmem:[#allocation174_spill] sm:$0xff] }
 0x47d   :  { %v3846_v46 = vpop.eup %3845  ;;  %3863 = vrcp.f32 %v2440_v59  ;;  %v2801_v62 = vmul.f32 %v2673_v16, %v8341_v35  ;;  %v2802_v40 = vmul.f32 %v2674_v8, %v8342_v17  ;;  %v2897_v41 = vmul.f32 %v2769_v29, %v8343_v43  ;;  %v8352_v18 = vld [vmem:[#allocation175_spill] sm:$0xff]  ;;  %v8355_v8 = vld [vmem:[#allocation212_spill] sm:$0xff] }
 0x47e   :  { %v3848_v53 = vpop.eup %3847  ;;  %v2898_v36 = vmul.f32 %v2770_v31, %v8344_v37  ;;  %v2991_v48 = vadd.f32 %v2863_v60, %v8337_v49  ;;  %v2737_v11 = vmul.f32 %v3844_v2, %v8345_v21  ;;  %v2738_v13 = vmul.f32 %v3844_v2, %v8346_v6  ;;  %v8354_v16 = vld [vmem:[#allocation211_spill] sm:$0xff]  ;;  %v8356_v49 = vld [vmem:[#allocation106_spill] sm:$0xff] }
 0x47f   :  { %3865 = vrcp.f32 %v2584_v23  ;;  %v2992_v19 = vadd.f32 %v2864_v25, %v8338_v7  ;;  %v2961_v12 = vadd.f32 %v2833_v57, %v8339_v28  ;;  %v2707_v61 = vmul.f32 %v3846_v46, %v8347_v30  ;;  %v8357_v28 = vld [vmem:[#allocation45_spill] sm:$0xff]  ;;  %v8358_v23 = vld [vmem:[#allocation44_spill] sm:$0xff] }
 0x480   :  { %v3850_v9 = vpop.eup %3849  ;;  %v2708_v27 = vmul.f32 %v3846_v46, %v8348_v1  ;;  %v2962_v51 = vadd.f32 %v2834_v10, %v8340_v32  ;;  %v2865_v54 = vmul.f32 %v2737_v11, %v8349_v22  ;;  %v2675_v55 = vmul.f32 %v3848_v53, %v8350_v44  ;;  %v8363_v11 = vld [vmem:[#allocation217_spill] sm:$0xff] }
 0x481   :  { %v2676_v63 = vmul.f32 %v3848_v53, %v8351_v0  ;;  %v2929_v33 = vadd.f32 %v2801_v62, %v8341_v35  ;;  %v2930_v39 = vadd.f32 %v2802_v40, %v8342_v17  ;;  %v3025_v5 = vadd.f32 %v2897_v41, %v8343_v43  ;;  %v8359_v17 = vld [vmem:[#allocation48_spill] sm:$0xff]  ;;  %v8360_v43 = vld [vmem:[#allocation151_spill] sm:$0xff] }
 0x482   :  { %v3026_v56 = vadd.f32 %v2898_v36, %v8344_v37  ;;  %v2866_v47 = vmul.f32 %v2738_v13, %v8352_v18  ;;  %v2835_v34 = vmul.f32 %v2707_v61, %v8353_v20  ;;  %v2771_v24 = vmul.f32 %v3850_v9, %v8354_v16  ;;  %v8361_v36 = vld [vmem:[#allocation215_spill] sm:$0xff]  ;;  %v8364_v13 = vld [vmem:[#allocation218_spill] sm:$0xff]  ;;  %v8366_v61 = vld [vmem:[#allocation152_spill] sm:$0xff] }
 0x483   :  { %v3852_v15 = vpop.eup %3851  ;;  %v2772_v38 = vmul.f32 %v3850_v9, %v8355_v8  ;;  %v3127_v45 = vadd.f32 %v6932_v42, %v2991_v48  ;;  %v3148_v31 = vadd.f32 %v6934_v58, %v2992_v19  ;;  %v2993_v59 = vadd.f32 %v2865_v54, %v8349_v22  ;;  %v8368_v22 = vld [vmem:[#allocation220_spill] sm:$0xff] }
 0x484   :  { %v3854_v29 = vpop.eup %3853  ;;  %v2836_v60 = vmul.f32 %v2708_v27, %v8356_v49  ;;  %v3086_v7 = vadd.f32 %v3085_v14, %v2961_v12  ;;  %v3107_v25 = vadd.f32 %v3106_v52, %v2962_v51  ;;  %v2803_v57 = vmul.f32 %v2675_v55, %v8357_v28  ;;  %v8365_v12 = vld [vmem:[#allocation49_spill] sm:$0xff]  ;;  %v8367_v27 = vld [vmem:[#allocation219_spill] sm:$0xff]  ;;  %v8369_v0 = vld [vmem:[#allocation176_spill] sm:$0xff] }
 0x485   :  { %v3856_v2 = vpop.eup %3855  ;;  %v2804_v46 = vmul.f32 %v2676_v63, %v8358_v23  ;;  %v3044_v10 = vadd.f32 %v3043_v50, %v2929_v33  ;;  %v3065_v53 = vadd.f32 %v3064_v4, %v2930_v39  ;;  %v3170_v35 = vadd.f32 %v3169_v26, %v3025_v5  ;;  %v8362_v50 = vld [vmem:[#allocation216_spill] sm:$0xff] }
 0x486   :  { %v3858_v32 = vpop.eup %3857  ;;  %v3191_v62 = vadd.f32 %v3190_v3, %v3026_v56  ;;  %v2994_v42 = vadd.f32 %v2866_v47, %v8352_v18  ;;  %v2963_v58 = vadd.f32 %v2835_v34, %v8353_v20  ;;  %v2899_v40 = vmul.f32 %v2771_v24, %v8359_v17  ;;  %v8370_v33 = vld [vmem:[#allocation108_spill] sm:$0xff]  ;;  %v8371_v20 = vld [vmem:[#allocation155_spill] sm:$0xff] }
 0x487   :  { %v2900_v41 = vmul.f32 %v2772_v38, %v8360_v43  ;;  %v6989_v14 = vadd.f32 %v3127_v45, %v2993_v59  ;;  %v2964_v52 = vadd.f32 %v2836_v60, %v8356_v49  ;;  %v2709_v48 = vmul.f32 %v3854_v29, %v8361_v36  ;;  %v8372_v38 = vld [vmem:[#allocation179_spill] sm:$0xff]  ;;  %v8373_v49 = vld [vmem:[#allocation213_spill] sm:$0xff] }
 0x488   :  { %v6987_v37 = vpop.eup %3859  ;;  %v2710_v4 = vmul.f32 %v3854_v29, %v8362_v50  ;;  %v2931_v3 = vadd.f32 %v2803_v57, %v8357_v28  ;;  %v2932_v21 = vadd.f32 %v2804_v46, %v8358_v23  ;;  %v2677_v6 = vmul.f32 %v3856_v2, %v8363_v11  ;;  %v8383_v11 = vld [vmem:[#allocation221_spill] sm:$0xff] }
 0x489   :  { %v3862_v26 = vpop.eup %3861  ;;  %v2678_v9 = vmul.f32 %v3856_v2, %v8364_v13  ;;  %v2837_v30 = vmul.f32 %v2709_v48, %v8365_v12  ;;  %v2773_v51 = vmul.f32 %v3858_v32, %v8367_v27  ;;  %v2774_v54 = vmul.f32 %v3858_v32, %v8368_v22  ;;  %v8374_v2 = vld [vmem:[#allocation214_spill] sm:$0xff]  ;;  %v8381_v48 = vld [vmem:[#allocation227_spill] sm:$0xff]  ;;  %v2536_v22 = vpop.xlane.xlu0 %2535 }
 0x48a   :  { %v3864_v19 = vpop.eup %3863  ;;  %v2838_v1 = vmul.f32 %v2710_v4, %v8366_v61  ;;  %v3027_v44 = vadd.f32 %v2899_v40, %v8359_v17  ;;  %v3028_v55 = vadd.f32 %v2900_v41, %v8360_v43  ;;  %v2805_v63 = vmul.f32 %v2677_v6, %v8369_v0  ;;  %v8378_v41 = vld [vmem:[#allocation226_spill] sm:$0xff]  ;;  %v8382_v4 = vld [vmem:[#allocation228_spill] sm:$0xff] }
 0x48b   :  { %v2806_v39 = vmul.f32 %v2678_v9, %v8370_v33  ;;  %v7006_v56 = vadd.f32 %v3148_v31, %v2994_v42  ;;  %v2965_v18 = vadd.f32 %v2837_v30, %v8365_v12  ;;  %v2901_v34 = vmul.f32 %v2773_v51, %v8371_v20  ;;  %v8385_v9 = vld [vmem:[#allocation113_spill] sm:$0xff]  ;;  %v8387_v27 = vld [vmem:[#allocation154_spill] sm:$0xff] }
 0x48c   :  { %v3866_v5 = vpop.eup %3865  ;;  %v2966_v47 = vadd.f32 %v2838_v1, %v8366_v61  ;;  %v3087_v16 = vadd.f32 %v3086_v7, %v2963_v58  ;;  %v3108_v24 = vadd.f32 %v3107_v25, %v2964_v52  ;;  %v2933_v8 = vadd.f32 %v2805_v63, %v8369_v0  ;;  %v8375_v7 = vld [vmem:[#allocation223_spill] sm:$0xff]  ;;  %v8376_v58 = vld [vmem:[#allocation224_spill] sm:$0xff]  ;;  %v8386_v61 = vld [vmem:[#allocation157_spill] sm:$0xff] }
 0x48d   :  { %v2902_v29 = vmul.f32 %v2774_v54, %v8372_v38  ;;  %v3045_v45 = vadd.f32 %v3044_v10, %v2931_v3  ;;  %v3066_v59 = vadd.f32 %v3065_v53, %v2932_v21  ;;  %v2739_v60 = vmul.f32 %v3852_v15, %v8373_v49  ;;  %v8377_v53 = vld [vmem:[#allocation225_spill] sm:$0xff] }
 0x48e   :  { %v2740_v28 = vmul.f32 %v3852_v15, %v8374_v2  ;;  %v3171_v31 = vadd.f32 %v3170_v35, %v3027_v44  ;;  %v3192_v57 = vadd.f32 %v3191_v62, %v3028_v55  ;;  %v3088_v23 = vadd.f32 %v3087_v16, %v2965_v18  ;;  %v8379_v15 = vld [vmem:[#allocation178_spill] sm:$0xff]  ;;  %v8380_v62 = vld [vmem:[#allocation52_spill] sm:$0xff] }
 0x48f   :  { %v2934_v46 = vadd.f32 %v2806_v39, %v8370_v33  ;;  %v3109_v32 = vadd.f32 %v3108_v24, %v2966_v47  ;;  %v3029_v42 = vadd.f32 %v2901_v34, %v8371_v20  ;;  %v2711_v25 = vmul.f32 %v3862_v26, %v8375_v7  ;;  %v8388_v18 = vld [vmem:[#allocation222_spill] sm:$0xff] }
 0x490   :  { %v2712_v17 = vmul.f32 %v3862_v26, %v8376_v58  ;;  %v3046_v40 = vadd.f32 %v3045_v45, %v2933_v8  ;;  %v3030_v10 = vadd.f32 %v2902_v29, %v8372_v38  ;;  %v2679_v43 = vmul.f32 %v3864_v19, %v8377_v53  ;;  %v8384_v26 = vld [vmem:[#allocation53_spill] sm:$0xff] }
 0x491   :  { %v2680_v52 = vmul.f32 %v3864_v19, %v8378_v41  ;;  %v2839_v35 = vmul.f32 %v2711_v25, %v8379_v15  ;;  %v2775_v50 = vmul.f32 %v3866_v5, %v8381_v48  ;;  %v2776_v3 = vmul.f32 %v3866_v5, %v8382_v4  ;;  %v8389_v29 = vld [vmem:[#allocation109_spill] sm:$0xff] }
 0x492   :  { %v2840_v36 = vmul.f32 %v2712_v17, %v8380_v62  ;;  %v3067_v21 = vadd.f32 %v3066_v59, %v2934_v46  ;;  %v2741_v6 = vmul.f32 %v6987_v37, %v8383_v11  ;;  %v2807_v13 = vmul.f32 %v2679_v43, %v8384_v26  ;;  %v8390_v59 = vld [vmem:[#allocation177_spill] sm:$0xff] }
 0x493   :  { %v2808_v12 = vmul.f32 %v2680_v52, %v8385_v9  ;;  %v2967_v30 = vadd.f32 %v2839_v35, %v8379_v15  ;;  %v2903_v1 = vmul.f32 %v2775_v50, %v8386_v61  ;;  %v2904_v51 = vmul.f32 %v2776_v3, %v8387_v27 }
 0x494   :  { %v2968_v19 = vadd.f32 %v2840_v36, %v8380_v62  ;;  %v3172_v54 = vadd.f32 %v3171_v31, %v3029_v42  ;;  %v3193_v44 = vadd.f32 %v3192_v57, %v3030_v10  ;;  %v2935_v55 = vadd.f32 %v2807_v13, %v8384_v26  ;;  %v8391_v42 = vld [vmem:[#allocation112_spill] sm:$0xff] }
 0x495   :  { %v2936_v0 = vadd.f32 %v2808_v12, %v8385_v9  ;;  %v3089_v63 = vadd.f32 %v3088_v23, %v2967_v30  ;;  %v3031_v39 = vadd.f32 %v2903_v1, %v8386_v61  ;;  %v3032_v5 = vadd.f32 %v2904_v51, %v8387_v27 }
 0x496   :  { %v3110_v33 = vadd.f32 %v3109_v32, %v2968_v19  ;;  %v2742_v47 = vmul.f32 %v6987_v37, %v8388_v18  ;;  %v3047_v20 = vadd.f32 %v3046_v40, %v2935_v55  ;;  %3867 = vrcp.f32 %v2536_v22  ;;  %v8392_v37 = vld [vmem:[#allocation153_spill] sm:$0xff] }
 0x497   :  { %v3068_v34 = vadd.f32 %v3067_v21, %v2936_v0  ;;  %v3090_v16 = vrot.slane %v3089_v63, 4  ;;  %v3173_v8 = vadd.f32 %v3172_v54, %v3031_v39  ;;  %v3194_v38 = vadd.f32 %v3193_v44, %v3032_v5 }
 0x498   :  { %v3111_v24 = vrot.slane %v3110_v33, 4  ;;  %v2867_v45 = vmul.f32 %v2739_v60, %v8389_v29  ;;  %v2868_v49 = vmul.f32 %v2740_v28, %v8390_v59  ;;  %v3048_v2 = vrot.slane %v3047_v20, 4 }
 0x499   :  { %v3069_v31 = vrot.slane %v3068_v34, 4  ;;  %v3091_v57 = vadd.f32 %v3090_v16, %v3089_v63  ;;  %v3174_v46 = vrot.slane %v3173_v8, 4  ;;  %v3195_v32 = vrot.slane %v3194_v38, 4 }
 0x49a   :  { %v3112_v23 = vadd.f32 %v3111_v24, %v3110_v33  ;;  %v2869_v7 = vmul.f32 %v2741_v6, %v8391_v42  ;;  %v2870_v25 = vmul.f32 %v2742_v47, %v8392_v37  ;;  %v3049_v58 = vadd.f32 %v3048_v2, %v3047_v20 }
 0x49b   :  { %v3070_v17 = vadd.f32 %v3069_v31, %v3068_v34  ;;  %v3092_v40 = vrot.slane %v3091_v57, 2  ;;  %v3175_v53 = vadd.f32 %v3174_v46, %v3173_v8  ;;  %v3196_v43 = vadd.f32 %v3195_v32, %v3194_v38 }
 0x49c   :  { %v3113_v10 = vrot.slane %v3112_v23, 2  ;;  %v2995_v60 = vadd.f32 %v2867_v45, %v8389_v29  ;;  %v2996_v28 = vadd.f32 %v2868_v49, %v8390_v59  ;;  %v3050_v41 = vrot.slane %v3049_v58, 2  ;;  %v8395_v45 = vld [vmem:[#allocation115_spill] sm:$0xff]  ;;  %v8396_v49 = vld [vmem:[#allocation181_spill] sm:$0xff] }
 0x49d   :  { %v3071_v52 = vrot.slane %v3070_v17, 2  ;;  %v3093_v15 = vadd.f32 %v3092_v40, %v3091_v57  ;;  %v3176_v62 = vrot.slane %v3175_v53, 2  ;;  %v3197_v36 = vrot.slane %v3196_v43, 2 }
 0x49e   :  { %v3114_v35 = vadd.f32 %v3113_v10, %v3112_v23  ;;  %v2997_v48 = vadd.f32 %v2869_v7, %v8391_v42  ;;  %v2998_v50 = vadd.f32 %v2870_v25, %v8392_v37  ;;  %v3051_v4 = vadd.f32 %v3050_v41, %v3049_v58 }
 0x49f   :  { %v3072_v3 = vadd.f32 %v3071_v52, %v3070_v17  ;;  %v3094_v21 = vrot.slane %v3093_v15, 1  ;;  %v3177_v6 = vadd.f32 %v3176_v62, %v3175_v53  ;;  %v3198_v26 = vadd.f32 %v3197_v36, %v3196_v43 }
 0x4a0   :  { %v3115_v11 = vrot.slane %v3114_v35, 1  ;;  %v3129_v13 = vadd.f32 %v6989_v14, %v2995_v60  ;;  %v3150_v9 = vadd.f32 %v7006_v56, %v2996_v28  ;;  %v3052_v12 = vrot.slane %v3051_v4, 1  ;;  %v8393_v14 = vld [vmem:[#allocation229_spill] sm:$0xff]  ;;  %v8394_v56 = vld [vmem:[#allocation230_spill] sm:$0xff] }
 0x4a1   :  { %v3073_v30 = vrot.slane %v3072_v3, 1  ;;  %v3095_v19 = vadd.f32 %v3094_v21, %v3093_v15  ;;  %v3178_v1 = vrot.slane %v3177_v6, 1  ;;  %v3199_v27 = vrot.slane %v3198_v26, 1 }
 0x4a2   :  { %v3116_v61 = vadd.f32 %v3115_v11, %v3114_v35  ;;  %v3130_v51 = vadd.f32 %v3129_v13, %v2997_v48  ;;  %v3151_v22 = vadd.f32 %v3150_v9, %v2998_v50  ;;  %v3053_v54 = vadd.f32 %v3052_v12, %v3051_v4 }
 0x4a3   :  { %v3074_v44 = vadd.f32 %v3073_v30, %v3072_v3  ;;  %v3868_v55 = vpop.eup %3867  ;;  %v3204_v0 = vmul.f32 0.0078125, %v3095_v19  ;;  %v3179_v33 = vadd.f32 %v3178_v1, %v3177_v6  ;;  %v3200_v39 = vadd.f32 %v3199_v27, %v3198_v26 }
 0x4a4   :  { %v3205_v63 = vmul.f32 0.0078125, %v3116_v61  ;;  %v3202_v5 = vmul.f32 0.0078125, %v3053_v54  ;;  %v2743_v47 = vmul.f32 %v3868_v55, %v8393_v14  ;;  %v2744_v20 = vmul.f32 %v3868_v55, %v8394_v56 }
 0x4a5   :  { %v3203_v18 = vmul.f32 0.0078125, %v3074_v44  ;;  %v3212_v34 = vsub.f32 0.0, %v3204_v0  ;;  %v3208_v24 = vmul.f32 0.0078125, %v3179_v33  ;;  %v3209_v8 = vmul.f32 0.0078125, %v3200_v39  ;;  %v8397_v33 = vld [vmem:[#allocation27_spill] sm:$0xff] }
 0x4a6   :  { %v3213_v16 = vsub.f32 0.0, %v3205_v63  ;;  %v3210_v38 = vsub.f32 0.0, %v3202_v5  ;;  %v2871_v59 = vmul.f32 %v2743_v47, %v8395_v45  ;;  %v2872_v2 = vmul.f32 %v2744_v20, %v8396_v49 }
 0x4a7   :  { %v3211_v29 = vsub.f32 0.0, %v3203_v18  ;;  %v3222_v31 = vmul.f32 1.442695, %v3212_v34  ;;  %v3216_v23 = vsub.f32 0.0, %v3208_v24  ;;  %v3217_v46 = vsub.f32 0.0, %v3209_v8 }
 0x4a8   :  { %v3224_v57 = vmul.f32 1.442695, %v3213_v16  ;;  %v3218_v32 = vmul.f32 1.442695, %v3210_v38  ;;  %v2999_v7 = vadd.f32 %v2871_v59, %v8395_v45  ;;  %v3000_v37 = vadd.f32 %v2872_v2, %v8396_v49 }
 0x4a9   :  { %v3220_v42 = vmul.f32 1.442695, %v3211_v29  ;;  %3869 = vpow2.f32 %v3222_v31  ;;  %v3230_v25 = vmul.f32 1.442695, %v3216_v23  ;;  %v3232_v58 = vmul.f32 1.442695, %v3217_v46 }
 0x4aa   :  { %3871 = vpow2.f32 %v3224_v57  ;;  %v3131_v17 = vadd.f32 %v3130_v51, %v2999_v7  ;;  %v3152_v40 = vadd.f32 %v3151_v22, %v3000_v37  ;;  %v3959_v44 = vmov 1966171168  }
 0x4ab   :  { %3873 = vpow2.f32 %v3218_v32  ;;  %v3268_v55 = vunpack.c.l.s4 %v3959_v44  ;;  %v8398_v24 = vlaneseq }
 0x4ac   :  { %3875 = vpow2.f32 %v3220_v42  ;;  %v3132_v10 = vrot.slane %v3131_v17, 4  ;;  %v3153_v53 = vrot.slane %v3152_v40, 4 }
 0x4ad   :  { %3877 = vpow2.f32 %v3230_v25  ;;  %v3269_v0 = vunpack.c.0.s8 %v3268_v55  ;;  %vm7058_vm15 = vcmp.lt.s32.totalorder %v8398_v24, 256 }
 0x4ae   :  { %3879 = vpow2.f32 %v3232_v58  ;;  %v3133_v43 = vadd.f32 %v3132_v10, %v3131_v17  ;;  %v3154_v60 = vadd.f32 %v3153_v53, %v3152_v40 }
 0x4af   :  { %v3272_v39 = vsub.s32 %v3269_v0, %v8397_v33 }
 0x4b0   :  { %v3134_v28 = vrot.slane %v3133_v43, 2  ;;  %v3155_v41 = vrot.slane %v3154_v60, 2 }
 0x4b2   :  { %v3135_v52 = vadd.f32 %v3134_v28, %v3133_v43  ;;  %v3156_v15 = vadd.f32 %v3155_v41, %v3154_v60 }
 0x4b4   :  { %v3136_v35 = vrot.slane %v3135_v52, 1  ;;  %v3157_v62 = vrot.slane %v3156_v15, 1 }
 0x4b6   :  { %v3870_v36 = vpop.eup %3869  ;;  %v3137_v48 = vadd.f32 %v3136_v35, %v3135_v52  ;;  %v3158_v50 = vadd.f32 %v3157_v62, %v3156_v15 }
 0x4b7   :  { %v3872_v4 = vpop.eup %3871  ;;  %v3236_v3 = vadd.f32 1.0, %v3870_v36 }
 0x4b8   :  { %v3874_v21 = vpop.eup %3873  ;;  %v3237_v11 = vadd.f32 1.0, %v3872_v4  ;;  %v3206_v6 = vmul.f32 0.0078125, %v3137_v48  ;;  %v3207_v26 = vmul.f32 0.0078125, %v3158_v50 }
 0x4b9   :  { %v3876_v13 = vpop.eup %3875  ;;  %3881 = vrcp.f32 %v3236_v3  ;;  %v3234_v9 = vadd.f32 1.0, %v3874_v21 }
 0x4ba   :  { %v3878_v12 = vpop.eup %3877  ;;  %3883 = vrcp.f32 %v3237_v11  ;;  %v3235_v30 = vadd.f32 1.0, %v3876_v13  ;;  %v3214_v19 = vsub.f32 0.0, %v3206_v6  ;;  %v3215_v61 = vsub.f32 0.0, %v3207_v26 }
 0x4bb   :  { %v3880_v1 = vpop.eup %3879  ;;  %3885 = vrcp.f32 %v3234_v9  ;;  %v3240_v27 = vadd.f32 1.0, %v3878_v12 }
 0x4bc   :  { %3887 = vrcp.f32 %v3235_v30  ;;  %v3241_v51 = vadd.f32 1.0, %v3880_v1  ;;  %v3226_v22 = vmul.f32 1.442695, %v3214_v19  ;;  %v3228_v54 = vmul.f32 1.442695, %v3215_v61 }
 0x4bd   :  { %3889 = vrcp.f32 %v3240_v27 }
 0x4be   :  { %3891 = vrcp.f32 %v3241_v51 }
 0x4bf   :  { %3893 = vpow2.f32 %v3226_v22 }
 0x4c0   :  { %3895 = vpow2.f32 %v3228_v54 }
 0x4c6   :  { %v3882_v63 = vpop.eup %3881 }
 0x4c7   :  { %v3884_v5 = vpop.eup %3883 }
 0x4c8   :  { %v3886_v18 = vpop.eup %3885  ;;  %v3281_v14 = vcombine.low %v3882_v63, %v3884_v5 }
 0x4c9   :  { %v3888_v47 = vpop.eup %3887 }
 0x4ca   :  { %v3890_v56 = vpop.eup %3889  ;;  %v3288_v20 = vrot.slane %v3281_v14, %v3272_v39  ;;  %v3266_v34 = vcombine.low %v3886_v18, %v3888_v47 }
 0x4cb   :  { %v3892_v16 = vpop.eup %3891 }
 0x4cc   :  { %v3894_v38 = vpop.eup %3893  ;;  %v3295_v29 = vrot.slane %v3288_v20, %v3272_v39  ;;  %v3273_v45 = vrot.slane %v3266_v34, %v3272_v39  ;;  %v3311_v59 = vcombine.low %v3890_v56, %v3892_v16 }
 0x4cd   :  { %v3896_v49 = vpop.eup %3895  ;;  %v3238_v2 = vadd.f32 1.0, %v3894_v38 }
 0x4ce   :  { %3443 = vst.msk [vmem:[%s7084_s2 + $0x10] ss:$8 sm:$0x3] %vm7058_vm15, %v3295_v29  ;;  %v3280_v31 = vrot.slane %v3273_v45, %v3272_v39  ;;  %v3318_v57 = vrot.slane %v3311_v59, %v3272_v39  ;;  %v3239_v23 = vadd.f32 1.0, %v3896_v49 }
 0x4cf   :  { %3897 = vrcp.f32 %v3238_v2 }
 0x4d0   :  { %3334 = vst.msk [vmem:[%s7084_s2] ss:$8 sm:$0x3] %vm7058_vm15, %v3280_v31  ;;  %v3325_v46 = vrot.slane %v3318_v57, %v3272_v39  ;;  %3899 = vrcp.f32 %v3239_v23 }
 0x4d2   :  { %3445 = vst.msk [vmem:[%s7084_s2 + $0x30] ss:$8 sm:$0x3] %vm7058_vm15, %v3325_v46 }
 0x4dc   :  { %v3898_v32 = vpop.eup %3897 }
 0x4dd   :  { %v3900_v42 = vpop.eup %3899 }
 0x4de   :  { %v3296_v7 = vcombine.low %v3898_v32, %v3900_v42 }
 0x4e0   :  { %v3303_v37 = vrot.slane %v3296_v7, %v3272_v39 }
 0x4e2   :  { %v3310_v25 = vrot.slane %v3303_v37, %v3272_v39 }
 0x4e4   :  { %3444 = vst.msk [vmem:[%s7084_s2 + $0x20] ss:$8 sm:$0x3] %vm7058_vm15, %v3310_v25 }
 0x4e5   :  { %3437 = vsyncpa [#allocation3], 1 }
 0x4e6   :  { %3438 = vsyncpa [#allocation5], 1 }

</bundles_post_ra>
